<compile_context>
chip_gen: v5e
topology: v5e:2x2
jax: 0.10.0
libtpu: 0.0.40
codegen_flags: <defaults>
</compile_context>

<pallas_src>
import jax
import jax.numpy as jnp
from jax import lax
from jax.experimental import pallas as pl
from jax.experimental.pallas import tpu as pltpu


def _sigmoid(x):
    # sigmoid(x) == 0.5 * tanh(0.5 * x) + 0.5  -> a single EUP transcendental.
    return 0.5 * jnp.tanh(0.5 * x) + 0.5


def _hawkes_kernel(hist_ref, u_ref, w_ref, ug_ref, ul_ref, d_ref,
                   ct_ref, o_ref, htw_ref):
    sps = u_ref.shape[0]          # sides handled per grid step (1 or 2)
    tb = u_ref.shape[1]           # b-rows handled by this grid step
    n_j = u_ref.shape[2]          # full node axis (contraction axis j / n)
    e = u_ref.shape[3]            # event types (lane dim)
    ti = w_ref.shape[3]           # i-rows handled by this grid step

    i0 = pl.multiple_of(pl.program_id(1) * ti, ti)       # i-row offset

    for sl in range(sps):
        s = pl.program_id(0) * sps + sl                  # actual side index

        # ---- ht in wide layout: htw[j, b*E + e] = tanh(u[sl, b, j, e]) ------
        # Written tanh-once into VMEM scratch; reused both for the U@ht MXU dot
        # and (via row slices) for the elementwise forget/limit terms, so no
        # concatenate copy and no redundant tanh.
        for b in range(tb):
            htw_ref[:, b * e:(b + 1) * e] = jnp.tanh(u_ref[sl, b])

        # ---- hist_w: A[g, i, e] = sum_n hist[n] * W[g, n, i, e] -------------
        # history lives in SMEM (scalars); W is packed with the contraction
        # axis n leading and loaded PER STEP from the ref (no full-block
        # materialization), so this is a pure VPU FMA stream for all 4 gates.
        if n_j <= 16:
            a = hist_ref[s, 0] * w_ref[sl, :, 0]         # (4, ti, e)
            for n in range(1, n_j):
                a = a + hist_ref[s, n] * w_ref[sl, :, n]
        else:
            def hist_step(n, acc):
                return acc + hist_ref[s, n] * w_ref[sl, :, n]
            a = lax.fori_loop(1, n_j, hist_step,
                              hist_ref[s, 0] * w_ref[sl, :, 0], unroll=8)
        a_in, a_out, a_for, a_lim = a[0], a[1], a[2], a[3]

        # ---- u_h: ONE fused MXU dot for all 3 gated U matrices --------------
        # (3, ti, n_j) -> (3*ti, n_j) is a pure leading-dim merge.
        ug2 = ug_ref[sl].reshape(3 * ti, n_j)
        b_all = jnp.dot(ug2, htw_ref[...],
                        preferred_element_type=jnp.float32)   # (3*ti, tb*e)
        b_in = b_all[0:ti]
        b_out = b_all[ti:2 * ti]
        b_for = b_all[2 * ti:3 * ti]

        # ---- gates + cell state; one full lane-dense (ti, E) tile per b -----
        for b in range(tb):
            lanes = slice(b * e, (b + 1) * e)            # lane-tile aligned view
            if ti == n_j:
                ht_b = htw_ref[:, lanes]                 # (ti, e)
            else:
                ht_b = htw_ref[pl.ds(i0, ti), lanes]     # row slice of cached ht
            i_g = _sigmoid(a_in + b_in[:, lanes] + d_ref[sl, 0, b])
            o_g = _sigmoid(a_out + b_out[:, lanes] + d_ref[sl, 1, b])
            f_g = _sigmoid(a_for + b_for[:, lanes] + d_ref[sl, 2, b])
            z_g = jnp.tanh(a_lim + ul_ref[sl, b] * ht_b + d_ref[sl, 3, b])
            ct_ref[sl, b] = f_g * ht_b + i_g * z_g
            o_ref[sl, b] = o_g


def _pick_tiles(n, e):
    """Block sizes along the b / i node axes.  Single block for small N;
    otherwise 16- or 8-row blocks chosen against a conservative double-buffered
    VMEM budget so per-step footprint stays safe on v7x (64 MiB physical)."""
    if n <= 8 or n % 8 != 0:
        return n, n
    budget = 20 << 20                       # bytes for double-buffered blocks
    for cand in (16, 8):                    # capped at 16 (v7x VMEM budget)
        if n % cand != 0:
            continue
        tb = ti = cand
        blk = 4 * (4 * n * ti * e           # W (4 gates, n-leading)
                   + tb * n * e             # u_begin
                   + 3 * ti * n             # gate U matrices
                   + tb * ti * e            # limit_u
                   + 4 * tb * ti * e        # D (4 gates)
                   + 2 * tb * ti * e)       # two outputs
        scratch = 4 * n * tb * e            # ht_wide scratch (single-buffered)
        if 2 * blk + scratch <= budget:
            return tb, ti
    return 8, 8


def _hawkes_call(hist, u, w, ug, ul, d):
    sides, n, n_j, e = u.shape              # sides == 2
    tb, ti = _pick_tiles(n, e)
    grid_i, grid_b = n // ti, n // tb

    # Demo scale: per-side grid is a single step -> fold both sides into one
    # grid step (fewer steps, both sides' DMAs overlap; best on 1-TC chips).
    # Larger N: keep the side axis leading and "parallel" so v7x megacore can
    # give each TensorCore one independent side.
    # TODO(synk): switch the side axis to pltpu.CORE_PARALLEL if a v7x profile
    # shows one idle TensorCore with plain "parallel".
    sps = sides if (grid_i == 1 and grid_b == 1) else 1
    grid = (sides // sps, grid_i, grid_b)   # (side, i, b) -- b innermost so W
                                            # (keyed on i only) stays resident.
    out_sds = jax.ShapeDtypeStruct((sides, n, n, e), jnp.float32)

    return pl.pallas_call(
        _hawkes_kernel,
        grid=grid,
        in_specs=[
            # history_event: tiny, read as scalars -> whole array in SMEM.
            pl.BlockSpec(memory_space=pltpu.MemorySpace.SMEM),
            pl.BlockSpec((sps, tb, n_j, e), lambda s, i, b: (s, b, 0, 0)),        # u_begin
            pl.BlockSpec((sps, 4, n_j, ti, e), lambda s, i, b: (s, 0, 0, i, 0)),  # W (4 gates, n-leading)
            pl.BlockSpec((sps, 3, ti, n_j), lambda s, i, b: (s, 0, i, 0)),        # U (3 gates)
            pl.BlockSpec((sps, tb, ti, e), lambda s, i, b: (s, b, i, 0)),         # limit_u
            pl.BlockSpec((sps, 4, tb, ti, e), lambda s, i, b: (s, 0, b, i, 0)),   # D (4 gates)
        ],
        out_specs=(
            pl.BlockSpec((sps, tb, ti, e), lambda s, i, b: (s, b, i, 0)),         # ct
            pl.BlockSpec((sps, tb, ti, e), lambda s, i, b: (s, b, i, 0)),         # out_put
        ),
        out_shape=(out_sds, out_sds),
        scratch_shapes=[pltpu.VMEM((n_j, tb * e), jnp.float32)],                  # ht_wide
        compiler_params=pltpu.CompilerParams(
            # All output blocks are disjoint across every axis -> all parallel.
            dimension_semantics=("parallel", "parallel", "parallel"),
            vmem_limit_bytes=48 << 20),
    )(hist, u, w, ug, ul, d)


def pack_params(params):
    """One-time re-layout of the 26 PyTorch-style parameters.  Call ONCE outside
    the train/inference step so no HBM re-stacking happens on the critical path."""
    def one_side(suf):
        # W packed as [gate, n, i, e]: contraction axis n leading so the kernel's
        # hist sweep is a plain VPU FMA accumulation over per-n ref loads.
        w = jnp.stack([jnp.swapaxes(params["input_w" + suf], 0, 1),
                       jnp.swapaxes(params["output_w" + suf], 0, 1),
                       jnp.swapaxes(params["forget_w" + suf], 0, 1),
                       jnp.swapaxes(params["limit_w" + suf], 0, 1)], axis=0)
        d = jnp.stack([params["input_d" + suf], params["output_d" + suf],
                       params["forget_d" + suf], params["limit_d" + suf]], axis=0)
        ug = jnp.stack([params["input_u" + suf], params["output_u" + suf],
                        params["forget_u" + suf]], axis=0)
        ul = params["limit_u" + suf]
        return w, d, ug, ul

    w1, d1, ug1, ul1 = one_side("")
    w2, d2, ug2, ul2 = one_side("2")
    return {
        "w": jnp.stack([w1, w2]).astype(jnp.float32),     # (2, 4, N, N, E)
        "d": jnp.stack([d1, d2]).astype(jnp.float32),     # (2, 4, N, N, E)
        "ug": jnp.stack([ug1, ug2]).astype(jnp.float32),  # (2, 3, N, N)
        "ul": jnp.stack([ul1, ul2]).astype(jnp.float32),  # (2, N, N, E)
    }


@jax.jit
def hawkes_forward(packed, history_event1, u_begin1, history_event2, u_begin2):
    """Forward pass of hawkes_parameter: returns (ct, out_put, ct2, out_put2)."""
    hist = jnp.stack([history_event1, history_event2]).astype(jnp.float32)  # (2, N)
    u = jnp.stack([u_begin1, u_begin2]).astype(jnp.float32)                 # (2, N, N, E)
    ct, o = _hawkes_call(hist, u, packed["w"], packed["ug"],
                         packed["ul"], packed["d"])
    return ct[0], o[0], ct[1], o[1]


def init_params(key, num_nodes, num_event_type):
    """Deterministic uniform(0, 0.001) init, matching nn.init.uniform_ ranges."""
    names_3d = []
    names_2d = []
    for suf in ("", "2"):
        for gate in ("input", "output", "forget"):
            names_3d += [f"{gate}_w{suf}", f"{gate}_d{suf}"]
            names_2d += [f"{gate}_u{suf}"]
        names_3d += [f"limit_w{suf}", f"limit_u{suf}", f"limit_d{suf}"]
    params = {}
    keys = jax.random.split(key, len(names_3d) + len(names_2d))
    i = 0
    for name in names_3d:
        params[name] = jax.random.uniform(
            keys[i], (num_nodes, num_nodes, num_event_type),
            minval=0.0, maxval=0.001, dtype=jnp.float32)
        i += 1
    for name in names_2d:
        params[name] = jax.random.uniform(
            keys[i], (num_nodes, num_nodes),
            minval=0.0, maxval=0.001, dtype=jnp.float32)
        i += 1
    return params


def _ref_forward(p, he1, u1, he2, u2):
    """Pure-JAX reference mirroring the torch broadcasting semantics."""
    def side(hist, u, wi, ui, di, wo, uo, do, wf, uf, df, wl, ul, dl):
        ht = jnp.tanh(u)
        hw = lambda w: jnp.einsum("n,ine->ie", hist, w)
        uh = lambda U: jnp.einsum("ij,bje->bie", U, ht)
        i_ = jax.nn.sigmoid(hw(wi)[None] + uh(ui) + di)
        o_ = jax.nn.sigmoid(hw(wo)[None] + uh(uo) + do)
        f_ = jax.nn.sigmoid(hw(wf)[None] + uh(uf) + df)
        z_ = jnp.tanh(hw(wl)[None] + ul * ht + dl)
        return f_ * ht + i_ * z_, o_

    ct, o = side(he1, u1, p["input_w"], p["input_u"], p["input_d"],
                 p["output_w"], p["output_u"], p["output_d"],
                 p["forget_w"], p["forget_u"], p["forget_d"],
                 p["limit_w"], p["limit_u"], p["limit_d"])
    ct2, o2 = side(he2, u2, p["input_w2"], p["input_u2"], p["input_d2"],
                   p["output_w2"], p["output_u2"], p["output_d2"],
                   p["forget_w2"], p["forget_u2"], p["forget_d2"],
                   p["limit_w2"], p["limit_u2"], p["limit_d2"])
    return ct, o, ct2, o2


if __name__ == "__main__":
    NUM_NODES = 8
    NUM_EVENT_TYPE = 128

    root = jax.random.PRNGKey(0)
    k_params, k1, k2, k3, k4 = jax.random.split(root, 5)
    params = init_params(k_params, NUM_NODES, NUM_EVENT_TYPE)
    packed = pack_params(params)   # one-time parameter re-layout (outside step)

    history_event1 = jax.random.uniform(k1, (NUM_NODES,), dtype=jnp.float32)
    u_begin1 = jax.random.normal(k2, (NUM_NODES, NUM_NODES, NUM_EVENT_TYPE),
                                 dtype=jnp.float32)
    history_event2 = jax.random.uniform(k3, (NUM_NODES,), dtype=jnp.float32)
    u_begin2 = jax.random.normal(k4, (NUM_NODES, NUM_NODES, NUM_EVENT_TYPE),
                                 dtype=jnp.float32)

    outs = hawkes_forward(packed, history_event1, u_begin1,
                          history_event2, u_begin2)
    outs = jax.block_until_ready(outs)

    refs = _ref_forward(params, history_event1, u_begin1,
                        history_event2, u_begin2)
    for got, want in zip(outs, refs):
        assert got.shape == want.shape and got.dtype == jnp.float32
        assert jnp.allclose(got, want, rtol=1e-5, atol=1e-5), "mismatch vs reference"

    print("KERNEL_OK")
</pallas_src>

<mosaic_0001>
module attributes {stable_mosaic.version = 11 : i64} {
  func.func @_hawkes_kernel(%arg0: i32, %arg1: i32, %arg2: i32, %arg3: memref<2x8xf32, #tpu.memory_space<smem>>, %arg4: memref<2x8x8x128xf32, #tpu.memory_space<vmem>>, %arg5: memref<2x4x8x8x128xf32, #tpu.memory_space<vmem>>, %arg6: memref<2x3x8x8xf32, #tpu.memory_space<vmem>>, %arg7: memref<2x8x8x128xf32, #tpu.memory_space<vmem>>, %arg8: memref<2x4x8x8x128xf32, #tpu.memory_space<vmem>>, %arg9: memref<2x8x8x128xf32, #tpu.memory_space<vmem>>, %arg10: memref<2x8x8x128xf32, #tpu.memory_space<vmem>>, %arg11: memref<8x1024xf32, #tpu.memory_space<vmem>>) attributes {dimension_semantics = [#tpu.dimension_semantics<parallel>, #tpu.dimension_semantics<parallel>, #tpu.dimension_semantics<parallel>], iteration_bounds = array<i64: 1, 1, 1>, scalar_prefetch = 0 : i64, scratch_operands = 1 : i64, tpu.core_type = #tpu.core_type<tc>, window_params = [{transform_indices = @transform_0, window_bounds = array<i64: 2, 8>}, {transform_indices = @transform_1, window_bounds = array<i64: 2, 8, 8, 128>}, {transform_indices = @transform_2, window_bounds = array<i64: 2, 4, 8, 8, 128>}, {transform_indices = @transform_3, window_bounds = array<i64: 2, 3, 8, 8>}, {transform_indices = @transform_4, window_bounds = array<i64: 2, 8, 8, 128>}, {transform_indices = @transform_5, window_bounds = array<i64: 2, 4, 8, 8, 128>}, {transform_indices = @transform_6, window_bounds = array<i64: 2, 8, 8, 128>}, {transform_indices = @transform_7, window_bounds = array<i64: 2, 8, 8, 128>}]} {
    %c2_i32 = arith.constant 2 : i32
    %0 = arith.muli %arg0, %c2_i32 : i32
    %c0_i32 = arith.constant 0 : i32
    %1 = arith.addi %0, %c0_i32 : i32
    %c0 = arith.constant 0 : index
    %c0_0 = arith.constant 0 : index
    %c0_1 = arith.constant 0 : index
    %c0_2 = arith.constant 0 : index
    %2 = vector.load %arg4[%c0, %c0_0, %c0_1, %c0_2] : memref<2x8x8x128xf32, #tpu.memory_space<vmem>>, vector<1x1x8x128xf32>
    %3 = vector.shape_cast %2 : vector<1x1x8x128xf32> to vector<8x128xf32>
    %4 = math.tanh %3 : vector<8x128xf32>
    %c0_3 = arith.constant 0 : index
    %c0_4 = arith.constant 0 : index
    %5 = vector.load %arg11[%c0_3, %c0_4] : memref<8x1024xf32, #tpu.memory_space<vmem>>, vector<8x128xf32>
    tpu.vector_store %arg11[%c0_3, %c0_4], %4 {strides = array<i32>} : memref<8x1024xf32, #tpu.memory_space<vmem>>, vector<8x128xf32>,
    %c0_5 = arith.constant 0 : index
    %c1 = arith.constant 1 : index
    %c0_6 = arith.constant 0 : index
    %c0_7 = arith.constant 0 : index
    %6 = vector.load %arg4[%c0_5, %c1, %c0_6, %c0_7] : memref<2x8x8x128xf32, #tpu.memory_space<vmem>>, vector<1x1x8x128xf32>
    %7 = vector.shape_cast %6 : vector<1x1x8x128xf32> to vector<8x128xf32>
    %8 = math.tanh %7 : vector<8x128xf32>
    %c0_8 = arith.constant 0 : index
    %c128 = arith.constant 128 : index
    %9 = vector.load %arg11[%c0_8, %c128] : memref<8x1024xf32, #tpu.memory_space<vmem>>, vector<8x128xf32>
    tpu.vector_store %arg11[%c0_8, %c128], %8 {strides = array<i32>} : memref<8x1024xf32, #tpu.memory_space<vmem>>, vector<8x128xf32>,
    %c0_9 = arith.constant 0 : index
    %c2 = arith.constant 2 : index
    %c0_10 = arith.constant 0 : index
    %c0_11 = arith.constant 0 : index
    %10 = vector.load %arg4[%c0_9, %c2, %c0_10, %c0_11] : memref<2x8x8x128xf32, #tpu.memory_space<vmem>>, vector<1x1x8x128xf32>
    %11 = vector.shape_cast %10 : vector<1x1x8x128xf32> to vector<8x128xf32>
    %12 = math.tanh %11 : vector<8x128xf32>
    %c0_12 = arith.constant 0 : index
    %c256 = arith.constant 256 : index
    %13 = vector.load %arg11[%c0_12, %c256] : memref<8x1024xf32, #tpu.memory_space<vmem>>, vector<8x128xf32>
    tpu.vector_store %arg11[%c0_12, %c256], %12 {strides = array<i32>} : memref<8x1024xf32, #tpu.memory_space<vmem>>, vector<8x128xf32>,
    %c0_13 = arith.constant 0 : index
    %c3 = arith.constant 3 : index
    %c0_14 = arith.constant 0 : index
    %c0_15 = arith.constant 0 : index
    %14 = vector.load %arg4[%c0_13, %c3, %c0_14, %c0_15] : memref<2x8x8x128xf32, #tpu.memory_space<vmem>>, vector<1x1x8x128xf32>
    %15 = vector.shape_cast %14 : vector<1x1x8x128xf32> to vector<8x128xf32>
    %16 = math.tanh %15 : vector<8x128xf32>
    %c0_16 = arith.constant 0 : index
    %c384 = arith.constant 384 : index
    %17 = vector.load %arg11[%c0_16, %c384] : memref<8x1024xf32, #tpu.memory_space<vmem>>, vector<8x128xf32>
    tpu.vector_store %arg11[%c0_16, %c384], %16 {strides = array<i32>} : memref<8x1024xf32, #tpu.memory_space<vmem>>, vector<8x128xf32>,
    %c0_17 = arith.constant 0 : index
    %c4 = arith.constant 4 : index
    %c0_18 = arith.constant 0 : index
    %c0_19 = arith.constant 0 : index
    %18 = vector.load %arg4[%c0_17, %c4, %c0_18, %c0_19] : memref<2x8x8x128xf32, #tpu.memory_space<vmem>>, vector<1x1x8x128xf32>
    %19 = vector.shape_cast %18 : vector<1x1x8x128xf32> to vector<8x128xf32>
    %20 = math.tanh %19 : vector<8x128xf32>
    %c0_20 = arith.constant 0 : index
    %c512 = arith.constant 512 : index
    %21 = vector.load %arg11[%c0_20, %c512] : memref<8x1024xf32, #tpu.memory_space<vmem>>, vector<8x128xf32>
    tpu.vector_store %arg11[%c0_20, %c512], %20 {strides = array<i32>} : memref<8x1024xf32, #tpu.memory_space<vmem>>, vector<8x128xf32>,
    %c0_21 = arith.constant 0 : index
    %c5 = arith.constant 5 : index
    %c0_22 = arith.constant 0 : index
    %c0_23 = arith.constant 0 : index
    %22 = vector.load %arg4[%c0_21, %c5, %c0_22, %c0_23] : memref<2x8x8x128xf32, #tpu.memory_space<vmem>>, vector<1x1x8x128xf32>
    %23 = vector.shape_cast %22 : vector<1x1x8x128xf32> to vector<8x128xf32>
    %24 = math.tanh %23 : vector<8x128xf32>
    %c0_24 = arith.constant 0 : index
    %c640 = arith.constant 640 : index
    %25 = vector.load %arg11[%c0_24, %c640] : memref<8x1024xf32, #tpu.memory_space<vmem>>, vector<8x128xf32>
    tpu.vector_store %arg11[%c0_24, %c640], %24 {strides = array<i32>} : memref<8x1024xf32, #tpu.memory_space<vmem>>, vector<8x128xf32>,
    %c0_25 = arith.constant 0 : index
    %c6 = arith.constant 6 : index
    %c0_26 = arith.constant 0 : index
    %c0_27 = arith.constant 0 : index
    %26 = vector.load %arg4[%c0_25, %c6, %c0_26, %c0_27] : memref<2x8x8x128xf32, #tpu.memory_space<vmem>>, vector<1x1x8x128xf32>
    %27 = vector.shape_cast %26 : vector<1x1x8x128xf32> to vector<8x128xf32>
    %28 = math.tanh %27 : vector<8x128xf32>
    %c0_28 = arith.constant 0 : index
    %c768 = arith.constant 768 : index
    %29 = vector.load %arg11[%c0_28, %c768] : memref<8x1024xf32, #tpu.memory_space<vmem>>, vector<8x128xf32>
    tpu.vector_store %arg11[%c0_28, %c768], %28 {strides = array<i32>} : memref<8x1024xf32, #tpu.memory_space<vmem>>, vector<8x128xf32>,
    %c0_29 = arith.constant 0 : index
    %c7 = arith.constant 7 : index
    %c0_30 = arith.constant 0 : index
    %c0_31 = arith.constant 0 : index
    %30 = vector.load %arg4[%c0_29, %c7, %c0_30, %c0_31] : memref<2x8x8x128xf32, #tpu.memory_space<vmem>>, vector<1x1x8x128xf32>
    %31 = vector.shape_cast %30 : vector<1x1x8x128xf32> to vector<8x128xf32>
    %32 = math.tanh %31 : vector<8x128xf32>
    %c0_32 = arith.constant 0 : index
    %c896 = arith.constant 896 : index
    %33 = vector.load %arg11[%c0_32, %c896] : memref<8x1024xf32, #tpu.memory_space<vmem>>, vector<8x128xf32>
    tpu.vector_store %arg11[%c0_32, %c896], %32 {strides = array<i32>} : memref<8x1024xf32, #tpu.memory_space<vmem>>, vector<8x128xf32>,
    %34 = arith.index_cast %1 : i32 to index
    %c0_33 = arith.constant 0 : index
    %35 = memref.load %arg3[%34, %c0_33] : memref<2x8xf32, #tpu.memory_space<smem>>
    %c0_34 = arith.constant 0 : index
    %c0_35 = arith.constant 0 : index
    %c0_36 = arith.constant 0 : index
    %c0_37 = arith.constant 0 : index
    %c0_38 = arith.constant 0 : index
    %36 = vector.load %arg5[%c0_34, %c0_35, %c0_36, %c0_37, %c0_38] : memref<2x4x8x8x128xf32, #tpu.memory_space<vmem>>, vector<1x4x1x8x128xf32>
    %37 = vector.shape_cast %36 : vector<1x4x1x8x128xf32> to vector<4x8x128xf32>
    %38 = vector.broadcast %35 : f32 to vector<4x8x128xf32>
    %39 = arith.mulf %38, %37 : vector<4x8x128xf32>
    %40 = arith.index_cast %1 : i32 to index
    %c1_39 = arith.constant 1 : index
    %41 = memref.load %arg3[%40, %c1_39] : memref<2x8xf32, #tpu.memory_space<smem>>
    %c0_40 = arith.constant 0 : index
    %c0_41 = arith.constant 0 : index
    %c1_42 = arith.constant 1 : index
    %c0_43 = arith.constant 0 : index
    %c0_44 = arith.constant 0 : index
    %42 = vector.load %arg5[%c0_40, %c0_41, %c1_42, %c0_43, %c0_44] : memref<2x4x8x8x128xf32, #tpu.memory_space<vmem>>, vector<1x4x1x8x128xf32>
    %43 = vector.shape_cast %42 : vector<1x4x1x8x128xf32> to vector<4x8x128xf32>
    %44 = vector.broadcast %41 : f32 to vector<4x8x128xf32>
    %45 = arith.mulf %44, %43 : vector<4x8x128xf32>
    %46 = arith.addf %39, %45 : vector<4x8x128xf32>
    %47 = arith.index_cast %1 : i32 to index
    %c2_45 = arith.constant 2 : index
    %48 = memref.load %arg3[%47, %c2_45] : memref<2x8xf32, #tpu.memory_space<smem>>
    %c0_46 = arith.constant 0 : index
    %c0_47 = arith.constant 0 : index
    %c2_48 = arith.constant 2 : index
    %c0_49 = arith.constant 0 : index
    %c0_50 = arith.constant 0 : index
    %49 = vector.load %arg5[%c0_46, %c0_47, %c2_48, %c0_49, %c0_50] : memref<2x4x8x8x128xf32, #tpu.memory_space<vmem>>, vector<1x4x1x8x128xf32>
    %50 = vector.shape_cast %49 : vector<1x4x1x8x128xf32> to vector<4x8x128xf32>
    %51 = vector.broadcast %48 : f32 to vector<4x8x128xf32>
    %52 = arith.mulf %51, %50 : vector<4x8x128xf32>
    %53 = arith.addf %46, %52 : vector<4x8x128xf32>
    %54 = arith.index_cast %1 : i32 to index
    %c3_51 = arith.constant 3 : index
    %55 = memref.load %arg3[%54, %c3_51] : memref<2x8xf32, #tpu.memory_space<smem>>
    %c0_52 = arith.constant 0 : index
    %c0_53 = arith.constant 0 : index
    %c3_54 = arith.constant 3 : index
    %c0_55 = arith.constant 0 : index
    %c0_56 = arith.constant 0 : index
    %56 = vector.load %arg5[%c0_52, %c0_53, %c3_54, %c0_55, %c0_56] : memref<2x4x8x8x128xf32, #tpu.memory_space<vmem>>, vector<1x4x1x8x128xf32>
    %57 = vector.shape_cast %56 : vector<1x4x1x8x128xf32> to vector<4x8x128xf32>
    %58 = vector.broadcast %55 : f32 to vector<4x8x128xf32>
    %59 = arith.mulf %58, %57 : vector<4x8x128xf32>
    %60 = arith.addf %53, %59 : vector<4x8x128xf32>
    %61 = arith.index_cast %1 : i32 to index
    %c4_57 = arith.constant 4 : index
    %62 = memref.load %arg3[%61, %c4_57] : memref<2x8xf32, #tpu.memory_space<smem>>
    %c0_58 = arith.constant 0 : index
    %c0_59 = arith.constant 0 : index
    %c4_60 = arith.constant 4 : index
    %c0_61 = arith.constant 0 : index
    %c0_62 = arith.constant 0 : index
    %63 = vector.load %arg5[%c0_58, %c0_59, %c4_60, %c0_61, %c0_62] : memref<2x4x8x8x128xf32, #tpu.memory_space<vmem>>, vector<1x4x1x8x128xf32>
    %64 = vector.shape_cast %63 : vector<1x4x1x8x128xf32> to vector<4x8x128xf32>
    %65 = vector.broadcast %62 : f32 to vector<4x8x128xf32>
    %66 = arith.mulf %65, %64 : vector<4x8x128xf32>
    %67 = arith.addf %60, %66 : vector<4x8x128xf32>
    %68 = arith.index_cast %1 : i32 to index
    %c5_63 = arith.constant 5 : index
    %69 = memref.load %arg3[%68, %c5_63] : memref<2x8xf32, #tpu.memory_space<smem>>
    %c0_64 = arith.constant 0 : index
    %c0_65 = arith.constant 0 : index
    %c5_66 = arith.constant 5 : index
    %c0_67 = arith.constant 0 : index
    %c0_68 = arith.constant 0 : index
    %70 = vector.load %arg5[%c0_64, %c0_65, %c5_66, %c0_67, %c0_68] : memref<2x4x8x8x128xf32, #tpu.memory_space<vmem>>, vector<1x4x1x8x128xf32>
    %71 = vector.shape_cast %70 : vector<1x4x1x8x128xf32> to vector<4x8x128xf32>
    %72 = vector.broadcast %69 : f32 to vector<4x8x128xf32>
    %73 = arith.mulf %72, %71 : vector<4x8x128xf32>
    %74 = arith.addf %67, %73 : vector<4x8x128xf32>
    %75 = arith.index_cast %1 : i32 to index
    %c6_69 = arith.constant 6 : index
    %76 = memref.load %arg3[%75, %c6_69] : memref<2x8xf32, #tpu.memory_space<smem>>
    %c0_70 = arith.constant 0 : index
    %c0_71 = arith.constant 0 : index
    %c6_72 = arith.constant 6 : index
    %c0_73 = arith.constant 0 : index
    %c0_74 = arith.constant 0 : index
    %77 = vector.load %arg5[%c0_70, %c0_71, %c6_72, %c0_73, %c0_74] : memref<2x4x8x8x128xf32, #tpu.memory_space<vmem>>, vector<1x4x1x8x128xf32>
    %78 = vector.shape_cast %77 : vector<1x4x1x8x128xf32> to vector<4x8x128xf32>
    %79 = vector.broadcast %76 : f32 to vector<4x8x128xf32>
    %80 = arith.mulf %79, %78 : vector<4x8x128xf32>
    %81 = arith.addf %74, %80 : vector<4x8x128xf32>
    %82 = arith.index_cast %1 : i32 to index
    %c7_75 = arith.constant 7 : index
    %83 = memref.load %arg3[%82, %c7_75] : memref<2x8xf32, #tpu.memory_space<smem>>
    %c0_76 = arith.constant 0 : index
    %c0_77 = arith.constant 0 : index
    %c7_78 = arith.constant 7 : index
    %c0_79 = arith.constant 0 : index
    %c0_80 = arith.constant 0 : index
    %84 = vector.load %arg5[%c0_76, %c0_77, %c7_78, %c0_79, %c0_80] : memref<2x4x8x8x128xf32, #tpu.memory_space<vmem>>, vector<1x4x1x8x128xf32>
    %85 = vector.shape_cast %84 : vector<1x4x1x8x128xf32> to vector<4x8x128xf32>
    %86 = vector.broadcast %83 : f32 to vector<4x8x128xf32>
    %87 = arith.mulf %86, %85 : vector<4x8x128xf32>
    %88 = arith.addf %81, %87 : vector<4x8x128xf32>
    %89 = vector.extract_strided_slice %88 {offsets = [0, 0, 0], sizes = [1, 8, 128], strides = [1, 1, 1]} : vector<4x8x128xf32> to vector<1x8x128xf32>
    %90 = vector.shape_cast %89 : vector<1x8x128xf32> to vector<8x128xf32>
    %91 = vector.extract_strided_slice %88 {offsets = [1, 0, 0], sizes = [1, 8, 128], strides = [1, 1, 1]} : vector<4x8x128xf32> to vector<1x8x128xf32>
    %92 = vector.shape_cast %91 : vector<1x8x128xf32> to vector<8x128xf32>
    %93 = vector.extract_strided_slice %88 {offsets = [2, 0, 0], sizes = [1, 8, 128], strides = [1, 1, 1]} : vector<4x8x128xf32> to vector<1x8x128xf32>
    %94 = vector.shape_cast %93 : vector<1x8x128xf32> to vector<8x128xf32>
    %95 = vector.extract_strided_slice %88 {offsets = [3, 0, 0], sizes = [1, 8, 128], strides = [1, 1, 1]} : vector<4x8x128xf32> to vector<1x8x128xf32>
    %96 = vector.shape_cast %95 : vector<1x8x128xf32> to vector<8x128xf32>
    %c0_81 = arith.constant 0 : index
    %c0_82 = arith.constant 0 : index
    %c0_83 = arith.constant 0 : index
    %c0_84 = arith.constant 0 : index
    %97 = vector.load %arg6[%c0_81, %c0_82, %c0_83, %c0_84] : memref<2x3x8x8xf32, #tpu.memory_space<vmem>>, vector<1x3x8x8xf32>
    %98 = vector.shape_cast %97 : vector<1x3x8x8xf32> to vector<3x8x8xf32>
    %99 = vector.shape_cast %98 : vector<3x8x8xf32> to vector<24x8xf32>
    %c0_85 = arith.constant 0 : index
    %c0_86 = arith.constant 0 : index
    %100 = vector.load %arg11[%c0_85, %c0_86] : memref<8x1024xf32, #tpu.memory_space<vmem>>, vector<8x1024xf32>
    %cst = arith.constant dense<0.000000e+00> : vector<24x1024xf32>
    %101 = tpu.matmul %99, %100, %cst {dimension_numbers = #tpu.dot_dimension_numbers<[1], [0], [0], [1], [0, 0, 1, 1], [], []>} : vector<24x8xf32>, vector<8x1024xf32>, vector<24x1024xf32> -> vector<24x1024xf32>
    %102 = vector.extract_strided_slice %101 {offsets = [0, 0], sizes = [8, 1024], strides = [1, 1]} : vector<24x1024xf32> to vector<8x1024xf32>
    %103 = vector.extract_strided_slice %101 {offsets = [8, 0], sizes = [8, 1024], strides = [1, 1]} : vector<24x1024xf32> to vector<8x1024xf32>
    %104 = vector.extract_strided_slice %101 {offsets = [16, 0], sizes = [8, 1024], strides = [1, 1]} : vector<24x1024xf32> to vector<8x1024xf32>
    %c0_87 = arith.constant 0 : index
    %c0_88 = arith.constant 0 : index
    %105 = vector.load %arg11[%c0_87, %c0_88] : memref<8x1024xf32, #tpu.memory_space<vmem>>, vector<8x128xf32>
    %106 = vector.extract_strided_slice %102 {offsets = [0, 0], sizes = [8, 128], strides = [1, 1]} : vector<8x1024xf32> to vector<8x128xf32>
    %107 = arith.addf %90, %106 : vector<8x128xf32>
    %c0_89 = arith.constant 0 : index
    %c0_90 = arith.constant 0 : index
    %c0_91 = arith.constant 0 : index
    %c0_92 = arith.constant 0 : index
    %c0_93 = arith.constant 0 : index
    %108 = vector.load %arg8[%c0_89, %c0_90, %c0_91, %c0_92, %c0_93] : memref<2x4x8x8x128xf32, #tpu.memory_space<vmem>>, vector<1x1x1x8x128xf32>
    %109 = vector.shape_cast %108 : vector<1x1x1x8x128xf32> to vector<8x128xf32>
    %110 = arith.addf %107, %109 : vector<8x128xf32>
    %cst_94 = arith.constant 5.000000e-01 : f32
    %111 = vector.broadcast %cst_94 : f32 to vector<8x128xf32>
    %112 = arith.mulf %111, %110 : vector<8x128xf32>
    %113 = math.tanh %112 : vector<8x128xf32>
    %cst_95 = arith.constant 5.000000e-01 : f32
    %114 = vector.broadcast %cst_95 : f32 to vector<8x128xf32>
    %115 = arith.mulf %114, %113 : vector<8x128xf32>
    %cst_96 = arith.constant 5.000000e-01 : f32
    %116 = vector.broadcast %cst_96 : f32 to vector<8x128xf32>
    %117 = arith.addf %115, %116 : vector<8x128xf32>
    %118 = vector.extract_strided_slice %103 {offsets = [0, 0], sizes = [8, 128], strides = [1, 1]} : vector<8x1024xf32> to vector<8x128xf32>
    %119 = arith.addf %92, %118 : vector<8x128xf32>
    %c0_97 = arith.constant 0 : index
    %c1_98 = arith.constant 1 : index
    %c0_99 = arith.constant 0 : index
    %c0_100 = arith.constant 0 : index
    %c0_101 = arith.constant 0 : index
    %120 = vector.load %arg8[%c0_97, %c1_98, %c0_99, %c0_100, %c0_101] : memref<2x4x8x8x128xf32, #tpu.memory_space<vmem>>, vector<1x1x1x8x128xf32>
    %121 = vector.shape_cast %120 : vector<1x1x1x8x128xf32> to vector<8x128xf32>
    %122 = arith.addf %119, %121 : vector<8x128xf32>
    %cst_102 = arith.constant 5.000000e-01 : f32
    %123 = vector.broadcast %cst_102 : f32 to vector<8x128xf32>
    %124 = arith.mulf %123, %122 : vector<8x128xf32>
    %125 = math.tanh %124 : vector<8x128xf32>
    %cst_103 = arith.constant 5.000000e-01 : f32
    %126 = vector.broadcast %cst_103 : f32 to vector<8x128xf32>
    %127 = arith.mulf %126, %125 : vector<8x128xf32>
    %cst_104 = arith.constant 5.000000e-01 : f32
    %128 = vector.broadcast %cst_104 : f32 to vector<8x128xf32>
    %129 = arith.addf %127, %128 : vector<8x128xf32>
    %130 = vector.extract_strided_slice %104 {offsets = [0, 0], sizes = [8, 128], strides = [1, 1]} : vector<8x1024xf32> to vector<8x128xf32>
    %131 = arith.addf %94, %130 : vector<8x128xf32>
    %c0_105 = arith.constant 0 : index
    %c2_106 = arith.constant 2 : index
    %c0_107 = arith.constant 0 : index
    %c0_108 = arith.constant 0 : index
    %c0_109 = arith.constant 0 : index
    %132 = vector.load %arg8[%c0_105, %c2_106, %c0_107, %c0_108, %c0_109] : memref<2x4x8x8x128xf32, #tpu.memory_space<vmem>>, vector<1x1x1x8x128xf32>
    %133 = vector.shape_cast %132 : vector<1x1x1x8x128xf32> to vector<8x128xf32>
    %134 = arith.addf %131, %133 : vector<8x128xf32>
    %cst_110 = arith.constant 5.000000e-01 : f32
    %135 = vector.broadcast %cst_110 : f32 to vector<8x128xf32>
    %136 = arith.mulf %135, %134 : vector<8x128xf32>
    %137 = math.tanh %136 : vector<8x128xf32>
    %cst_111 = arith.constant 5.000000e-01 : f32
    %138 = vector.broadcast %cst_111 : f32 to vector<8x128xf32>
    %139 = arith.mulf %138, %137 : vector<8x128xf32>
    %cst_112 = arith.constant 5.000000e-01 : f32
    %140 = vector.broadcast %cst_112 : f32 to vector<8x128xf32>
    %141 = arith.addf %139, %140 : vector<8x128xf32>
    %c0_113 = arith.constant 0 : index
    %c0_114 = arith.constant 0 : index
    %c0_115 = arith.constant 0 : index
    %c0_116 = arith.constant 0 : index
    %142 = vector.load %arg7[%c0_113, %c0_114, %c0_115, %c0_116] : memref<2x8x8x128xf32, #tpu.memory_space<vmem>>, vector<1x1x8x128xf32>
    %143 = vector.shape_cast %142 : vector<1x1x8x128xf32> to vector<8x128xf32>
    %144 = arith.mulf %143, %105 : vector<8x128xf32>
    %145 = arith.addf %96, %144 : vector<8x128xf32>
    %c0_117 = arith.constant 0 : index
    %c3_118 = arith.constant 3 : index
    %c0_119 = arith.constant 0 : index
    %c0_120 = arith.constant 0 : index
    %c0_121 = arith.constant 0 : index
    %146 = vector.load %arg8[%c0_117, %c3_118, %c0_119, %c0_120, %c0_121] : memref<2x4x8x8x128xf32, #tpu.memory_space<vmem>>, vector<1x1x1x8x128xf32>
    %147 = vector.shape_cast %146 : vector<1x1x1x8x128xf32> to vector<8x128xf32>
    %148 = arith.addf %145, %147 : vector<8x128xf32>
    %149 = math.tanh %148 : vector<8x128xf32>
    %150 = arith.mulf %141, %105 : vector<8x128xf32>
    %151 = arith.mulf %117, %149 : vector<8x128xf32>
    %152 = arith.addf %150, %151 : vector<8x128xf32>
    %c0_122 = arith.constant 0 : index
    %c0_123 = arith.constant 0 : index
    %c0_124 = arith.constant 0 : index
    %c0_125 = arith.constant 0 : index
    %153 = vector.load %arg9[%c0_122, %c0_123, %c0_124, %c0_125] : memref<2x8x8x128xf32, #tpu.memory_space<vmem>>, vector<1x1x8x128xf32>
    %154 = vector.shape_cast %153 : vector<1x1x8x128xf32> to vector<8x128xf32>
    %155 = vector.shape_cast %152 : vector<8x128xf32> to vector<1x1x8x128xf32>
    tpu.vector_store %arg9[%c0_122, %c0_123, %c0_124, %c0_125], %155 {strides = array<i32>} : memref<2x8x8x128xf32, #tpu.memory_space<vmem>>, vector<1x1x8x128xf32>,
    %c0_126 = arith.constant 0 : index
    %c0_127 = arith.constant 0 : index
    %c0_128 = arith.constant 0 : index
    %c0_129 = arith.constant 0 : index
    %156 = vector.load %arg10[%c0_126, %c0_127, %c0_128, %c0_129] : memref<2x8x8x128xf32, #tpu.memory_space<vmem>>, vector<1x1x8x128xf32>
    %157 = vector.shape_cast %156 : vector<1x1x8x128xf32> to vector<8x128xf32>
    %158 = vector.shape_cast %129 : vector<8x128xf32> to vector<1x1x8x128xf32>
    tpu.vector_store %arg10[%c0_126, %c0_127, %c0_128, %c0_129], %158 {strides = array<i32>} : memref<2x8x8x128xf32, #tpu.memory_space<vmem>>, vector<1x1x8x128xf32>,
    %c0_130 = arith.constant 0 : index
    %c128_131 = arith.constant 128 : index
    %159 = vector.load %arg11[%c0_130, %c128_131] : memref<8x1024xf32, #tpu.memory_space<vmem>>, vector<8x128xf32>
    %160 = vector.extract_strided_slice %102 {offsets = [0, 128], sizes = [8, 128], strides = [1, 1]} : vector<8x1024xf32> to vector<8x128xf32>
    %161 = arith.addf %90, %160 : vector<8x128xf32>
    %c0_132 = arith.constant 0 : index
    %c0_133 = arith.constant 0 : index
    %c1_134 = arith.constant 1 : index
    %c0_135 = arith.constant 0 : index
    %c0_136 = arith.constant 0 : index
    %162 = vector.load %arg8[%c0_132, %c0_133, %c1_134, %c0_135, %c0_136] : memref<2x4x8x8x128xf32, #tpu.memory_space<vmem>>, vector<1x1x1x8x128xf32>
    %163 = vector.shape_cast %162 : vector<1x1x1x8x128xf32> to vector<8x128xf32>
    %164 = arith.addf %161, %163 : vector<8x128xf32>
    %cst_137 = arith.constant 5.000000e-01 : f32
    %165 = vector.broadcast %cst_137 : f32 to vector<8x128xf32>
    %166 = arith.mulf %165, %164 : vector<8x128xf32>
    %167 = math.tanh %166 : vector<8x128xf32>
    %cst_138 = arith.constant 5.000000e-01 : f32
    %168 = vector.broadcast %cst_138 : f32 to vector<8x128xf32>
    %169 = arith.mulf %168, %167 : vector<8x128xf32>
    %cst_139 = arith.constant 5.000000e-01 : f32
    %170 = vector.broadcast %cst_139 : f32 to vector<8x128xf32>
    %171 = arith.addf %169, %170 : vector<8x128xf32>
    %172 = vector.extract_strided_slice %103 {offsets = [0, 128], sizes = [8, 128], strides = [1, 1]} : vector<8x1024xf32> to vector<8x128xf32>
    %173 = arith.addf %92, %172 : vector<8x128xf32>
    %c0_140 = arith.constant 0 : index
    %c1_141 = arith.constant 1 : index
    %c1_142 = arith.constant 1 : index
    %c0_143 = arith.constant 0 : index
    %c0_144 = arith.constant 0 : index
    %174 = vector.load %arg8[%c0_140, %c1_141, %c1_142, %c0_143, %c0_144] : memref<2x4x8x8x128xf32, #tpu.memory_space<vmem>>, vector<1x1x1x8x128xf32>
    %175 = vector.shape_cast %174 : vector<1x1x1x8x128xf32> to vector<8x128xf32>
    %176 = arith.addf %173, %175 : vector<8x128xf32>
    %cst_145 = arith.constant 5.000000e-01 : f32
    %177 = vector.broadcast %cst_145 : f32 to vector<8x128xf32>
    %178 = arith.mulf %177, %176 : vector<8x128xf32>
    %179 = math.tanh %178 : vector<8x128xf32>
    %cst_146 = arith.constant 5.000000e-01 : f32
    %180 = vector.broadcast %cst_146 : f32 to vector<8x128xf32>
    %181 = arith.mulf %180, %179 : vector<8x128xf32>
    %cst_147 = arith.constant 5.000000e-01 : f32
    %182 = vector.broadcast %cst_147 : f32 to vector<8x128xf32>
    %183 = arith.addf %181, %182 : vector<8x128xf32>
    %184 = vector.extract_strided_slice %104 {offsets = [0, 128], sizes = [8, 128], strides = [1, 1]} : vector<8x1024xf32> to vector<8x128xf32>
    %185 = arith.addf %94, %184 : vector<8x128xf32>
    %c0_148 = arith.constant 0 : index
    %c2_149 = arith.constant 2 : index
    %c1_150 = arith.constant 1 : index
    %c0_151 = arith.constant 0 : index
    %c0_152 = arith.constant 0 : index
    %186 = vector.load %arg8[%c0_148, %c2_149, %c1_150, %c0_151, %c0_152] : memref<2x4x8x8x128xf32, #tpu.memory_space<vmem>>, vector<1x1x1x8x128xf32>
    %187 = vector.shape_cast %186 : vector<1x1x1x8x128xf32> to vector<8x128xf32>
    %188 = arith.addf %185, %187 : vector<8x128xf32>
    %cst_153 = arith.constant 5.000000e-01 : f32
    %189 = vector.broadcast %cst_153 : f32 to vector<8x128xf32>
    %190 = arith.mulf %189, %188 : vector<8x128xf32>
    %191 = math.tanh %190 : vector<8x128xf32>
    %cst_154 = arith.constant 5.000000e-01 : f32
    %192 = vector.broadcast %cst_154 : f32 to vector<8x128xf32>
    %193 = arith.mulf %192, %191 : vector<8x128xf32>
    %cst_155 = arith.constant 5.000000e-01 : f32
    %194 = vector.broadcast %cst_155 : f32 to vector<8x128xf32>
    %195 = arith.addf %193, %194 : vector<8x128xf32>
    %c0_156 = arith.constant 0 : index
    %c1_157 = arith.constant 1 : index
    %c0_158 = arith.constant 0 : index
    %c0_159 = arith.constant 0 : index
    %196 = vector.load %arg7[%c0_156, %c1_157, %c0_158, %c0_159] : memref<2x8x8x128xf32, #tpu.memory_space<vmem>>, vector<1x1x8x128xf32>
    %197 = vector.shape_cast %196 : vector<1x1x8x128xf32> to vector<8x128xf32>
    %198 = arith.mulf %197, %159 : vector<8x128xf32>
    %199 = arith.addf %96, %198 : vector<8x128xf32>
    %c0_160 = arith.constant 0 : index
    %c3_161 = arith.constant 3 : index
    %c1_162 = arith.constant 1 : index
    %c0_163 = arith.constant 0 : index
    %c0_164 = arith.constant 0 : index
    %200 = vector.load %arg8[%c0_160, %c3_161, %c1_162, %c0_163, %c0_164] : memref<2x4x8x8x128xf32, #tpu.memory_space<vmem>>, vector<1x1x1x8x128xf32>
    %201 = vector.shape_cast %200 : vector<1x1x1x8x128xf32> to vector<8x128xf32>
    %202 = arith.addf %199, %201 : vector<8x128xf32>
    %203 = math.tanh %202 : vector<8x128xf32>
    %204 = arith.mulf %195, %159 : vector<8x128xf32>
    %205 = arith.mulf %171, %203 : vector<8x128xf32>
    %206 = arith.addf %204, %205 : vector<8x128xf32>
    %c0_165 = arith.constant 0 : index
    %c1_166 = arith.constant 1 : index
    %c0_167 = arith.constant 0 : index
    %c0_168 = arith.constant 0 : index
    %207 = vector.load %arg9[%c0_165, %c1_166, %c0_167, %c0_168] : memref<2x8x8x128xf32, #tpu.memory_space<vmem>>, vector<1x1x8x128xf32>
    %208 = vector.shape_cast %207 : vector<1x1x8x128xf32> to vector<8x128xf32>
    %209 = vector.shape_cast %206 : vector<8x128xf32> to vector<1x1x8x128xf32>
    tpu.vector_store %arg9[%c0_165, %c1_166, %c0_167, %c0_168], %209 {strides = array<i32>} : memref<2x8x8x128xf32, #tpu.memory_space<vmem>>, vector<1x1x8x128xf32>,
    %c0_169 = arith.constant 0 : index
    %c1_170 = arith.constant 1 : index
    %c0_171 = arith.constant 0 : index
    %c0_172 = arith.constant 0 : index
    %210 = vector.load %arg10[%c0_169, %c1_170, %c0_171, %c0_172] : memref<2x8x8x128xf32, #tpu.memory_space<vmem>>, vector<1x1x8x128xf32>
    %211 = vector.shape_cast %210 : vector<1x1x8x128xf32> to vector<8x128xf32>
    %212 = vector.shape_cast %183 : vector<8x128xf32> to vector<1x1x8x128xf32>
    tpu.vector_store %arg10[%c0_169, %c1_170, %c0_171, %c0_172], %212 {strides = array<i32>} : memref<2x8x8x128xf32, #tpu.memory_space<vmem>>, vector<1x1x8x128xf32>,
    %c0_173 = arith.constant 0 : index
    %c256_174 = arith.constant 256 : index
    %213 = vector.load %arg11[%c0_173, %c256_174] : memref<8x1024xf32, #tpu.memory_space<vmem>>, vector<8x128xf32>
    %214 = vector.extract_strided_slice %102 {offsets = [0, 256], sizes = [8, 128], strides = [1, 1]} : vector<8x1024xf32> to vector<8x128xf32>
    %215 = arith.addf %90, %214 : vector<8x128xf32>
    %c0_175 = arith.constant 0 : index
    %c0_176 = arith.constant 0 : index
    %c2_177 = arith.constant 2 : index
    %c0_178 = arith.constant 0 : index
    %c0_179 = arith.constant 0 : index
    %216 = vector.load %arg8[%c0_175, %c0_176, %c2_177, %c0_178, %c0_179] : memref<2x4x8x8x128xf32, #tpu.memory_space<vmem>>, vector<1x1x1x8x128xf32>
    %217 = vector.shape_cast %216 : vector<1x1x1x8x128xf32> to vector<8x128xf32>
    %218 = arith.addf %215, %217 : vector<8x128xf32>
    %cst_180 = arith.constant 5.000000e-01 : f32
    %219 = vector.broadcast %cst_180 : f32 to vector<8x128xf32>
    %220 = arith.mulf %219, %218 : vector<8x128xf32>
    %221 = math.tanh %220 : vector<8x128xf32>
    %cst_181 = arith.constant 5.000000e-01 : f32
    %222 = vector.broadcast %cst_181 : f32 to vector<8x128xf32>
    %223 = arith.mulf %222, %221 : vector<8x128xf32>
    %cst_182 = arith.constant 5.000000e-01 : f32
    %224 = vector.broadcast %cst_182 : f32 to vector<8x128xf32>
    %225 = arith.addf %223, %224 : vector<8x128xf32>
    %226 = vector.extract_strided_slice %103 {offsets = [0, 256], sizes = [8, 128], strides = [1, 1]} : vector<8x1024xf32> to vector<8x128xf32>
    %227 = arith.addf %92, %226 : vector<8x128xf32>
    %c0_183 = arith.constant 0 : index
    %c1_184 = arith.constant 1 : index
    %c2_185 = arith.constant 2 : index
    %c0_186 = arith.constant 0 : index
    %c0_187 = arith.constant 0 : index
    %228 = vector.load %arg8[%c0_183, %c1_184, %c2_185, %c0_186, %c0_187] : memref<2x4x8x8x128xf32, #tpu.memory_space<vmem>>, vector<1x1x1x8x128xf32>
    %229 = vector.shape_cast %228 : vector<1x1x1x8x128xf32> to vector<8x128xf32>
    %230 = arith.addf %227, %229 : vector<8x128xf32>
    %cst_188 = arith.constant 5.000000e-01 : f32
    %231 = vector.broadcast %cst_188 : f32 to vector<8x128xf32>
    %232 = arith.mulf %231, %230 : vector<8x128xf32>
    %233 = math.tanh %232 : vector<8x128xf32>
    %cst_189 = arith.constant 5.000000e-01 : f32
    %234 = vector.broadcast %cst_189 : f32 to vector<8x128xf32>
    %235 = arith.mulf %234, %233 : vector<8x128xf32>
    %cst_190 = arith.constant 5.000000e-01 : f32
    %236 = vector.broadcast %cst_190 : f32 to vector<8x128xf32>
    %237 = arith.addf %235, %236 : vector<8x128xf32>
    %238 = vector.extract_strided_slice %104 {offsets = [0, 256], sizes = [8, 128], strides = [1, 1]} : vector<8x1024xf32> to vector<8x128xf32>
    %239 = arith.addf %94, %238 : vector<8x128xf32>
    %c0_191 = arith.constant 0 : index
    %c2_192 = arith.constant 2 : index
    %c2_193 = arith.constant 2 : index
    %c0_194 = arith.constant 0 : index
    %c0_195 = arith.constant 0 : index
    %240 = vector.load %arg8[%c0_191, %c2_192, %c2_193, %c0_194, %c0_195] : memref<2x4x8x8x128xf32, #tpu.memory_space<vmem>>, vector<1x1x1x8x128xf32>
    %241 = vector.shape_cast %240 : vector<1x1x1x8x128xf32> to vector<8x128xf32>
    %242 = arith.addf %239, %241 : vector<8x128xf32>
    %cst_196 = arith.constant 5.000000e-01 : f32
    %243 = vector.broadcast %cst_196 : f32 to vector<8x128xf32>
    %244 = arith.mulf %243, %242 : vector<8x128xf32>
    %245 = math.tanh %244 : vector<8x128xf32>
    %cst_197 = arith.constant 5.000000e-01 : f32
    %246 = vector.broadcast %cst_197 : f32 to vector<8x128xf32>
    %247 = arith.mulf %246, %245 : vector<8x128xf32>
    %cst_198 = arith.constant 5.000000e-01 : f32
    %248 = vector.broadcast %cst_198 : f32 to vector<8x128xf32>
    %249 = arith.addf %247, %248 : vector<8x128xf32>
    %c0_199 = arith.constant 0 : index
    %c2_200 = arith.constant 2 : index
    %c0_201 = arith.constant 0 : index
    %c0_202 = arith.constant 0 : index
    %250 = vector.load %arg7[%c0_199, %c2_200, %c0_201, %c0_202] : memref<2x8x8x128xf32, #tpu.memory_space<vmem>>, vector<1x1x8x128xf32>
    %251 = vector.shape_cast %250 : vector<1x1x8x128xf32> to vector<8x128xf32>
    %252 = arith.mulf %251, %213 : vector<8x128xf32>
    %253 = arith.addf %96, %252 : vector<8x128xf32>
    %c0_203 = arith.constant 0 : index
    %c3_204 = arith.constant 3 : index
    %c2_205 = arith.constant 2 : index
    %c0_206 = arith.constant 0 : index
    %c0_207 = arith.constant 0 : index
    %254 = vector.load %arg8[%c0_203, %c3_204, %c2_205, %c0_206, %c0_207] : memref<2x4x8x8x128xf32, #tpu.memory_space<vmem>>, vector<1x1x1x8x128xf32>
    %255 = vector.shape_cast %254 : vector<1x1x1x8x128xf32> to vector<8x128xf32>
    %256 = arith.addf %253, %255 : vector<8x128xf32>
    %257 = math.tanh %256 : vector<8x128xf32>
    %258 = arith.mulf %249, %213 : vector<8x128xf32>
    %259 = arith.mulf %225, %257 : vector<8x128xf32>
    %260 = arith.addf %258, %259 : vector<8x128xf32>
    %c0_208 = arith.constant 0 : index
    %c2_209 = arith.constant 2 : index
    %c0_210 = arith.constant 0 : index
    %c0_211 = arith.constant 0 : index
    %261 = vector.load %arg9[%c0_208, %c2_209, %c0_210, %c0_211] : memref<2x8x8x128xf32, #tpu.memory_space<vmem>>, vector<1x1x8x128xf32>
    %262 = vector.shape_cast %261 : vector<1x1x8x128xf32> to vector<8x128xf32>
    %263 = vector.shape_cast %260 : vector<8x128xf32> to vector<1x1x8x128xf32>
    tpu.vector_store %arg9[%c0_208, %c2_209, %c0_210, %c0_211], %263 {strides = array<i32>} : memref<2x8x8x128xf32, #tpu.memory_space<vmem>>, vector<1x1x8x128xf32>,
    %c0_212 = arith.constant 0 : index
    %c2_213 = arith.constant 2 : index
    %c0_214 = arith.constant 0 : index
    %c0_215 = arith.constant 0 : index
    %264 = vector.load %arg10[%c0_212, %c2_213, %c0_214, %c0_215] : memref<2x8x8x128xf32, #tpu.memory_space<vmem>>, vector<1x1x8x128xf32>
    %265 = vector.shape_cast %264 : vector<1x1x8x128xf32> to vector<8x128xf32>
    %266 = vector.shape_cast %237 : vector<8x128xf32> to vector<1x1x8x128xf32>
    tpu.vector_store %arg10[%c0_212, %c2_213, %c0_214, %c0_215], %266 {strides = array<i32>} : memref<2x8x8x128xf32, #tpu.memory_space<vmem>>, vector<1x1x8x128xf32>,
    %c0_216 = arith.constant 0 : index
    %c384_217 = arith.constant 384 : index
    %267 = vector.load %arg11[%c0_216, %c384_217] : memref<8x1024xf32, #tpu.memory_space<vmem>>, vector<8x128xf32>
    %268 = vector.extract_strided_slice %102 {offsets = [0, 384], sizes = [8, 128], strides = [1, 1]} : vector<8x1024xf32> to vector<8x128xf32>
    %269 = arith.addf %90, %268 : vector<8x128xf32>
    %c0_218 = arith.constant 0 : index
    %c0_219 = arith.constant 0 : index
    %c3_220 = arith.constant 3 : index
    %c0_221 = arith.constant 0 : index
    %c0_222 = arith.constant 0 : index
    %270 = vector.load %arg8[%c0_218, %c0_219, %c3_220, %c0_221, %c0_222] : memref<2x4x8x8x128xf32, #tpu.memory_space<vmem>>, vector<1x1x1x8x128xf32>
    %271 = vector.shape_cast %270 : vector<1x1x1x8x128xf32> to vector<8x128xf32>
    %272 = arith.addf %269, %271 : vector<8x128xf32>
    %cst_223 = arith.constant 5.000000e-01 : f32
    %273 = vector.broadcast %cst_223 : f32 to vector<8x128xf32>
    %274 = arith.mulf %273, %272 : vector<8x128xf32>
    %275 = math.tanh %274 : vector<8x128xf32>
    %cst_224 = arith.constant 5.000000e-01 : f32
    %276 = vector.broadcast %cst_224 : f32 to vector<8x128xf32>
    %277 = arith.mulf %276, %275 : vector<8x128xf32>
    %cst_225 = arith.constant 5.000000e-01 : f32
    %278 = vector.broadcast %cst_225 : f32 to vector<8x128xf32>
    %279 = arith.addf %277, %278 : vector<8x128xf32>
    %280 = vector.extract_strided_slice %103 {offsets = [0, 384], sizes = [8, 128], strides = [1, 1]} : vector<8x1024xf32> to vector<8x128xf32>
    %281 = arith.addf %92, %280 : vector<8x128xf32>
    %c0_226 = arith.constant 0 : index
    %c1_227 = arith.constant 1 : index
    %c3_228 = arith.constant 3 : index
    %c0_229 = arith.constant 0 : index
    %c0_230 = arith.constant 0 : index
    %282 = vector.load %arg8[%c0_226, %c1_227, %c3_228, %c0_229, %c0_230] : memref<2x4x8x8x128xf32, #tpu.memory_space<vmem>>, vector<1x1x1x8x128xf32>
    %283 = vector.shape_cast %282 : vector<1x1x1x8x128xf32> to vector<8x128xf32>
    %284 = arith.addf %281, %283 : vector<8x128xf32>
    %cst_231 = arith.constant 5.000000e-01 : f32
    %285 = vector.broadcast %cst_231 : f32 to vector<8x128xf32>
    %286 = arith.mulf %285, %284 : vector<8x128xf32>
    %287 = math.tanh %286 : vector<8x128xf32>
    %cst_232 = arith.constant 5.000000e-01 : f32
    %288 = vector.broadcast %cst_232 : f32 to vector<8x128xf32>
    %289 = arith.mulf %288, %287 : vector<8x128xf32>
    %cst_233 = arith.constant 5.000000e-01 : f32
    %290 = vector.broadcast %cst_233 : f32 to vector<8x128xf32>
    %291 = arith.addf %289, %290 : vector<8x128xf32>
    %292 = vector.extract_strided_slice %104 {offsets = [0, 384], sizes = [8, 128], strides = [1, 1]} : vector<8x1024xf32> to vector<8x128xf32>
    %293 = arith.addf %94, %292 : vector<8x128xf32>
    %c0_234 = arith.constant 0 : index
    %c2_235 = arith.constant 2 : index
    %c3_236 = arith.constant 3 : index
    %c0_237 = arith.constant 0 : index
    %c0_238 = arith.constant 0 : index
    %294 = vector.load %arg8[%c0_234, %c2_235, %c3_236, %c0_237, %c0_238] : memref<2x4x8x8x128xf32, #tpu.memory_space<vmem>>, vector<1x1x1x8x128xf32>
    %295 = vector.shape_cast %294 : vector<1x1x1x8x128xf32> to vector<8x128xf32>
    %296 = arith.addf %293, %295 : vector<8x128xf32>
    %cst_239 = arith.constant 5.000000e-01 : f32
    %297 = vector.broadcast %cst_239 : f32 to vector<8x128xf32>
    %298 = arith.mulf %297, %296 : vector<8x128xf32>
    %299 = math.tanh %298 : vector<8x128xf32>
    %cst_240 = arith.constant 5.000000e-01 : f32
    %300 = vector.broadcast %cst_240 : f32 to vector<8x128xf32>
    %301 = arith.mulf %300, %299 : vector<8x128xf32>
    %cst_241 = arith.constant 5.000000e-01 : f32
    %302 = vector.broadcast %cst_241 : f32 to vector<8x128xf32>
    %303 = arith.addf %301, %302 : vector<8x128xf32>
    %c0_242 = arith.constant 0 : index
    %c3_243 = arith.constant 3 : index
    %c0_244 = arith.constant 0 : index
    %c0_245 = arith.constant 0 : index
    %304 = vector.load %arg7[%c0_242, %c3_243, %c0_244, %c0_245] : memref<2x8x8x128xf32, #tpu.memory_space<vmem>>, vector<1x1x8x128xf32>
    %305 = vector.shape_cast %304 : vector<1x1x8x128xf32> to vector<8x128xf32>
    %306 = arith.mulf %305, %267 : vector<8x128xf32>
    %307 = arith.addf %96, %306 : vector<8x128xf32>
    %c0_246 = arith.constant 0 : index
    %c3_247 = arith.constant 3 : index
    %c3_248 = arith.constant 3 : index
    %c0_249 = arith.constant 0 : index
    %c0_250 = arith.constant 0 : index
    %308 = vector.load %arg8[%c0_246, %c3_247, %c3_248, %c0_249, %c0_250] : memref<2x4x8x8x128xf32, #tpu.memory_space<vmem>>, vector<1x1x1x8x128xf32>
    %309 = vector.shape_cast %308 : vector<1x1x1x8x128xf32> to vector<8x128xf32>
    %310 = arith.addf %307, %309 : vector<8x128xf32>
    %311 = math.tanh %310 : vector<8x128xf32>
    %312 = arith.mulf %303, %267 : vector<8x128xf32>
    %313 = arith.mulf %279, %311 : vector<8x128xf32>
    %314 = arith.addf %312, %313 : vector<8x128xf32>
    %c0_251 = arith.constant 0 : index
    %c3_252 = arith.constant 3 : index
    %c0_253 = arith.constant 0 : index
    %c0_254 = arith.constant 0 : index
    %315 = vector.load %arg9[%c0_251, %c3_252, %c0_253, %c0_254] : memref<2x8x8x128xf32, #tpu.memory_space<vmem>>, vector<1x1x8x128xf32>
    %316 = vector.shape_cast %315 : vector<1x1x8x128xf32> to vector<8x128xf32>
    %317 = vector.shape_cast %314 : vector<8x128xf32> to vector<1x1x8x128xf32>
    tpu.vector_store %arg9[%c0_251, %c3_252, %c0_253, %c0_254], %317 {strides = array<i32>} : memref<2x8x8x128xf32, #tpu.memory_space<vmem>>, vector<1x1x8x128xf32>,
    %c0_255 = arith.constant 0 : index
    %c3_256 = arith.constant 3 : index
    %c0_257 = arith.constant 0 : index
    %c0_258 = arith.constant 0 : index
    %318 = vector.load %arg10[%c0_255, %c3_256, %c0_257, %c0_258] : memref<2x8x8x128xf32, #tpu.memory_space<vmem>>, vector<1x1x8x128xf32>
    %319 = vector.shape_cast %318 : vector<1x1x8x128xf32> to vector<8x128xf32>
    %320 = vector.shape_cast %291 : vector<8x128xf32> to vector<1x1x8x128xf32>
    tpu.vector_store %arg10[%c0_255, %c3_256, %c0_257, %c0_258], %320 {strides = array<i32>} : memref<2x8x8x128xf32, #tpu.memory_space<vmem>>, vector<1x1x8x128xf32>,
    %c0_259 = arith.constant 0 : index
    %c512_260 = arith.constant 512 : index
    %321 = vector.load %arg11[%c0_259, %c512_260] : memref<8x1024xf32, #tpu.memory_space<vmem>>, vector<8x128xf32>
    %322 = vector.extract_strided_slice %102 {offsets = [0, 512], sizes = [8, 128], strides = [1, 1]} : vector<8x1024xf32> to vector<8x128xf32>
    %323 = arith.addf %90, %322 : vector<8x128xf32>
    %c0_261 = arith.constant 0 : index
    %c0_262 = arith.constant 0 : index
    %c4_263 = arith.constant 4 : index
    %c0_264 = arith.constant 0 : index
    %c0_265 = arith.constant 0 : index
    %324 = vector.load %arg8[%c0_261, %c0_262, %c4_263, %c0_264, %c0_265] : memref<2x4x8x8x128xf32, #tpu.memory_space<vmem>>, vector<1x1x1x8x128xf32>
    %325 = vector.shape_cast %324 : vector<1x1x1x8x128xf32> to vector<8x128xf32>
    %326 = arith.addf %323, %325 : vector<8x128xf32>
    %cst_266 = arith.constant 5.000000e-01 : f32
    %327 = vector.broadcast %cst_266 : f32 to vector<8x128xf32>
    %328 = arith.mulf %327, %326 : vector<8x128xf32>
    %329 = math.tanh %328 : vector<8x128xf32>
    %cst_267 = arith.constant 5.000000e-01 : f32
    %330 = vector.broadcast %cst_267 : f32 to vector<8x128xf32>
    %331 = arith.mulf %330, %329 : vector<8x128xf32>
    %cst_268 = arith.constant 5.000000e-01 : f32
    %332 = vector.broadcast %cst_268 : f32 to vector<8x128xf32>
    %333 = arith.addf %331, %332 : vector<8x128xf32>
    %334 = vector.extract_strided_slice %103 {offsets = [0, 512], sizes = [8, 128], strides = [1, 1]} : vector<8x1024xf32> to vector<8x128xf32>
    %335 = arith.addf %92, %334 : vector<8x128xf32>
    %c0_269 = arith.constant 0 : index
    %c1_270 = arith.constant 1 : index
    %c4_271 = arith.constant 4 : index
    %c0_272 = arith.constant 0 : index
    %c0_273 = arith.constant 0 : index
    %336 = vector.load %arg8[%c0_269, %c1_270, %c4_271, %c0_272, %c0_273] : memref<2x4x8x8x128xf32, #tpu.memory_space<vmem>>, vector<1x1x1x8x128xf32>
    %337 = vector.shape_cast %336 : vector<1x1x1x8x128xf32> to vector<8x128xf32>
    %338 = arith.addf %335, %337 : vector<8x128xf32>
    %cst_274 = arith.constant 5.000000e-01 : f32
    %339 = vector.broadcast %cst_274 : f32 to vector<8x128xf32>
    %340 = arith.mulf %339, %338 : vector<8x128xf32>
    %341 = math.tanh %340 : vector<8x128xf32>
    %cst_275 = arith.constant 5.000000e-01 : f32
    %342 = vector.broadcast %cst_275 : f32 to vector<8x128xf32>
    %343 = arith.mulf %342, %341 : vector<8x128xf32>
    %cst_276 = arith.constant 5.000000e-01 : f32
    %344 = vector.broadcast %cst_276 : f32 to vector<8x128xf32>
    %345 = arith.addf %343, %344 : vector<8x128xf32>
    %346 = vector.extract_strided_slice %104 {offsets = [0, 512], sizes = [8, 128], strides = [1, 1]} : vector<8x1024xf32> to vector<8x128xf32>
    %347 = arith.addf %94, %346 : vector<8x128xf32>
    %c0_277 = arith.constant 0 : index
    %c2_278 = arith.constant 2 : index
    %c4_279 = arith.constant 4 : index
    %c0_280 = arith.constant 0 : index
    %c0_281 = arith.constant 0 : index
    %348 = vector.load %arg8[%c0_277, %c2_278, %c4_279, %c0_280, %c0_281] : memref<2x4x8x8x128xf32, #tpu.memory_space<vmem>>, vector<1x1x1x8x128xf32>
    %349 = vector.shape_cast %348 : vector<1x1x1x8x128xf32> to vector<8x128xf32>
    %350 = arith.addf %347, %349 : vector<8x128xf32>
    %cst_282 = arith.constant 5.000000e-01 : f32
    %351 = vector.broadcast %cst_282 : f32 to vector<8x128xf32>
    %352 = arith.mulf %351, %350 : vector<8x128xf32>
    %353 = math.tanh %352 : vector<8x128xf32>
    %cst_283 = arith.constant 5.000000e-01 : f32
    %354 = vector.broadcast %cst_283 : f32 to vector<8x128xf32>
    %355 = arith.mulf %354, %353 : vector<8x128xf32>
    %cst_284 = arith.constant 5.000000e-01 : f32
    %356 = vector.broadcast %cst_284 : f32 to vector<8x128xf32>
    %357 = arith.addf %355, %356 : vector<8x128xf32>
    %c0_285 = arith.constant 0 : index
    %c4_286 = arith.constant 4 : index
    %c0_287 = arith.constant 0 : index
    %c0_288 = arith.constant 0 : index
    %358 = vector.load %arg7[%c0_285, %c4_286, %c0_287, %c0_288] : memref<2x8x8x128xf32, #tpu.memory_space<vmem>>, vector<1x1x8x128xf32>
    %359 = vector.shape_cast %358 : vector<1x1x8x128xf32> to vector<8x128xf32>
    %360 = arith.mulf %359, %321 : vector<8x128xf32>
    %361 = arith.addf %96, %360 : vector<8x128xf32>
    %c0_289 = arith.constant 0 : index
    %c3_290 = arith.constant 3 : index
    %c4_291 = arith.constant 4 : index
    %c0_292 = arith.constant 0 : index
    %c0_293 = arith.constant 0 : index
    %362 = vector.load %arg8[%c0_289, %c3_290, %c4_291, %c0_292, %c0_293] : memref<2x4x8x8x128xf32, #tpu.memory_space<vmem>>, vector<1x1x1x8x128xf32>
    %363 = vector.shape_cast %362 : vector<1x1x1x8x128xf32> to vector<8x128xf32>
    %364 = arith.addf %361, %363 : vector<8x128xf32>
    %365 = math.tanh %364 : vector<8x128xf32>
    %366 = arith.mulf %357, %321 : vector<8x128xf32>
    %367 = arith.mulf %333, %365 : vector<8x128xf32>
    %368 = arith.addf %366, %367 : vector<8x128xf32>
    %c0_294 = arith.constant 0 : index
    %c4_295 = arith.constant 4 : index
    %c0_296 = arith.constant 0 : index
    %c0_297 = arith.constant 0 : index
    %369 = vector.load %arg9[%c0_294, %c4_295, %c0_296, %c0_297] : memref<2x8x8x128xf32, #tpu.memory_space<vmem>>, vector<1x1x8x128xf32>
    %370 = vector.shape_cast %369 : vector<1x1x8x128xf32> to vector<8x128xf32>
    %371 = vector.shape_cast %368 : vector<8x128xf32> to vector<1x1x8x128xf32>
    tpu.vector_store %arg9[%c0_294, %c4_295, %c0_296, %c0_297], %371 {strides = array<i32>} : memref<2x8x8x128xf32, #tpu.memory_space<vmem>>, vector<1x1x8x128xf32>,
    %c0_298 = arith.constant 0 : index
    %c4_299 = arith.constant 4 : index
    %c0_300 = arith.constant 0 : index
    %c0_301 = arith.constant 0 : index
    %372 = vector.load %arg10[%c0_298, %c4_299, %c0_300, %c0_301] : memref<2x8x8x128xf32, #tpu.memory_space<vmem>>, vector<1x1x8x128xf32>
    %373 = vector.shape_cast %372 : vector<1x1x8x128xf32> to vector<8x128xf32>
    %374 = vector.shape_cast %345 : vector<8x128xf32> to vector<1x1x8x128xf32>
    tpu.vector_store %arg10[%c0_298, %c4_299, %c0_300, %c0_301], %374 {strides = array<i32>} : memref<2x8x8x128xf32, #tpu.memory_space<vmem>>, vector<1x1x8x128xf32>,
    %c0_302 = arith.constant 0 : index
    %c640_303 = arith.constant 640 : index
    %375 = vector.load %arg11[%c0_302, %c640_303] : memref<8x1024xf32, #tpu.memory_space<vmem>>, vector<8x128xf32>
    %376 = vector.extract_strided_slice %102 {offsets = [0, 640], sizes = [8, 128], strides = [1, 1]} : vector<8x1024xf32> to vector<8x128xf32>
    %377 = arith.addf %90, %376 : vector<8x128xf32>
    %c0_304 = arith.constant 0 : index
    %c0_305 = arith.constant 0 : index
    %c5_306 = arith.constant 5 : index
    %c0_307 = arith.constant 0 : index
    %c0_308 = arith.constant 0 : index
    %378 = vector.load %arg8[%c0_304, %c0_305, %c5_306, %c0_307, %c0_308] : memref<2x4x8x8x128xf32, #tpu.memory_space<vmem>>, vector<1x1x1x8x128xf32>
    %379 = vector.shape_cast %378 : vector<1x1x1x8x128xf32> to vector<8x128xf32>
    %380 = arith.addf %377, %379 : vector<8x128xf32>
    %cst_309 = arith.constant 5.000000e-01 : f32
    %381 = vector.broadcast %cst_309 : f32 to vector<8x128xf32>
    %382 = arith.mulf %381, %380 : vector<8x128xf32>
    %383 = math.tanh %382 : vector<8x128xf32>
    %cst_310 = arith.constant 5.000000e-01 : f32
    %384 = vector.broadcast %cst_310 : f32 to vector<8x128xf32>
    %385 = arith.mulf %384, %383 : vector<8x128xf32>
    %cst_311 = arith.constant 5.000000e-01 : f32
    %386 = vector.broadcast %cst_311 : f32 to vector<8x128xf32>
    %387 = arith.addf %385, %386 : vector<8x128xf32>
    %388 = vector.extract_strided_slice %103 {offsets = [0, 640], sizes = [8, 128], strides = [1, 1]} : vector<8x1024xf32> to vector<8x128xf32>
    %389 = arith.addf %92, %388 : vector<8x128xf32>
    %c0_312 = arith.constant 0 : index
    %c1_313 = arith.constant 1 : index
    %c5_314 = arith.constant 5 : index
    %c0_315 = arith.constant 0 : index
    %c0_316 = arith.constant 0 : index
    %390 = vector.load %arg8[%c0_312, %c1_313, %c5_314, %c0_315, %c0_316] : memref<2x4x8x8x128xf32, #tpu.memory_space<vmem>>, vector<1x1x1x8x128xf32>
    %391 = vector.shape_cast %390 : vector<1x1x1x8x128xf32> to vector<8x128xf32>
    %392 = arith.addf %389, %391 : vector<8x128xf32>
    %cst_317 = arith.constant 5.000000e-01 : f32
    %393 = vector.broadcast %cst_317 : f32 to vector<8x128xf32>
    %394 = arith.mulf %393, %392 : vector<8x128xf32>
    %395 = math.tanh %394 : vector<8x128xf32>
    %cst_318 = arith.constant 5.000000e-01 : f32
    %396 = vector.broadcast %cst_318 : f32 to vector<8x128xf32>
    %397 = arith.mulf %396, %395 : vector<8x128xf32>
    %cst_319 = arith.constant 5.000000e-01 : f32
    %398 = vector.broadcast %cst_319 : f32 to vector<8x128xf32>
    %399 = arith.addf %397, %398 : vector<8x128xf32>
    %400 = vector.extract_strided_slice %104 {offsets = [0, 640], sizes = [8, 128], strides = [1, 1]} : vector<8x1024xf32> to vector<8x128xf32>
    %401 = arith.addf %94, %400 : vector<8x128xf32>
    %c0_320 = arith.constant 0 : index
    %c2_321 = arith.constant 2 : index
    %c5_322 = arith.constant 5 : index
    %c0_323 = arith.constant 0 : index
    %c0_324 = arith.constant 0 : index
    %402 = vector.load %arg8[%c0_320, %c2_321, %c5_322, %c0_323, %c0_324] : memref<2x4x8x8x128xf32, #tpu.memory_space<vmem>>, vector<1x1x1x8x128xf32>
    %403 = vector.shape_cast %402 : vector<1x1x1x8x128xf32> to vector<8x128xf32>
    %404 = arith.addf %401, %403 : vector<8x128xf32>
    %cst_325 = arith.constant 5.000000e-01 : f32
    %405 = vector.broadcast %cst_325 : f32 to vector<8x128xf32>
    %406 = arith.mulf %405, %404 : vector<8x128xf32>
    %407 = math.tanh %406 : vector<8x128xf32>
    %cst_326 = arith.constant 5.000000e-01 : f32
    %408 = vector.broadcast %cst_326 : f32 to vector<8x128xf32>
    %409 = arith.mulf %408, %407 : vector<8x128xf32>
    %cst_327 = arith.constant 5.000000e-01 : f32
    %410 = vector.broadcast %cst_327 : f32 to vector<8x128xf32>
    %411 = arith.addf %409, %410 : vector<8x128xf32>
    %c0_328 = arith.constant 0 : index
    %c5_329 = arith.constant 5 : index
    %c0_330 = arith.constant 0 : index
    %c0_331 = arith.constant 0 : index
    %412 = vector.load %arg7[%c0_328, %c5_329, %c0_330, %c0_331] : memref<2x8x8x128xf32, #tpu.memory_space<vmem>>, vector<1x1x8x128xf32>
    %413 = vector.shape_cast %412 : vector<1x1x8x128xf32> to vector<8x128xf32>
    %414 = arith.mulf %413, %375 : vector<8x128xf32>
    %415 = arith.addf %96, %414 : vector<8x128xf32>
    %c0_332 = arith.constant 0 : index
    %c3_333 = arith.constant 3 : index
    %c5_334 = arith.constant 5 : index
    %c0_335 = arith.constant 0 : index
    %c0_336 = arith.constant 0 : index
    %416 = vector.load %arg8[%c0_332, %c3_333, %c5_334, %c0_335, %c0_336] : memref<2x4x8x8x128xf32, #tpu.memory_space<vmem>>, vector<1x1x1x8x128xf32>
    %417 = vector.shape_cast %416 : vector<1x1x1x8x128xf32> to vector<8x128xf32>
    %418 = arith.addf %415, %417 : vector<8x128xf32>
    %419 = math.tanh %418 : vector<8x128xf32>
    %420 = arith.mulf %411, %375 : vector<8x128xf32>
    %421 = arith.mulf %387, %419 : vector<8x128xf32>
    %422 = arith.addf %420, %421 : vector<8x128xf32>
    %c0_337 = arith.constant 0 : index
    %c5_338 = arith.constant 5 : index
    %c0_339 = arith.constant 0 : index
    %c0_340 = arith.constant 0 : index
    %423 = vector.load %arg9[%c0_337, %c5_338, %c0_339, %c0_340] : memref<2x8x8x128xf32, #tpu.memory_space<vmem>>, vector<1x1x8x128xf32>
    %424 = vector.shape_cast %423 : vector<1x1x8x128xf32> to vector<8x128xf32>
    %425 = vector.shape_cast %422 : vector<8x128xf32> to vector<1x1x8x128xf32>
    tpu.vector_store %arg9[%c0_337, %c5_338, %c0_339, %c0_340], %425 {strides = array<i32>} : memref<2x8x8x128xf32, #tpu.memory_space<vmem>>, vector<1x1x8x128xf32>,
    %c0_341 = arith.constant 0 : index
    %c5_342 = arith.constant 5 : index
    %c0_343 = arith.constant 0 : index
    %c0_344 = arith.constant 0 : index
    %426 = vector.load %arg10[%c0_341, %c5_342, %c0_343, %c0_344] : memref<2x8x8x128xf32, #tpu.memory_space<vmem>>, vector<1x1x8x128xf32>
    %427 = vector.shape_cast %426 : vector<1x1x8x128xf32> to vector<8x128xf32>
    %428 = vector.shape_cast %399 : vector<8x128xf32> to vector<1x1x8x128xf32>
    tpu.vector_store %arg10[%c0_341, %c5_342, %c0_343, %c0_344], %428 {strides = array<i32>} : memref<2x8x8x128xf32, #tpu.memory_space<vmem>>, vector<1x1x8x128xf32>,
    %c0_345 = arith.constant 0 : index
    %c768_346 = arith.constant 768 : index
    %429 = vector.load %arg11[%c0_345, %c768_346] : memref<8x1024xf32, #tpu.memory_space<vmem>>, vector<8x128xf32>
    %430 = vector.extract_strided_slice %102 {offsets = [0, 768], sizes = [8, 128], strides = [1, 1]} : vector<8x1024xf32> to vector<8x128xf32>
    %431 = arith.addf %90, %430 : vector<8x128xf32>
    %c0_347 = arith.constant 0 : index
    %c0_348 = arith.constant 0 : index
    %c6_349 = arith.constant 6 : index
    %c0_350 = arith.constant 0 : index
    %c0_351 = arith.constant 0 : index
    %432 = vector.load %arg8[%c0_347, %c0_348, %c6_349, %c0_350, %c0_351] : memref<2x4x8x8x128xf32, #tpu.memory_space<vmem>>, vector<1x1x1x8x128xf32>
    %433 = vector.shape_cast %432 : vector<1x1x1x8x128xf32> to vector<8x128xf32>
    %434 = arith.addf %431, %433 : vector<8x128xf32>
    %cst_352 = arith.constant 5.000000e-01 : f32
    %435 = vector.broadcast %cst_352 : f32 to vector<8x128xf32>
    %436 = arith.mulf %435, %434 : vector<8x128xf32>
    %437 = math.tanh %436 : vector<8x128xf32>
    %cst_353 = arith.constant 5.000000e-01 : f32
    %438 = vector.broadcast %cst_353 : f32 to vector<8x128xf32>
    %439 = arith.mulf %438, %437 : vector<8x128xf32>
    %cst_354 = arith.constant 5.000000e-01 : f32
    %440 = vector.broadcast %cst_354 : f32 to vector<8x128xf32>
    %441 = arith.addf %439, %440 : vector<8x128xf32>
    %442 = vector.extract_strided_slice %103 {offsets = [0, 768], sizes = [8, 128], strides = [1, 1]} : vector<8x1024xf32> to vector<8x128xf32>
    %443 = arith.addf %92, %442 : vector<8x128xf32>
    %c0_355 = arith.constant 0 : index
    %c1_356 = arith.constant 1 : index
    %c6_357 = arith.constant 6 : index
    %c0_358 = arith.constant 0 : index
    %c0_359 = arith.constant 0 : index
    %444 = vector.load %arg8[%c0_355, %c1_356, %c6_357, %c0_358, %c0_359] : memref<2x4x8x8x128xf32, #tpu.memory_space<vmem>>, vector<1x1x1x8x128xf32>
    %445 = vector.shape_cast %444 : vector<1x1x1x8x128xf32> to vector<8x128xf32>
    %446 = arith.addf %443, %445 : vector<8x128xf32>
    %cst_360 = arith.constant 5.000000e-01 : f32
    %447 = vector.broadcast %cst_360 : f32 to vector<8x128xf32>
    %448 = arith.mulf %447, %446 : vector<8x128xf32>
    %449 = math.tanh %448 : vector<8x128xf32>
    %cst_361 = arith.constant 5.000000e-01 : f32
    %450 = vector.broadcast %cst_361 : f32 to vector<8x128xf32>
    %451 = arith.mulf %450, %449 : vector<8x128xf32>
    %cst_362 = arith.constant 5.000000e-01 : f32
    %452 = vector.broadcast %cst_362 : f32 to vector<8x128xf32>
    %453 = arith.addf %451, %452 : vector<8x128xf32>
    %454 = vector.extract_strided_slice %104 {offsets = [0, 768], sizes = [8, 128], strides = [1, 1]} : vector<8x1024xf32> to vector<8x128xf32>
    %455 = arith.addf %94, %454 : vector<8x128xf32>
    %c0_363 = arith.constant 0 : index
    %c2_364 = arith.constant 2 : index
    %c6_365 = arith.constant 6 : index
    %c0_366 = arith.constant 0 : index
    %c0_367 = arith.constant 0 : index
    %456 = vector.load %arg8[%c0_363, %c2_364, %c6_365, %c0_366, %c0_367] : memref<2x4x8x8x128xf32, #tpu.memory_space<vmem>>, vector<1x1x1x8x128xf32>
    %457 = vector.shape_cast %456 : vector<1x1x1x8x128xf32> to vector<8x128xf32>
    %458 = arith.addf %455, %457 : vector<8x128xf32>
    %cst_368 = arith.constant 5.000000e-01 : f32
    %459 = vector.broadcast %cst_368 : f32 to vector<8x128xf32>
    %460 = arith.mulf %459, %458 : vector<8x128xf32>
    %461 = math.tanh %460 : vector<8x128xf32>
    %cst_369 = arith.constant 5.000000e-01 : f32
    %462 = vector.broadcast %cst_369 : f32 to vector<8x128xf32>
    %463 = arith.mulf %462, %461 : vector<8x128xf32>
    %cst_370 = arith.constant 5.000000e-01 : f32
    %464 = vector.broadcast %cst_370 : f32 to vector<8x128xf32>
    %465 = arith.addf %463, %464 : vector<8x128xf32>
    %c0_371 = arith.constant 0 : index
    %c6_372 = arith.constant 6 : index
    %c0_373 = arith.constant 0 : index
    %c0_374 = arith.constant 0 : index
    %466 = vector.load %arg7[%c0_371, %c6_372, %c0_373, %c0_374] : memref<2x8x8x128xf32, #tpu.memory_space<vmem>>, vector<1x1x8x128xf32>
    %467 = vector.shape_cast %466 : vector<1x1x8x128xf32> to vector<8x128xf32>
    %468 = arith.mulf %467, %429 : vector<8x128xf32>
    %469 = arith.addf %96, %468 : vector<8x128xf32>
    %c0_375 = arith.constant 0 : index
    %c3_376 = arith.constant 3 : index
    %c6_377 = arith.constant 6 : index
    %c0_378 = arith.constant 0 : index
    %c0_379 = arith.constant 0 : index
    %470 = vector.load %arg8[%c0_375, %c3_376, %c6_377, %c0_378, %c0_379] : memref<2x4x8x8x128xf32, #tpu.memory_space<vmem>>, vector<1x1x1x8x128xf32>
    %471 = vector.shape_cast %470 : vector<1x1x1x8x128xf32> to vector<8x128xf32>
    %472 = arith.addf %469, %471 : vector<8x128xf32>
    %473 = math.tanh %472 : vector<8x128xf32>
    %474 = arith.mulf %465, %429 : vector<8x128xf32>
    %475 = arith.mulf %441, %473 : vector<8x128xf32>
    %476 = arith.addf %474, %475 : vector<8x128xf32>
    %c0_380 = arith.constant 0 : index
    %c6_381 = arith.constant 6 : index
    %c0_382 = arith.constant 0 : index
    %c0_383 = arith.constant 0 : index
    %477 = vector.load %arg9[%c0_380, %c6_381, %c0_382, %c0_383] : memref<2x8x8x128xf32, #tpu.memory_space<vmem>>, vector<1x1x8x128xf32>
    %478 = vector.shape_cast %477 : vector<1x1x8x128xf32> to vector<8x128xf32>
    %479 = vector.shape_cast %476 : vector<8x128xf32> to vector<1x1x8x128xf32>
    tpu.vector_store %arg9[%c0_380, %c6_381, %c0_382, %c0_383], %479 {strides = array<i32>} : memref<2x8x8x128xf32, #tpu.memory_space<vmem>>, vector<1x1x8x128xf32>,
    %c0_384 = arith.constant 0 : index
    %c6_385 = arith.constant 6 : index
    %c0_386 = arith.constant 0 : index
    %c0_387 = arith.constant 0 : index
    %480 = vector.load %arg10[%c0_384, %c6_385, %c0_386, %c0_387] : memref<2x8x8x128xf32, #tpu.memory_space<vmem>>, vector<1x1x8x128xf32>
    %481 = vector.shape_cast %480 : vector<1x1x8x128xf32> to vector<8x128xf32>
    %482 = vector.shape_cast %453 : vector<8x128xf32> to vector<1x1x8x128xf32>
    tpu.vector_store %arg10[%c0_384, %c6_385, %c0_386, %c0_387], %482 {strides = array<i32>} : memref<2x8x8x128xf32, #tpu.memory_space<vmem>>, vector<1x1x8x128xf32>,
    %c0_388 = arith.constant 0 : index
    %c896_389 = arith.constant 896 : index
    %483 = vector.load %arg11[%c0_388, %c896_389] : memref<8x1024xf32, #tpu.memory_space<vmem>>, vector<8x128xf32>
    %484 = vector.extract_strided_slice %102 {offsets = [0, 896], sizes = [8, 128], strides = [1, 1]} : vector<8x1024xf32> to vector<8x128xf32>
    %485 = arith.addf %90, %484 : vector<8x128xf32>
    %c0_390 = arith.constant 0 : index
    %c0_391 = arith.constant 0 : index
    %c7_392 = arith.constant 7 : index
    %c0_393 = arith.constant 0 : index
    %c0_394 = arith.constant 0 : index
    %486 = vector.load %arg8[%c0_390, %c0_391, %c7_392, %c0_393, %c0_394] : memref<2x4x8x8x128xf32, #tpu.memory_space<vmem>>, vector<1x1x1x8x128xf32>
    %487 = vector.shape_cast %486 : vector<1x1x1x8x128xf32> to vector<8x128xf32>
    %488 = arith.addf %485, %487 : vector<8x128xf32>
    %cst_395 = arith.constant 5.000000e-01 : f32
    %489 = vector.broadcast %cst_395 : f32 to vector<8x128xf32>
    %490 = arith.mulf %489, %488 : vector<8x128xf32>
    %491 = math.tanh %490 : vector<8x128xf32>
    %cst_396 = arith.constant 5.000000e-01 : f32
    %492 = vector.broadcast %cst_396 : f32 to vector<8x128xf32>
    %493 = arith.mulf %492, %491 : vector<8x128xf32>
    %cst_397 = arith.constant 5.000000e-01 : f32
    %494 = vector.broadcast %cst_397 : f32 to vector<8x128xf32>
    %495 = arith.addf %493, %494 : vector<8x128xf32>
    %496 = vector.extract_strided_slice %103 {offsets = [0, 896], sizes = [8, 128], strides = [1, 1]} : vector<8x1024xf32> to vector<8x128xf32>
    %497 = arith.addf %92, %496 : vector<8x128xf32>
    %c0_398 = arith.constant 0 : index
    %c1_399 = arith.constant 1 : index
    %c7_400 = arith.constant 7 : index
    %c0_401 = arith.constant 0 : index
    %c0_402 = arith.constant 0 : index
    %498 = vector.load %arg8[%c0_398, %c1_399, %c7_400, %c0_401, %c0_402] : memref<2x4x8x8x128xf32, #tpu.memory_space<vmem>>, vector<1x1x1x8x128xf32>
    %499 = vector.shape_cast %498 : vector<1x1x1x8x128xf32> to vector<8x128xf32>
    %500 = arith.addf %497, %499 : vector<8x128xf32>
    %cst_403 = arith.constant 5.000000e-01 : f32
    %501 = vector.broadcast %cst_403 : f32 to vector<8x128xf32>
    %502 = arith.mulf %501, %500 : vector<8x128xf32>
    %503 = math.tanh %502 : vector<8x128xf32>
    %cst_404 = arith.constant 5.000000e-01 : f32
    %504 = vector.broadcast %cst_404 : f32 to vector<8x128xf32>
    %505 = arith.mulf %504, %503 : vector<8x128xf32>
    %cst_405 = arith.constant 5.000000e-01 : f32
    %506 = vector.broadcast %cst_405 : f32 to vector<8x128xf32>
    %507 = arith.addf %505, %506 : vector<8x128xf32>
    %508 = vector.extract_strided_slice %104 {offsets = [0, 896], sizes = [8, 128], strides = [1, 1]} : vector<8x1024xf32> to vector<8x128xf32>
    %509 = arith.addf %94, %508 : vector<8x128xf32>
    %c0_406 = arith.constant 0 : index
    %c2_407 = arith.constant 2 : index
    %c7_408 = arith.constant 7 : index
    %c0_409 = arith.constant 0 : index
    %c0_410 = arith.constant 0 : index
    %510 = vector.load %arg8[%c0_406, %c2_407, %c7_408, %c0_409, %c0_410] : memref<2x4x8x8x128xf32, #tpu.memory_space<vmem>>, vector<1x1x1x8x128xf32>
    %511 = vector.shape_cast %510 : vector<1x1x1x8x128xf32> to vector<8x128xf32>
    %512 = arith.addf %509, %511 : vector<8x128xf32>
    %cst_411 = arith.constant 5.000000e-01 : f32
    %513 = vector.broadcast %cst_411 : f32 to vector<8x128xf32>
    %514 = arith.mulf %513, %512 : vector<8x128xf32>
    %515 = math.tanh %514 : vector<8x128xf32>
    %cst_412 = arith.constant 5.000000e-01 : f32
    %516 = vector.broadcast %cst_412 : f32 to vector<8x128xf32>
    %517 = arith.mulf %516, %515 : vector<8x128xf32>
    %cst_413 = arith.constant 5.000000e-01 : f32
    %518 = vector.broadcast %cst_413 : f32 to vector<8x128xf32>
    %519 = arith.addf %517, %518 : vector<8x128xf32>
    %c0_414 = arith.constant 0 : index
    %c7_415 = arith.constant 7 : index
    %c0_416 = arith.constant 0 : index
    %c0_417 = arith.constant 0 : index
    %520 = vector.load %arg7[%c0_414, %c7_415, %c0_416, %c0_417] : memref<2x8x8x128xf32, #tpu.memory_space<vmem>>, vector<1x1x8x128xf32>
    %521 = vector.shape_cast %520 : vector<1x1x8x128xf32> to vector<8x128xf32>
    %522 = arith.mulf %521, %483 : vector<8x128xf32>
    %523 = arith.addf %96, %522 : vector<8x128xf32>
    %c0_418 = arith.constant 0 : index
    %c3_419 = arith.constant 3 : index
    %c7_420 = arith.constant 7 : index
    %c0_421 = arith.constant 0 : index
    %c0_422 = arith.constant 0 : index
    %524 = vector.load %arg8[%c0_418, %c3_419, %c7_420, %c0_421, %c0_422] : memref<2x4x8x8x128xf32, #tpu.memory_space<vmem>>, vector<1x1x1x8x128xf32>
    %525 = vector.shape_cast %524 : vector<1x1x1x8x128xf32> to vector<8x128xf32>
    %526 = arith.addf %523, %525 : vector<8x128xf32>
    %527 = math.tanh %526 : vector<8x128xf32>
    %528 = arith.mulf %519, %483 : vector<8x128xf32>
    %529 = arith.mulf %495, %527 : vector<8x128xf32>
    %530 = arith.addf %528, %529 : vector<8x128xf32>
    %c0_423 = arith.constant 0 : index
    %c7_424 = arith.constant 7 : index
    %c0_425 = arith.constant 0 : index
    %c0_426 = arith.constant 0 : index
    %531 = vector.load %arg9[%c0_423, %c7_424, %c0_425, %c0_426] : memref<2x8x8x128xf32, #tpu.memory_space<vmem>>, vector<1x1x8x128xf32>
    %532 = vector.shape_cast %531 : vector<1x1x8x128xf32> to vector<8x128xf32>
    %533 = vector.shape_cast %530 : vector<8x128xf32> to vector<1x1x8x128xf32>
    tpu.vector_store %arg9[%c0_423, %c7_424, %c0_425, %c0_426], %533 {strides = array<i32>} : memref<2x8x8x128xf32, #tpu.memory_space<vmem>>, vector<1x1x8x128xf32>,
    %c0_427 = arith.constant 0 : index
    %c7_428 = arith.constant 7 : index
    %c0_429 = arith.constant 0 : index
    %c0_430 = arith.constant 0 : index
    %534 = vector.load %arg10[%c0_427, %c7_428, %c0_429, %c0_430] : memref<2x8x8x128xf32, #tpu.memory_space<vmem>>, vector<1x1x8x128xf32>
    %535 = vector.shape_cast %534 : vector<1x1x8x128xf32> to vector<8x128xf32>
    %536 = vector.shape_cast %507 : vector<8x128xf32> to vector<1x1x8x128xf32>
    tpu.vector_store %arg10[%c0_427, %c7_428, %c0_429, %c0_430], %536 {strides = array<i32>} : memref<2x8x8x128xf32, #tpu.memory_space<vmem>>, vector<1x1x8x128xf32>,
    %c2_i32_431 = arith.constant 2 : i32
    %537 = arith.muli %arg0, %c2_i32_431 : i32
    %c1_i32 = arith.constant 1 : i32
    %538 = arith.addi %537, %c1_i32 : i32
    %c1_432 = arith.constant 1 : index
    %c0_433 = arith.constant 0 : index
    %c0_434 = arith.constant 0 : index
    %c0_435 = arith.constant 0 : index
    %539 = vector.load %arg4[%c1_432, %c0_433, %c0_434, %c0_435] : memref<2x8x8x128xf32, #tpu.memory_space<vmem>>, vector<1x1x8x128xf32>
    %540 = vector.shape_cast %539 : vector<1x1x8x128xf32> to vector<8x128xf32>
    %541 = math.tanh %540 : vector<8x128xf32>
    %c0_436 = arith.constant 0 : index
    %c0_437 = arith.constant 0 : index
    %542 = vector.load %arg11[%c0_436, %c0_437] : memref<8x1024xf32, #tpu.memory_space<vmem>>, vector<8x128xf32>
    tpu.vector_store %arg11[%c0_436, %c0_437], %541 {strides = array<i32>} : memref<8x1024xf32, #tpu.memory_space<vmem>>, vector<8x128xf32>,
    %c1_438 = arith.constant 1 : index
    %c1_439 = arith.constant 1 : index
    %c0_440 = arith.constant 0 : index
    %c0_441 = arith.constant 0 : index
    %543 = vector.load %arg4[%c1_438, %c1_439, %c0_440, %c0_441] : memref<2x8x8x128xf32, #tpu.memory_space<vmem>>, vector<1x1x8x128xf32>
    %544 = vector.shape_cast %543 : vector<1x1x8x128xf32> to vector<8x128xf32>
    %545 = math.tanh %544 : vector<8x128xf32>
    %c0_442 = arith.constant 0 : index
    %c128_443 = arith.constant 128 : index
    %546 = vector.load %arg11[%c0_442, %c128_443] : memref<8x1024xf32, #tpu.memory_space<vmem>>, vector<8x128xf32>
    tpu.vector_store %arg11[%c0_442, %c128_443], %545 {strides = array<i32>} : memref<8x1024xf32, #tpu.memory_space<vmem>>, vector<8x128xf32>,
    %c1_444 = arith.constant 1 : index
    %c2_445 = arith.constant 2 : index
    %c0_446 = arith.constant 0 : index
    %c0_447 = arith.constant 0 : index
    %547 = vector.load %arg4[%c1_444, %c2_445, %c0_446, %c0_447] : memref<2x8x8x128xf32, #tpu.memory_space<vmem>>, vector<1x1x8x128xf32>
    %548 = vector.shape_cast %547 : vector<1x1x8x128xf32> to vector<8x128xf32>
    %549 = math.tanh %548 : vector<8x128xf32>
    %c0_448 = arith.constant 0 : index
    %c256_449 = arith.constant 256 : index
    %550 = vector.load %arg11[%c0_448, %c256_449] : memref<8x1024xf32, #tpu.memory_space<vmem>>, vector<8x128xf32>
    tpu.vector_store %arg11[%c0_448, %c256_449], %549 {strides = array<i32>} : memref<8x1024xf32, #tpu.memory_space<vmem>>, vector<8x128xf32>,
    %c1_450 = arith.constant 1 : index
    %c3_451 = arith.constant 3 : index
    %c0_452 = arith.constant 0 : index
    %c0_453 = arith.constant 0 : index
    %551 = vector.load %arg4[%c1_450, %c3_451, %c0_452, %c0_453] : memref<2x8x8x128xf32, #tpu.memory_space<vmem>>, vector<1x1x8x128xf32>
    %552 = vector.shape_cast %551 : vector<1x1x8x128xf32> to vector<8x128xf32>
    %553 = math.tanh %552 : vector<8x128xf32>
    %c0_454 = arith.constant 0 : index
    %c384_455 = arith.constant 384 : index
    %554 = vector.load %arg11[%c0_454, %c384_455] : memref<8x1024xf32, #tpu.memory_space<vmem>>, vector<8x128xf32>
    tpu.vector_store %arg11[%c0_454, %c384_455], %553 {strides = array<i32>} : memref<8x1024xf32, #tpu.memory_space<vmem>>, vector<8x128xf32>,
    %c1_456 = arith.constant 1 : index
    %c4_457 = arith.constant 4 : index
    %c0_458 = arith.constant 0 : index
    %c0_459 = arith.constant 0 : index
    %555 = vector.load %arg4[%c1_456, %c4_457, %c0_458, %c0_459] : memref<2x8x8x128xf32, #tpu.memory_space<vmem>>, vector<1x1x8x128xf32>
    %556 = vector.shape_cast %555 : vector<1x1x8x128xf32> to vector<8x128xf32>
    %557 = math.tanh %556 : vector<8x128xf32>
    %c0_460 = arith.constant 0 : index
    %c512_461 = arith.constant 512 : index
    %558 = vector.load %arg11[%c0_460, %c512_461] : memref<8x1024xf32, #tpu.memory_space<vmem>>, vector<8x128xf32>
    tpu.vector_store %arg11[%c0_460, %c512_461], %557 {strides = array<i32>} : memref<8x1024xf32, #tpu.memory_space<vmem>>, vector<8x128xf32>,
    %c1_462 = arith.constant 1 : index
    %c5_463 = arith.constant 5 : index
    %c0_464 = arith.constant 0 : index
    %c0_465 = arith.constant 0 : index
    %559 = vector.load %arg4[%c1_462, %c5_463, %c0_464, %c0_465] : memref<2x8x8x128xf32, #tpu.memory_space<vmem>>, vector<1x1x8x128xf32>
    %560 = vector.shape_cast %559 : vector<1x1x8x128xf32> to vector<8x128xf32>
    %561 = math.tanh %560 : vector<8x128xf32>
    %c0_466 = arith.constant 0 : index
    %c640_467 = arith.constant 640 : index
    %562 = vector.load %arg11[%c0_466, %c640_467] : memref<8x1024xf32, #tpu.memory_space<vmem>>, vector<8x128xf32>
    tpu.vector_store %arg11[%c0_466, %c640_467], %561 {strides = array<i32>} : memref<8x1024xf32, #tpu.memory_space<vmem>>, vector<8x128xf32>,
    %c1_468 = arith.constant 1 : index
    %c6_469 = arith.constant 6 : index
    %c0_470 = arith.constant 0 : index
    %c0_471 = arith.constant 0 : index
    %563 = vector.load %arg4[%c1_468, %c6_469, %c0_470, %c0_471] : memref<2x8x8x128xf32, #tpu.memory_space<vmem>>, vector<1x1x8x128xf32>
    %564 = vector.shape_cast %563 : vector<1x1x8x128xf32> to vector<8x128xf32>
    %565 = math.tanh %564 : vector<8x128xf32>
    %c0_472 = arith.constant 0 : index
    %c768_473 = arith.constant 768 : index
    %566 = vector.load %arg11[%c0_472, %c768_473] : memref<8x1024xf32, #tpu.memory_space<vmem>>, vector<8x128xf32>
    tpu.vector_store %arg11[%c0_472, %c768_473], %565 {strides = array<i32>} : memref<8x1024xf32, #tpu.memory_space<vmem>>, vector<8x128xf32>,
    %c1_474 = arith.constant 1 : index
    %c7_475 = arith.constant 7 : index
    %c0_476 = arith.constant 0 : index
    %c0_477 = arith.constant 0 : index
    %567 = vector.load %arg4[%c1_474, %c7_475, %c0_476, %c0_477] : memref<2x8x8x128xf32, #tpu.memory_space<vmem>>, vector<1x1x8x128xf32>
    %568 = vector.shape_cast %567 : vector<1x1x8x128xf32> to vector<8x128xf32>
    %569 = math.tanh %568 : vector<8x128xf32>
    %c0_478 = arith.constant 0 : index
    %c896_479 = arith.constant 896 : index
    %570 = vector.load %arg11[%c0_478, %c896_479] : memref<8x1024xf32, #tpu.memory_space<vmem>>, vector<8x128xf32>
    tpu.vector_store %arg11[%c0_478, %c896_479], %569 {strides = array<i32>} : memref<8x1024xf32, #tpu.memory_space<vmem>>, vector<8x128xf32>,
    %571 = arith.index_cast %538 : i32 to index
    %c0_480 = arith.constant 0 : index
    %572 = memref.load %arg3[%571, %c0_480] : memref<2x8xf32, #tpu.memory_space<smem>>
    %c1_481 = arith.constant 1 : index
    %c0_482 = arith.constant 0 : index
    %c0_483 = arith.constant 0 : index
    %c0_484 = arith.constant 0 : index
    %c0_485 = arith.constant 0 : index
    %573 = vector.load %arg5[%c1_481, %c0_482, %c0_483, %c0_484, %c0_485] : memref<2x4x8x8x128xf32, #tpu.memory_space<vmem>>, vector<1x4x1x8x128xf32>
    %574 = vector.shape_cast %573 : vector<1x4x1x8x128xf32> to vector<4x8x128xf32>
    %575 = vector.broadcast %572 : f32 to vector<4x8x128xf32>
    %576 = arith.mulf %575, %574 : vector<4x8x128xf32>
    %577 = arith.index_cast %538 : i32 to index
    %c1_486 = arith.constant 1 : index
    %578 = memref.load %arg3[%577, %c1_486] : memref<2x8xf32, #tpu.memory_space<smem>>
    %c1_487 = arith.constant 1 : index
    %c0_488 = arith.constant 0 : index
    %c1_489 = arith.constant 1 : index
    %c0_490 = arith.constant 0 : index
    %c0_491 = arith.constant 0 : index
    %579 = vector.load %arg5[%c1_487, %c0_488, %c1_489, %c0_490, %c0_491] : memref<2x4x8x8x128xf32, #tpu.memory_space<vmem>>, vector<1x4x1x8x128xf32>
    %580 = vector.shape_cast %579 : vector<1x4x1x8x128xf32> to vector<4x8x128xf32>
    %581 = vector.broadcast %578 : f32 to vector<4x8x128xf32>
    %582 = arith.mulf %581, %580 : vector<4x8x128xf32>
    %583 = arith.addf %576, %582 : vector<4x8x128xf32>
    %584 = arith.index_cast %538 : i32 to index
    %c2_492 = arith.constant 2 : index
    %585 = memref.load %arg3[%584, %c2_492] : memref<2x8xf32, #tpu.memory_space<smem>>
    %c1_493 = arith.constant 1 : index
    %c0_494 = arith.constant 0 : index
    %c2_495 = arith.constant 2 : index
    %c0_496 = arith.constant 0 : index
    %c0_497 = arith.constant 0 : index
    %586 = vector.load %arg5[%c1_493, %c0_494, %c2_495, %c0_496, %c0_497] : memref<2x4x8x8x128xf32, #tpu.memory_space<vmem>>, vector<1x4x1x8x128xf32>
    %587 = vector.shape_cast %586 : vector<1x4x1x8x128xf32> to vector<4x8x128xf32>
    %588 = vector.broadcast %585 : f32 to vector<4x8x128xf32>
    %589 = arith.mulf %588, %587 : vector<4x8x128xf32>
    %590 = arith.addf %583, %589 : vector<4x8x128xf32>
    %591 = arith.index_cast %538 : i32 to index
    %c3_498 = arith.constant 3 : index
    %592 = memref.load %arg3[%591, %c3_498] : memref<2x8xf32, #tpu.memory_space<smem>>
    %c1_499 = arith.constant 1 : index
    %c0_500 = arith.constant 0 : index
    %c3_501 = arith.constant 3 : index
    %c0_502 = arith.constant 0 : index
    %c0_503 = arith.constant 0 : index
    %593 = vector.load %arg5[%c1_499, %c0_500, %c3_501, %c0_502, %c0_503] : memref<2x4x8x8x128xf32, #tpu.memory_space<vmem>>, vector<1x4x1x8x128xf32>
    %594 = vector.shape_cast %593 : vector<1x4x1x8x128xf32> to vector<4x8x128xf32>
    %595 = vector.broadcast %592 : f32 to vector<4x8x128xf32>
    %596 = arith.mulf %595, %594 : vector<4x8x128xf32>
    %597 = arith.addf %590, %596 : vector<4x8x128xf32>
    %598 = arith.index_cast %538 : i32 to index
    %c4_504 = arith.constant 4 : index
    %599 = memref.load %arg3[%598, %c4_504] : memref<2x8xf32, #tpu.memory_space<smem>>
    %c1_505 = arith.constant 1 : index
    %c0_506 = arith.constant 0 : index
    %c4_507 = arith.constant 4 : index
    %c0_508 = arith.constant 0 : index
    %c0_509 = arith.constant 0 : index
    %600 = vector.load %arg5[%c1_505, %c0_506, %c4_507, %c0_508, %c0_509] : memref<2x4x8x8x128xf32, #tpu.memory_space<vmem>>, vector<1x4x1x8x128xf32>
    %601 = vector.shape_cast %600 : vector<1x4x1x8x128xf32> to vector<4x8x128xf32>
    %602 = vector.broadcast %599 : f32 to vector<4x8x128xf32>
    %603 = arith.mulf %602, %601 : vector<4x8x128xf32>
    %604 = arith.addf %597, %603 : vector<4x8x128xf32>
    %605 = arith.index_cast %538 : i32 to index
    %c5_510 = arith.constant 5 : index
    %606 = memref.load %arg3[%605, %c5_510] : memref<2x8xf32, #tpu.memory_space<smem>>
    %c1_511 = arith.constant 1 : index
    %c0_512 = arith.constant 0 : index
    %c5_513 = arith.constant 5 : index
    %c0_514 = arith.constant 0 : index
    %c0_515 = arith.constant 0 : index
    %607 = vector.load %arg5[%c1_511, %c0_512, %c5_513, %c0_514, %c0_515] : memref<2x4x8x8x128xf32, #tpu.memory_space<vmem>>, vector<1x4x1x8x128xf32>
    %608 = vector.shape_cast %607 : vector<1x4x1x8x128xf32> to vector<4x8x128xf32>
    %609 = vector.broadcast %606 : f32 to vector<4x8x128xf32>
    %610 = arith.mulf %609, %608 : vector<4x8x128xf32>
    %611 = arith.addf %604, %610 : vector<4x8x128xf32>
    %612 = arith.index_cast %538 : i32 to index
    %c6_516 = arith.constant 6 : index
    %613 = memref.load %arg3[%612, %c6_516] : memref<2x8xf32, #tpu.memory_space<smem>>
    %c1_517 = arith.constant 1 : index
    %c0_518 = arith.constant 0 : index
    %c6_519 = arith.constant 6 : index
    %c0_520 = arith.constant 0 : index
    %c0_521 = arith.constant 0 : index
    %614 = vector.load %arg5[%c1_517, %c0_518, %c6_519, %c0_520, %c0_521] : memref<2x4x8x8x128xf32, #tpu.memory_space<vmem>>, vector<1x4x1x8x128xf32>
    %615 = vector.shape_cast %614 : vector<1x4x1x8x128xf32> to vector<4x8x128xf32>
    %616 = vector.broadcast %613 : f32 to vector<4x8x128xf32>
    %617 = arith.mulf %616, %615 : vector<4x8x128xf32>
    %618 = arith.addf %611, %617 : vector<4x8x128xf32>
    %619 = arith.index_cast %538 : i32 to index
    %c7_522 = arith.constant 7 : index
    %620 = memref.load %arg3[%619, %c7_522] : memref<2x8xf32, #tpu.memory_space<smem>>
    %c1_523 = arith.constant 1 : index
    %c0_524 = arith.constant 0 : index
    %c7_525 = arith.constant 7 : index
    %c0_526 = arith.constant 0 : index
    %c0_527 = arith.constant 0 : index
    %621 = vector.load %arg5[%c1_523, %c0_524, %c7_525, %c0_526, %c0_527] : memref<2x4x8x8x128xf32, #tpu.memory_space<vmem>>, vector<1x4x1x8x128xf32>
    %622 = vector.shape_cast %621 : vector<1x4x1x8x128xf32> to vector<4x8x128xf32>
    %623 = vector.broadcast %620 : f32 to vector<4x8x128xf32>
    %624 = arith.mulf %623, %622 : vector<4x8x128xf32>
    %625 = arith.addf %618, %624 : vector<4x8x128xf32>
    %626 = vector.extract_strided_slice %625 {offsets = [0, 0, 0], sizes = [1, 8, 128], strides = [1, 1, 1]} : vector<4x8x128xf32> to vector<1x8x128xf32>
    %627 = vector.shape_cast %626 : vector<1x8x128xf32> to vector<8x128xf32>
    %628 = vector.extract_strided_slice %625 {offsets = [1, 0, 0], sizes = [1, 8, 128], strides = [1, 1, 1]} : vector<4x8x128xf32> to vector<1x8x128xf32>
    %629 = vector.shape_cast %628 : vector<1x8x128xf32> to vector<8x128xf32>
    %630 = vector.extract_strided_slice %625 {offsets = [2, 0, 0], sizes = [1, 8, 128], strides = [1, 1, 1]} : vector<4x8x128xf32> to vector<1x8x128xf32>
    %631 = vector.shape_cast %630 : vector<1x8x128xf32> to vector<8x128xf32>
    %632 = vector.extract_strided_slice %625 {offsets = [3, 0, 0], sizes = [1, 8, 128], strides = [1, 1, 1]} : vector<4x8x128xf32> to vector<1x8x128xf32>
    %633 = vector.shape_cast %632 : vector<1x8x128xf32> to vector<8x128xf32>
    %c1_528 = arith.constant 1 : index
    %c0_529 = arith.constant 0 : index
    %c0_530 = arith.constant 0 : index
    %c0_531 = arith.constant 0 : index
    %634 = vector.load %arg6[%c1_528, %c0_529, %c0_530, %c0_531] : memref<2x3x8x8xf32, #tpu.memory_space<vmem>>, vector<1x3x8x8xf32>
    %635 = vector.shape_cast %634 : vector<1x3x8x8xf32> to vector<3x8x8xf32>
    %636 = vector.shape_cast %635 : vector<3x8x8xf32> to vector<24x8xf32>
    %c0_532 = arith.constant 0 : index
    %c0_533 = arith.constant 0 : index
    %637 = vector.load %arg11[%c0_532, %c0_533] : memref<8x1024xf32, #tpu.memory_space<vmem>>, vector<8x1024xf32>
    %cst_534 = arith.constant dense<0.000000e+00> : vector<24x1024xf32>
    %638 = tpu.matmul %636, %637, %cst_534 {dimension_numbers = #tpu.dot_dimension_numbers<[1], [0], [0], [1], [0, 0, 1, 1], [], []>} : vector<24x8xf32>, vector<8x1024xf32>, vector<24x1024xf32> -> vector<24x1024xf32>
    %639 = vector.extract_strided_slice %638 {offsets = [0, 0], sizes = [8, 1024], strides = [1, 1]} : vector<24x1024xf32> to vector<8x1024xf32>
    %640 = vector.extract_strided_slice %638 {offsets = [8, 0], sizes = [8, 1024], strides = [1, 1]} : vector<24x1024xf32> to vector<8x1024xf32>
    %641 = vector.extract_strided_slice %638 {offsets = [16, 0], sizes = [8, 1024], strides = [1, 1]} : vector<24x1024xf32> to vector<8x1024xf32>
    %c0_535 = arith.constant 0 : index
    %c0_536 = arith.constant 0 : index
    %642 = vector.load %arg11[%c0_535, %c0_536] : memref<8x1024xf32, #tpu.memory_space<vmem>>, vector<8x128xf32>
    %643 = vector.extract_strided_slice %639 {offsets = [0, 0], sizes = [8, 128], strides = [1, 1]} : vector<8x1024xf32> to vector<8x128xf32>
    %644 = arith.addf %627, %643 : vector<8x128xf32>
    %c1_537 = arith.constant 1 : index
    %c0_538 = arith.constant 0 : index
    %c0_539 = arith.constant 0 : index
    %c0_540 = arith.constant 0 : index
    %c0_541 = arith.constant 0 : index
    %645 = vector.load %arg8[%c1_537, %c0_538, %c0_539, %c0_540, %c0_541] : memref<2x4x8x8x128xf32, #tpu.memory_space<vmem>>, vector<1x1x1x8x128xf32>
    %646 = vector.shape_cast %645 : vector<1x1x1x8x128xf32> to vector<8x128xf32>
    %647 = arith.addf %644, %646 : vector<8x128xf32>
    %cst_542 = arith.constant 5.000000e-01 : f32
    %648 = vector.broadcast %cst_542 : f32 to vector<8x128xf32>
    %649 = arith.mulf %648, %647 : vector<8x128xf32>
    %650 = math.tanh %649 : vector<8x128xf32>
    %cst_543 = arith.constant 5.000000e-01 : f32
    %651 = vector.broadcast %cst_543 : f32 to vector<8x128xf32>
    %652 = arith.mulf %651, %650 : vector<8x128xf32>
    %cst_544 = arith.constant 5.000000e-01 : f32
    %653 = vector.broadcast %cst_544 : f32 to vector<8x128xf32>
    %654 = arith.addf %652, %653 : vector<8x128xf32>
    %655 = vector.extract_strided_slice %640 {offsets = [0, 0], sizes = [8, 128], strides = [1, 1]} : vector<8x1024xf32> to vector<8x128xf32>
    %656 = arith.addf %629, %655 : vector<8x128xf32>
    %c1_545 = arith.constant 1 : index
    %c1_546 = arith.constant 1 : index
    %c0_547 = arith.constant 0 : index
    %c0_548 = arith.constant 0 : index
    %c0_549 = arith.constant 0 : index
    %657 = vector.load %arg8[%c1_545, %c1_546, %c0_547, %c0_548, %c0_549] : memref<2x4x8x8x128xf32, #tpu.memory_space<vmem>>, vector<1x1x1x8x128xf32>
    %658 = vector.shape_cast %657 : vector<1x1x1x8x128xf32> to vector<8x128xf32>
    %659 = arith.addf %656, %658 : vector<8x128xf32>
    %cst_550 = arith.constant 5.000000e-01 : f32
    %660 = vector.broadcast %cst_550 : f32 to vector<8x128xf32>
    %661 = arith.mulf %660, %659 : vector<8x128xf32>
    %662 = math.tanh %661 : vector<8x128xf32>
    %cst_551 = arith.constant 5.000000e-01 : f32
    %663 = vector.broadcast %cst_551 : f32 to vector<8x128xf32>
    %664 = arith.mulf %663, %662 : vector<8x128xf32>
    %cst_552 = arith.constant 5.000000e-01 : f32
    %665 = vector.broadcast %cst_552 : f32 to vector<8x128xf32>
    %666 = arith.addf %664, %665 : vector<8x128xf32>
    %667 = vector.extract_strided_slice %641 {offsets = [0, 0], sizes = [8, 128], strides = [1, 1]} : vector<8x1024xf32> to vector<8x128xf32>
    %668 = arith.addf %631, %667 : vector<8x128xf32>
    %c1_553 = arith.constant 1 : index
    %c2_554 = arith.constant 2 : index
    %c0_555 = arith.constant 0 : index
    %c0_556 = arith.constant 0 : index
    %c0_557 = arith.constant 0 : index
    %669 = vector.load %arg8[%c1_553, %c2_554, %c0_555, %c0_556, %c0_557] : memref<2x4x8x8x128xf32, #tpu.memory_space<vmem>>, vector<1x1x1x8x128xf32>
    %670 = vector.shape_cast %669 : vector<1x1x1x8x128xf32> to vector<8x128xf32>
    %671 = arith.addf %668, %670 : vector<8x128xf32>
    %cst_558 = arith.constant 5.000000e-01 : f32
    %672 = vector.broadcast %cst_558 : f32 to vector<8x128xf32>
    %673 = arith.mulf %672, %671 : vector<8x128xf32>
    %674 = math.tanh %673 : vector<8x128xf32>
    %cst_559 = arith.constant 5.000000e-01 : f32
    %675 = vector.broadcast %cst_559 : f32 to vector<8x128xf32>
    %676 = arith.mulf %675, %674 : vector<8x128xf32>
    %cst_560 = arith.constant 5.000000e-01 : f32
    %677 = vector.broadcast %cst_560 : f32 to vector<8x128xf32>
    %678 = arith.addf %676, %677 : vector<8x128xf32>
    %c1_561 = arith.constant 1 : index
    %c0_562 = arith.constant 0 : index
    %c0_563 = arith.constant 0 : index
    %c0_564 = arith.constant 0 : index
    %679 = vector.load %arg7[%c1_561, %c0_562, %c0_563, %c0_564] : memref<2x8x8x128xf32, #tpu.memory_space<vmem>>, vector<1x1x8x128xf32>
    %680 = vector.shape_cast %679 : vector<1x1x8x128xf32> to vector<8x128xf32>
    %681 = arith.mulf %680, %642 : vector<8x128xf32>
    %682 = arith.addf %633, %681 : vector<8x128xf32>
    %c1_565 = arith.constant 1 : index
    %c3_566 = arith.constant 3 : index
    %c0_567 = arith.constant 0 : index
    %c0_568 = arith.constant 0 : index
    %c0_569 = arith.constant 0 : index
    %683 = vector.load %arg8[%c1_565, %c3_566, %c0_567, %c0_568, %c0_569] : memref<2x4x8x8x128xf32, #tpu.memory_space<vmem>>, vector<1x1x1x8x128xf32>
    %684 = vector.shape_cast %683 : vector<1x1x1x8x128xf32> to vector<8x128xf32>
    %685 = arith.addf %682, %684 : vector<8x128xf32>
    %686 = math.tanh %685 : vector<8x128xf32>
    %687 = arith.mulf %678, %642 : vector<8x128xf32>
    %688 = arith.mulf %654, %686 : vector<8x128xf32>
    %689 = arith.addf %687, %688 : vector<8x128xf32>
    %c1_570 = arith.constant 1 : index
    %c0_571 = arith.constant 0 : index
    %c0_572 = arith.constant 0 : index
    %c0_573 = arith.constant 0 : index
    %690 = vector.load %arg9[%c1_570, %c0_571, %c0_572, %c0_573] : memref<2x8x8x128xf32, #tpu.memory_space<vmem>>, vector<1x1x8x128xf32>
    %691 = vector.shape_cast %690 : vector<1x1x8x128xf32> to vector<8x128xf32>
    %692 = vector.shape_cast %689 : vector<8x128xf32> to vector<1x1x8x128xf32>
    tpu.vector_store %arg9[%c1_570, %c0_571, %c0_572, %c0_573], %692 {strides = array<i32>} : memref<2x8x8x128xf32, #tpu.memory_space<vmem>>, vector<1x1x8x128xf32>,
    %c1_574 = arith.constant 1 : index
    %c0_575 = arith.constant 0 : index
    %c0_576 = arith.constant 0 : index
    %c0_577 = arith.constant 0 : index
    %693 = vector.load %arg10[%c1_574, %c0_575, %c0_576, %c0_577] : memref<2x8x8x128xf32, #tpu.memory_space<vmem>>, vector<1x1x8x128xf32>
    %694 = vector.shape_cast %693 : vector<1x1x8x128xf32> to vector<8x128xf32>
    %695 = vector.shape_cast %666 : vector<8x128xf32> to vector<1x1x8x128xf32>
    tpu.vector_store %arg10[%c1_574, %c0_575, %c0_576, %c0_577], %695 {strides = array<i32>} : memref<2x8x8x128xf32, #tpu.memory_space<vmem>>, vector<1x1x8x128xf32>,
    %c0_578 = arith.constant 0 : index
    %c128_579 = arith.constant 128 : index
    %696 = vector.load %arg11[%c0_578, %c128_579] : memref<8x1024xf32, #tpu.memory_space<vmem>>, vector<8x128xf32>
    %697 = vector.extract_strided_slice %639 {offsets = [0, 128], sizes = [8, 128], strides = [1, 1]} : vector<8x1024xf32> to vector<8x128xf32>
    %698 = arith.addf %627, %697 : vector<8x128xf32>
    %c1_580 = arith.constant 1 : index
    %c0_581 = arith.constant 0 : index
    %c1_582 = arith.constant 1 : index
    %c0_583 = arith.constant 0 : index
    %c0_584 = arith.constant 0 : index
    %699 = vector.load %arg8[%c1_580, %c0_581, %c1_582, %c0_583, %c0_584] : memref<2x4x8x8x128xf32, #tpu.memory_space<vmem>>, vector<1x1x1x8x128xf32>
    %700 = vector.shape_cast %699 : vector<1x1x1x8x128xf32> to vector<8x128xf32>
    %701 = arith.addf %698, %700 : vector<8x128xf32>
    %cst_585 = arith.constant 5.000000e-01 : f32
    %702 = vector.broadcast %cst_585 : f32 to vector<8x128xf32>
    %703 = arith.mulf %702, %701 : vector<8x128xf32>
    %704 = math.tanh %703 : vector<8x128xf32>
    %cst_586 = arith.constant 5.000000e-01 : f32
    %705 = vector.broadcast %cst_586 : f32 to vector<8x128xf32>
    %706 = arith.mulf %705, %704 : vector<8x128xf32>
    %cst_587 = arith.constant 5.000000e-01 : f32
    %707 = vector.broadcast %cst_587 : f32 to vector<8x128xf32>
    %708 = arith.addf %706, %707 : vector<8x128xf32>
    %709 = vector.extract_strided_slice %640 {offsets = [0, 128], sizes = [8, 128], strides = [1, 1]} : vector<8x1024xf32> to vector<8x128xf32>
    %710 = arith.addf %629, %709 : vector<8x128xf32>
    %c1_588 = arith.constant 1 : index
    %c1_589 = arith.constant 1 : index
    %c1_590 = arith.constant 1 : index
    %c0_591 = arith.constant 0 : index
    %c0_592 = arith.constant 0 : index
    %711 = vector.load %arg8[%c1_588, %c1_589, %c1_590, %c0_591, %c0_592] : memref<2x4x8x8x128xf32, #tpu.memory_space<vmem>>, vector<1x1x1x8x128xf32>
    %712 = vector.shape_cast %711 : vector<1x1x1x8x128xf32> to vector<8x128xf32>
    %713 = arith.addf %710, %712 : vector<8x128xf32>
    %cst_593 = arith.constant 5.000000e-01 : f32
    %714 = vector.broadcast %cst_593 : f32 to vector<8x128xf32>
    %715 = arith.mulf %714, %713 : vector<8x128xf32>
    %716 = math.tanh %715 : vector<8x128xf32>
    %cst_594 = arith.constant 5.000000e-01 : f32
    %717 = vector.broadcast %cst_594 : f32 to vector<8x128xf32>
    %718 = arith.mulf %717, %716 : vector<8x128xf32>
    %cst_595 = arith.constant 5.000000e-01 : f32
    %719 = vector.broadcast %cst_595 : f32 to vector<8x128xf32>
    %720 = arith.addf %718, %719 : vector<8x128xf32>
    %721 = vector.extract_strided_slice %641 {offsets = [0, 128], sizes = [8, 128], strides = [1, 1]} : vector<8x1024xf32> to vector<8x128xf32>
    %722 = arith.addf %631, %721 : vector<8x128xf32>
    %c1_596 = arith.constant 1 : index
    %c2_597 = arith.constant 2 : index
    %c1_598 = arith.constant 1 : index
    %c0_599 = arith.constant 0 : index
    %c0_600 = arith.constant 0 : index
    %723 = vector.load %arg8[%c1_596, %c2_597, %c1_598, %c0_599, %c0_600] : memref<2x4x8x8x128xf32, #tpu.memory_space<vmem>>, vector<1x1x1x8x128xf32>
    %724 = vector.shape_cast %723 : vector<1x1x1x8x128xf32> to vector<8x128xf32>
    %725 = arith.addf %722, %724 : vector<8x128xf32>
    %cst_601 = arith.constant 5.000000e-01 : f32
    %726 = vector.broadcast %cst_601 : f32 to vector<8x128xf32>
    %727 = arith.mulf %726, %725 : vector<8x128xf32>
    %728 = math.tanh %727 : vector<8x128xf32>
    %cst_602 = arith.constant 5.000000e-01 : f32
    %729 = vector.broadcast %cst_602 : f32 to vector<8x128xf32>
    %730 = arith.mulf %729, %728 : vector<8x128xf32>
    %cst_603 = arith.constant 5.000000e-01 : f32
    %731 = vector.broadcast %cst_603 : f32 to vector<8x128xf32>
    %732 = arith.addf %730, %731 : vector<8x128xf32>
    %c1_604 = arith.constant 1 : index
    %c1_605 = arith.constant 1 : index
    %c0_606 = arith.constant 0 : index
    %c0_607 = arith.constant 0 : index
    %733 = vector.load %arg7[%c1_604, %c1_605, %c0_606, %c0_607] : memref<2x8x8x128xf32, #tpu.memory_space<vmem>>, vector<1x1x8x128xf32>
    %734 = vector.shape_cast %733 : vector<1x1x8x128xf32> to vector<8x128xf32>
    %735 = arith.mulf %734, %696 : vector<8x128xf32>
    %736 = arith.addf %633, %735 : vector<8x128xf32>
    %c1_608 = arith.constant 1 : index
    %c3_609 = arith.constant 3 : index
    %c1_610 = arith.constant 1 : index
    %c0_611 = arith.constant 0 : index
    %c0_612 = arith.constant 0 : index
    %737 = vector.load %arg8[%c1_608, %c3_609, %c1_610, %c0_611, %c0_612] : memref<2x4x8x8x128xf32, #tpu.memory_space<vmem>>, vector<1x1x1x8x128xf32>
    %738 = vector.shape_cast %737 : vector<1x1x1x8x128xf32> to vector<8x128xf32>
    %739 = arith.addf %736, %738 : vector<8x128xf32>
    %740 = math.tanh %739 : vector<8x128xf32>
    %741 = arith.mulf %732, %696 : vector<8x128xf32>
    %742 = arith.mulf %708, %740 : vector<8x128xf32>
    %743 = arith.addf %741, %742 : vector<8x128xf32>
    %c1_613 = arith.constant 1 : index
    %c1_614 = arith.constant 1 : index
    %c0_615 = arith.constant 0 : index
    %c0_616 = arith.constant 0 : index
    %744 = vector.load %arg9[%c1_613, %c1_614, %c0_615, %c0_616] : memref<2x8x8x128xf32, #tpu.memory_space<vmem>>, vector<1x1x8x128xf32>
    %745 = vector.shape_cast %744 : vector<1x1x8x128xf32> to vector<8x128xf32>
    %746 = vector.shape_cast %743 : vector<8x128xf32> to vector<1x1x8x128xf32>
    tpu.vector_store %arg9[%c1_613, %c1_614, %c0_615, %c0_616], %746 {strides = array<i32>} : memref<2x8x8x128xf32, #tpu.memory_space<vmem>>, vector<1x1x8x128xf32>,
    %c1_617 = arith.constant 1 : index
    %c1_618 = arith.constant 1 : index
    %c0_619 = arith.constant 0 : index
    %c0_620 = arith.constant 0 : index
    %747 = vector.load %arg10[%c1_617, %c1_618, %c0_619, %c0_620] : memref<2x8x8x128xf32, #tpu.memory_space<vmem>>, vector<1x1x8x128xf32>
    %748 = vector.shape_cast %747 : vector<1x1x8x128xf32> to vector<8x128xf32>
    %749 = vector.shape_cast %720 : vector<8x128xf32> to vector<1x1x8x128xf32>
    tpu.vector_store %arg10[%c1_617, %c1_618, %c0_619, %c0_620], %749 {strides = array<i32>} : memref<2x8x8x128xf32, #tpu.memory_space<vmem>>, vector<1x1x8x128xf32>,
    %c0_621 = arith.constant 0 : index
    %c256_622 = arith.constant 256 : index
    %750 = vector.load %arg11[%c0_621, %c256_622] : memref<8x1024xf32, #tpu.memory_space<vmem>>, vector<8x128xf32>
    %751 = vector.extract_strided_slice %639 {offsets = [0, 256], sizes = [8, 128], strides = [1, 1]} : vector<8x1024xf32> to vector<8x128xf32>
    %752 = arith.addf %627, %751 : vector<8x128xf32>
    %c1_623 = arith.constant 1 : index
    %c0_624 = arith.constant 0 : index
    %c2_625 = arith.constant 2 : index
    %c0_626 = arith.constant 0 : index
    %c0_627 = arith.constant 0 : index
    %753 = vector.load %arg8[%c1_623, %c0_624, %c2_625, %c0_626, %c0_627] : memref<2x4x8x8x128xf32, #tpu.memory_space<vmem>>, vector<1x1x1x8x128xf32>
    %754 = vector.shape_cast %753 : vector<1x1x1x8x128xf32> to vector<8x128xf32>
    %755 = arith.addf %752, %754 : vector<8x128xf32>
    %cst_628 = arith.constant 5.000000e-01 : f32
    %756 = vector.broadcast %cst_628 : f32 to vector<8x128xf32>
    %757 = arith.mulf %756, %755 : vector<8x128xf32>
    %758 = math.tanh %757 : vector<8x128xf32>
    %cst_629 = arith.constant 5.000000e-01 : f32
    %759 = vector.broadcast %cst_629 : f32 to vector<8x128xf32>
    %760 = arith.mulf %759, %758 : vector<8x128xf32>
    %cst_630 = arith.constant 5.000000e-01 : f32
    %761 = vector.broadcast %cst_630 : f32 to vector<8x128xf32>
    %762 = arith.addf %760, %761 : vector<8x128xf32>
    %763 = vector.extract_strided_slice %640 {offsets = [0, 256], sizes = [8, 128], strides = [1, 1]} : vector<8x1024xf32> to vector<8x128xf32>
    %764 = arith.addf %629, %763 : vector<8x128xf32>
    %c1_631 = arith.constant 1 : index
    %c1_632 = arith.constant 1 : index
    %c2_633 = arith.constant 2 : index
    %c0_634 = arith.constant 0 : index
    %c0_635 = arith.constant 0 : index
    %765 = vector.load %arg8[%c1_631, %c1_632, %c2_633, %c0_634, %c0_635] : memref<2x4x8x8x128xf32, #tpu.memory_space<vmem>>, vector<1x1x1x8x128xf32>
    %766 = vector.shape_cast %765 : vector<1x1x1x8x128xf32> to vector<8x128xf32>
    %767 = arith.addf %764, %766 : vector<8x128xf32>
    %cst_636 = arith.constant 5.000000e-01 : f32
    %768 = vector.broadcast %cst_636 : f32 to vector<8x128xf32>
    %769 = arith.mulf %768, %767 : vector<8x128xf32>
    %770 = math.tanh %769 : vector<8x128xf32>
    %cst_637 = arith.constant 5.000000e-01 : f32
    %771 = vector.broadcast %cst_637 : f32 to vector<8x128xf32>
    %772 = arith.mulf %771, %770 : vector<8x128xf32>
    %cst_638 = arith.constant 5.000000e-01 : f32
    %773 = vector.broadcast %cst_638 : f32 to vector<8x128xf32>
    %774 = arith.addf %772, %773 : vector<8x128xf32>
    %775 = vector.extract_strided_slice %641 {offsets = [0, 256], sizes = [8, 128], strides = [1, 1]} : vector<8x1024xf32> to vector<8x128xf32>
    %776 = arith.addf %631, %775 : vector<8x128xf32>
    %c1_639 = arith.constant 1 : index
    %c2_640 = arith.constant 2 : index
    %c2_641 = arith.constant 2 : index
    %c0_642 = arith.constant 0 : index
    %c0_643 = arith.constant 0 : index
    %777 = vector.load %arg8[%c1_639, %c2_640, %c2_641, %c0_642, %c0_643] : memref<2x4x8x8x128xf32, #tpu.memory_space<vmem>>, vector<1x1x1x8x128xf32>
    %778 = vector.shape_cast %777 : vector<1x1x1x8x128xf32> to vector<8x128xf32>
    %779 = arith.addf %776, %778 : vector<8x128xf32>
    %cst_644 = arith.constant 5.000000e-01 : f32
    %780 = vector.broadcast %cst_644 : f32 to vector<8x128xf32>
    %781 = arith.mulf %780, %779 : vector<8x128xf32>
    %782 = math.tanh %781 : vector<8x128xf32>
    %cst_645 = arith.constant 5.000000e-01 : f32
    %783 = vector.broadcast %cst_645 : f32 to vector<8x128xf32>
    %784 = arith.mulf %783, %782 : vector<8x128xf32>
    %cst_646 = arith.constant 5.000000e-01 : f32
    %785 = vector.broadcast %cst_646 : f32 to vector<8x128xf32>
    %786 = arith.addf %784, %785 : vector<8x128xf32>
    %c1_647 = arith.constant 1 : index
    %c2_648 = arith.constant 2 : index
    %c0_649 = arith.constant 0 : index
    %c0_650 = arith.constant 0 : index
    %787 = vector.load %arg7[%c1_647, %c2_648, %c0_649, %c0_650] : memref<2x8x8x128xf32, #tpu.memory_space<vmem>>, vector<1x1x8x128xf32>
    %788 = vector.shape_cast %787 : vector<1x1x8x128xf32> to vector<8x128xf32>
    %789 = arith.mulf %788, %750 : vector<8x128xf32>
    %790 = arith.addf %633, %789 : vector<8x128xf32>
    %c1_651 = arith.constant 1 : index
    %c3_652 = arith.constant 3 : index
    %c2_653 = arith.constant 2 : index
    %c0_654 = arith.constant 0 : index
    %c0_655 = arith.constant 0 : index
    %791 = vector.load %arg8[%c1_651, %c3_652, %c2_653, %c0_654, %c0_655] : memref<2x4x8x8x128xf32, #tpu.memory_space<vmem>>, vector<1x1x1x8x128xf32>
    %792 = vector.shape_cast %791 : vector<1x1x1x8x128xf32> to vector<8x128xf32>
    %793 = arith.addf %790, %792 : vector<8x128xf32>
    %794 = math.tanh %793 : vector<8x128xf32>
    %795 = arith.mulf %786, %750 : vector<8x128xf32>
    %796 = arith.mulf %762, %794 : vector<8x128xf32>
    %797 = arith.addf %795, %796 : vector<8x128xf32>
    %c1_656 = arith.constant 1 : index
    %c2_657 = arith.constant 2 : index
    %c0_658 = arith.constant 0 : index
    %c0_659 = arith.constant 0 : index
    %798 = vector.load %arg9[%c1_656, %c2_657, %c0_658, %c0_659] : memref<2x8x8x128xf32, #tpu.memory_space<vmem>>, vector<1x1x8x128xf32>
    %799 = vector.shape_cast %798 : vector<1x1x8x128xf32> to vector<8x128xf32>
    %800 = vector.shape_cast %797 : vector<8x128xf32> to vector<1x1x8x128xf32>
    tpu.vector_store %arg9[%c1_656, %c2_657, %c0_658, %c0_659], %800 {strides = array<i32>} : memref<2x8x8x128xf32, #tpu.memory_space<vmem>>, vector<1x1x8x128xf32>,
    %c1_660 = arith.constant 1 : index
    %c2_661 = arith.constant 2 : index
    %c0_662 = arith.constant 0 : index
    %c0_663 = arith.constant 0 : index
    %801 = vector.load %arg10[%c1_660, %c2_661, %c0_662, %c0_663] : memref<2x8x8x128xf32, #tpu.memory_space<vmem>>, vector<1x1x8x128xf32>
    %802 = vector.shape_cast %801 : vector<1x1x8x128xf32> to vector<8x128xf32>
    %803 = vector.shape_cast %774 : vector<8x128xf32> to vector<1x1x8x128xf32>
    tpu.vector_store %arg10[%c1_660, %c2_661, %c0_662, %c0_663], %803 {strides = array<i32>} : memref<2x8x8x128xf32, #tpu.memory_space<vmem>>, vector<1x1x8x128xf32>,
    %c0_664 = arith.constant 0 : index
    %c384_665 = arith.constant 384 : index
    %804 = vector.load %arg11[%c0_664, %c384_665] : memref<8x1024xf32, #tpu.memory_space<vmem>>, vector<8x128xf32>
    %805 = vector.extract_strided_slice %639 {offsets = [0, 384], sizes = [8, 128], strides = [1, 1]} : vector<8x1024xf32> to vector<8x128xf32>
    %806 = arith.addf %627, %805 : vector<8x128xf32>
    %c1_666 = arith.constant 1 : index
    %c0_667 = arith.constant 0 : index
    %c3_668 = arith.constant 3 : index
    %c0_669 = arith.constant 0 : index
    %c0_670 = arith.constant 0 : index
    %807 = vector.load %arg8[%c1_666, %c0_667, %c3_668, %c0_669, %c0_670] : memref<2x4x8x8x128xf32, #tpu.memory_space<vmem>>, vector<1x1x1x8x128xf32>
    %808 = vector.shape_cast %807 : vector<1x1x1x8x128xf32> to vector<8x128xf32>
    %809 = arith.addf %806, %808 : vector<8x128xf32>
    %cst_671 = arith.constant 5.000000e-01 : f32
    %810 = vector.broadcast %cst_671 : f32 to vector<8x128xf32>
    %811 = arith.mulf %810, %809 : vector<8x128xf32>
    %812 = math.tanh %811 : vector<8x128xf32>
    %cst_672 = arith.constant 5.000000e-01 : f32
    %813 = vector.broadcast %cst_672 : f32 to vector<8x128xf32>
    %814 = arith.mulf %813, %812 : vector<8x128xf32>
    %cst_673 = arith.constant 5.000000e-01 : f32
    %815 = vector.broadcast %cst_673 : f32 to vector<8x128xf32>
    %816 = arith.addf %814, %815 : vector<8x128xf32>
    %817 = vector.extract_strided_slice %640 {offsets = [0, 384], sizes = [8, 128], strides = [1, 1]} : vector<8x1024xf32> to vector<8x128xf32>
    %818 = arith.addf %629, %817 : vector<8x128xf32>
    %c1_674 = arith.constant 1 : index
    %c1_675 = arith.constant 1 : index
    %c3_676 = arith.constant 3 : index
    %c0_677 = arith.constant 0 : index
    %c0_678 = arith.constant 0 : index
    %819 = vector.load %arg8[%c1_674, %c1_675, %c3_676, %c0_677, %c0_678] : memref<2x4x8x8x128xf32, #tpu.memory_space<vmem>>, vector<1x1x1x8x128xf32>
    %820 = vector.shape_cast %819 : vector<1x1x1x8x128xf32> to vector<8x128xf32>
    %821 = arith.addf %818, %820 : vector<8x128xf32>
    %cst_679 = arith.constant 5.000000e-01 : f32
    %822 = vector.broadcast %cst_679 : f32 to vector<8x128xf32>
    %823 = arith.mulf %822, %821 : vector<8x128xf32>
    %824 = math.tanh %823 : vector<8x128xf32>
    %cst_680 = arith.constant 5.000000e-01 : f32
    %825 = vector.broadcast %cst_680 : f32 to vector<8x128xf32>
    %826 = arith.mulf %825, %824 : vector<8x128xf32>
    %cst_681 = arith.constant 5.000000e-01 : f32
    %827 = vector.broadcast %cst_681 : f32 to vector<8x128xf32>
    %828 = arith.addf %826, %827 : vector<8x128xf32>
    %829 = vector.extract_strided_slice %641 {offsets = [0, 384], sizes = [8, 128], strides = [1, 1]} : vector<8x1024xf32> to vector<8x128xf32>
    %830 = arith.addf %631, %829 : vector<8x128xf32>
    %c1_682 = arith.constant 1 : index
    %c2_683 = arith.constant 2 : index
    %c3_684 = arith.constant 3 : index
    %c0_685 = arith.constant 0 : index
    %c0_686 = arith.constant 0 : index
    %831 = vector.load %arg8[%c1_682, %c2_683, %c3_684, %c0_685, %c0_686] : memref<2x4x8x8x128xf32, #tpu.memory_space<vmem>>, vector<1x1x1x8x128xf32>
    %832 = vector.shape_cast %831 : vector<1x1x1x8x128xf32> to vector<8x128xf32>
    %833 = arith.addf %830, %832 : vector<8x128xf32>
    %cst_687 = arith.constant 5.000000e-01 : f32
    %834 = vector.broadcast %cst_687 : f32 to vector<8x128xf32>
    %835 = arith.mulf %834, %833 : vector<8x128xf32>
    %836 = math.tanh %835 : vector<8x128xf32>
    %cst_688 = arith.constant 5.000000e-01 : f32
    %837 = vector.broadcast %cst_688 : f32 to vector<8x128xf32>
    %838 = arith.mulf %837, %836 : vector<8x128xf32>
    %cst_689 = arith.constant 5.000000e-01 : f32
    %839 = vector.broadcast %cst_689 : f32 to vector<8x128xf32>
    %840 = arith.addf %838, %839 : vector<8x128xf32>
    %c1_690 = arith.constant 1 : index
    %c3_691 = arith.constant 3 : index
    %c0_692 = arith.constant 0 : index
    %c0_693 = arith.constant 0 : index
    %841 = vector.load %arg7[%c1_690, %c3_691, %c0_692, %c0_693] : memref<2x8x8x128xf32, #tpu.memory_space<vmem>>, vector<1x1x8x128xf32>
    %842 = vector.shape_cast %841 : vector<1x1x8x128xf32> to vector<8x128xf32>
    %843 = arith.mulf %842, %804 : vector<8x128xf32>
    %844 = arith.addf %633, %843 : vector<8x128xf32>
    %c1_694 = arith.constant 1 : index
    %c3_695 = arith.constant 3 : index
    %c3_696 = arith.constant 3 : index
    %c0_697 = arith.constant 0 : index
    %c0_698 = arith.constant 0 : index
    %845 = vector.load %arg8[%c1_694, %c3_695, %c3_696, %c0_697, %c0_698] : memref<2x4x8x8x128xf32, #tpu.memory_space<vmem>>, vector<1x1x1x8x128xf32>
    %846 = vector.shape_cast %845 : vector<1x1x1x8x128xf32> to vector<8x128xf32>
    %847 = arith.addf %844, %846 : vector<8x128xf32>
    %848 = math.tanh %847 : vector<8x128xf32>
    %849 = arith.mulf %840, %804 : vector<8x128xf32>
    %850 = arith.mulf %816, %848 : vector<8x128xf32>
    %851 = arith.addf %849, %850 : vector<8x128xf32>
    %c1_699 = arith.constant 1 : index
    %c3_700 = arith.constant 3 : index
    %c0_701 = arith.constant 0 : index
    %c0_702 = arith.constant 0 : index
    %852 = vector.load %arg9[%c1_699, %c3_700, %c0_701, %c0_702] : memref<2x8x8x128xf32, #tpu.memory_space<vmem>>, vector<1x1x8x128xf32>
    %853 = vector.shape_cast %852 : vector<1x1x8x128xf32> to vector<8x128xf32>
    %854 = vector.shape_cast %851 : vector<8x128xf32> to vector<1x1x8x128xf32>
    tpu.vector_store %arg9[%c1_699, %c3_700, %c0_701, %c0_702], %854 {strides = array<i32>} : memref<2x8x8x128xf32, #tpu.memory_space<vmem>>, vector<1x1x8x128xf32>,
    %c1_703 = arith.constant 1 : index
    %c3_704 = arith.constant 3 : index
    %c0_705 = arith.constant 0 : index
    %c0_706 = arith.constant 0 : index
    %855 = vector.load %arg10[%c1_703, %c3_704, %c0_705, %c0_706] : memref<2x8x8x128xf32, #tpu.memory_space<vmem>>, vector<1x1x8x128xf32>
    %856 = vector.shape_cast %855 : vector<1x1x8x128xf32> to vector<8x128xf32>
    %857 = vector.shape_cast %828 : vector<8x128xf32> to vector<1x1x8x128xf32>
    tpu.vector_store %arg10[%c1_703, %c3_704, %c0_705, %c0_706], %857 {strides = array<i32>} : memref<2x8x8x128xf32, #tpu.memory_space<vmem>>, vector<1x1x8x128xf32>,
    %c0_707 = arith.constant 0 : index
    %c512_708 = arith.constant 512 : index
    %858 = vector.load %arg11[%c0_707, %c512_708] : memref<8x1024xf32, #tpu.memory_space<vmem>>, vector<8x128xf32>
    %859 = vector.extract_strided_slice %639 {offsets = [0, 512], sizes = [8, 128], strides = [1, 1]} : vector<8x1024xf32> to vector<8x128xf32>
    %860 = arith.addf %627, %859 : vector<8x128xf32>
    %c1_709 = arith.constant 1 : index
    %c0_710 = arith.constant 0 : index
    %c4_711 = arith.constant 4 : index
    %c0_712 = arith.constant 0 : index
    %c0_713 = arith.constant 0 : index
    %861 = vector.load %arg8[%c1_709, %c0_710, %c4_711, %c0_712, %c0_713] : memref<2x4x8x8x128xf32, #tpu.memory_space<vmem>>, vector<1x1x1x8x128xf32>
    %862 = vector.shape_cast %861 : vector<1x1x1x8x128xf32> to vector<8x128xf32>
    %863 = arith.addf %860, %862 : vector<8x128xf32>
    %cst_714 = arith.constant 5.000000e-01 : f32
    %864 = vector.broadcast %cst_714 : f32 to vector<8x128xf32>
    %865 = arith.mulf %864, %863 : vector<8x128xf32>
    %866 = math.tanh %865 : vector<8x128xf32>
    %cst_715 = arith.constant 5.000000e-01 : f32
    %867 = vector.broadcast %cst_715 : f32 to vector<8x128xf32>
    %868 = arith.mulf %867, %866 : vector<8x128xf32>
    %cst_716 = arith.constant 5.000000e-01 : f32
    %869 = vector.broadcast %cst_716 : f32 to vector<8x128xf32>
    %870 = arith.addf %868, %869 : vector<8x128xf32>
    %871 = vector.extract_strided_slice %640 {offsets = [0, 512], sizes = [8, 128], strides = [1, 1]} : vector<8x1024xf32> to vector<8x128xf32>
    %872 = arith.addf %629, %871 : vector<8x128xf32>
    %c1_717 = arith.constant 1 : index
    %c1_718 = arith.constant 1 : index
    %c4_719 = arith.constant 4 : index
    %c0_720 = arith.constant 0 : index
    %c0_721 = arith.constant 0 : index
    %873 = vector.load %arg8[%c1_717, %c1_718, %c4_719, %c0_720, %c0_721] : memref<2x4x8x8x128xf32, #tpu.memory_space<vmem>>, vector<1x1x1x8x128xf32>
    %874 = vector.shape_cast %873 : vector<1x1x1x8x128xf32> to vector<8x128xf32>
    %875 = arith.addf %872, %874 : vector<8x128xf32>
    %cst_722 = arith.constant 5.000000e-01 : f32
    %876 = vector.broadcast %cst_722 : f32 to vector<8x128xf32>
    %877 = arith.mulf %876, %875 : vector<8x128xf32>
    %878 = math.tanh %877 : vector<8x128xf32>
    %cst_723 = arith.constant 5.000000e-01 : f32
    %879 = vector.broadcast %cst_723 : f32 to vector<8x128xf32>
    %880 = arith.mulf %879, %878 : vector<8x128xf32>
    %cst_724 = arith.constant 5.000000e-01 : f32
    %881 = vector.broadcast %cst_724 : f32 to vector<8x128xf32>
    %882 = arith.addf %880, %881 : vector<8x128xf32>
    %883 = vector.extract_strided_slice %641 {offsets = [0, 512], sizes = [8, 128], strides = [1, 1]} : vector<8x1024xf32> to vector<8x128xf32>
    %884 = arith.addf %631, %883 : vector<8x128xf32>
    %c1_725 = arith.constant 1 : index
    %c2_726 = arith.constant 2 : index
    %c4_727 = arith.constant 4 : index
    %c0_728 = arith.constant 0 : index
    %c0_729 = arith.constant 0 : index
    %885 = vector.load %arg8[%c1_725, %c2_726, %c4_727, %c0_728, %c0_729] : memref<2x4x8x8x128xf32, #tpu.memory_space<vmem>>, vector<1x1x1x8x128xf32>
    %886 = vector.shape_cast %885 : vector<1x1x1x8x128xf32> to vector<8x128xf32>
    %887 = arith.addf %884, %886 : vector<8x128xf32>
    %cst_730 = arith.constant 5.000000e-01 : f32
    %888 = vector.broadcast %cst_730 : f32 to vector<8x128xf32>
    %889 = arith.mulf %888, %887 : vector<8x128xf32>
    %890 = math.tanh %889 : vector<8x128xf32>
    %cst_731 = arith.constant 5.000000e-01 : f32
    %891 = vector.broadcast %cst_731 : f32 to vector<8x128xf32>
    %892 = arith.mulf %891, %890 : vector<8x128xf32>
    %cst_732 = arith.constant 5.000000e-01 : f32
    %893 = vector.broadcast %cst_732 : f32 to vector<8x128xf32>
    %894 = arith.addf %892, %893 : vector<8x128xf32>
    %c1_733 = arith.constant 1 : index
    %c4_734 = arith.constant 4 : index
    %c0_735 = arith.constant 0 : index
    %c0_736 = arith.constant 0 : index
    %895 = vector.load %arg7[%c1_733, %c4_734, %c0_735, %c0_736] : memref<2x8x8x128xf32, #tpu.memory_space<vmem>>, vector<1x1x8x128xf32>
    %896 = vector.shape_cast %895 : vector<1x1x8x128xf32> to vector<8x128xf32>
    %897 = arith.mulf %896, %858 : vector<8x128xf32>
    %898 = arith.addf %633, %897 : vector<8x128xf32>
    %c1_737 = arith.constant 1 : index
    %c3_738 = arith.constant 3 : index
    %c4_739 = arith.constant 4 : index
    %c0_740 = arith.constant 0 : index
    %c0_741 = arith.constant 0 : index
    %899 = vector.load %arg8[%c1_737, %c3_738, %c4_739, %c0_740, %c0_741] : memref<2x4x8x8x128xf32, #tpu.memory_space<vmem>>, vector<1x1x1x8x128xf32>
    %900 = vector.shape_cast %899 : vector<1x1x1x8x128xf32> to vector<8x128xf32>
    %901 = arith.addf %898, %900 : vector<8x128xf32>
    %902 = math.tanh %901 : vector<8x128xf32>
    %903 = arith.mulf %894, %858 : vector<8x128xf32>
    %904 = arith.mulf %870, %902 : vector<8x128xf32>
    %905 = arith.addf %903, %904 : vector<8x128xf32>
    %c1_742 = arith.constant 1 : index
    %c4_743 = arith.constant 4 : index
    %c0_744 = arith.constant 0 : index
    %c0_745 = arith.constant 0 : index
    %906 = vector.load %arg9[%c1_742, %c4_743, %c0_744, %c0_745] : memref<2x8x8x128xf32, #tpu.memory_space<vmem>>, vector<1x1x8x128xf32>
    %907 = vector.shape_cast %906 : vector<1x1x8x128xf32> to vector<8x128xf32>
    %908 = vector.shape_cast %905 : vector<8x128xf32> to vector<1x1x8x128xf32>
    tpu.vector_store %arg9[%c1_742, %c4_743, %c0_744, %c0_745], %908 {strides = array<i32>} : memref<2x8x8x128xf32, #tpu.memory_space<vmem>>, vector<1x1x8x128xf32>,
    %c1_746 = arith.constant 1 : index
    %c4_747 = arith.constant 4 : index
    %c0_748 = arith.constant 0 : index
    %c0_749 = arith.constant 0 : index
    %909 = vector.load %arg10[%c1_746, %c4_747, %c0_748, %c0_749] : memref<2x8x8x128xf32, #tpu.memory_space<vmem>>, vector<1x1x8x128xf32>
    %910 = vector.shape_cast %909 : vector<1x1x8x128xf32> to vector<8x128xf32>
    %911 = vector.shape_cast %882 : vector<8x128xf32> to vector<1x1x8x128xf32>
    tpu.vector_store %arg10[%c1_746, %c4_747, %c0_748, %c0_749], %911 {strides = array<i32>} : memref<2x8x8x128xf32, #tpu.memory_space<vmem>>, vector<1x1x8x128xf32>,
    %c0_750 = arith.constant 0 : index
    %c640_751 = arith.constant 640 : index
    %912 = vector.load %arg11[%c0_750, %c640_751] : memref<8x1024xf32, #tpu.memory_space<vmem>>, vector<8x128xf32>
    %913 = vector.extract_strided_slice %639 {offsets = [0, 640], sizes = [8, 128], strides = [1, 1]} : vector<8x1024xf32> to vector<8x128xf32>
    %914 = arith.addf %627, %913 : vector<8x128xf32>
    %c1_752 = arith.constant 1 : index
    %c0_753 = arith.constant 0 : index
    %c5_754 = arith.constant 5 : index
    %c0_755 = arith.constant 0 : index
    %c0_756 = arith.constant 0 : index
    %915 = vector.load %arg8[%c1_752, %c0_753, %c5_754, %c0_755, %c0_756] : memref<2x4x8x8x128xf32, #tpu.memory_space<vmem>>, vector<1x1x1x8x128xf32>
    %916 = vector.shape_cast %915 : vector<1x1x1x8x128xf32> to vector<8x128xf32>
    %917 = arith.addf %914, %916 : vector<8x128xf32>
    %cst_757 = arith.constant 5.000000e-01 : f32
    %918 = vector.broadcast %cst_757 : f32 to vector<8x128xf32>
    %919 = arith.mulf %918, %917 : vector<8x128xf32>
    %920 = math.tanh %919 : vector<8x128xf32>
    %cst_758 = arith.constant 5.000000e-01 : f32
    %921 = vector.broadcast %cst_758 : f32 to vector<8x128xf32>
    %922 = arith.mulf %921, %920 : vector<8x128xf32>
    %cst_759 = arith.constant 5.000000e-01 : f32
    %923 = vector.broadcast %cst_759 : f32 to vector<8x128xf32>
    %924 = arith.addf %922, %923 : vector<8x128xf32>
    %925 = vector.extract_strided_slice %640 {offsets = [0, 640], sizes = [8, 128], strides = [1, 1]} : vector<8x1024xf32> to vector<8x128xf32>
    %926 = arith.addf %629, %925 : vector<8x128xf32>
    %c1_760 = arith.constant 1 : index
    %c1_761 = arith.constant 1 : index
    %c5_762 = arith.constant 5 : index
    %c0_763 = arith.constant 0 : index
    %c0_764 = arith.constant 0 : index
    %927 = vector.load %arg8[%c1_760, %c1_761, %c5_762, %c0_763, %c0_764] : memref<2x4x8x8x128xf32, #tpu.memory_space<vmem>>, vector<1x1x1x8x128xf32>
    %928 = vector.shape_cast %927 : vector<1x1x1x8x128xf32> to vector<8x128xf32>
    %929 = arith.addf %926, %928 : vector<8x128xf32>
    %cst_765 = arith.constant 5.000000e-01 : f32
    %930 = vector.broadcast %cst_765 : f32 to vector<8x128xf32>
    %931 = arith.mulf %930, %929 : vector<8x128xf32>
    %932 = math.tanh %931 : vector<8x128xf32>
    %cst_766 = arith.constant 5.000000e-01 : f32
    %933 = vector.broadcast %cst_766 : f32 to vector<8x128xf32>
    %934 = arith.mulf %933, %932 : vector<8x128xf32>
    %cst_767 = arith.constant 5.000000e-01 : f32
    %935 = vector.broadcast %cst_767 : f32 to vector<8x128xf32>
    %936 = arith.addf %934, %935 : vector<8x128xf32>
    %937 = vector.extract_strided_slice %641 {offsets = [0, 640], sizes = [8, 128], strides = [1, 1]} : vector<8x1024xf32> to vector<8x128xf32>
    %938 = arith.addf %631, %937 : vector<8x128xf32>
    %c1_768 = arith.constant 1 : index
    %c2_769 = arith.constant 2 : index
    %c5_770 = arith.constant 5 : index
    %c0_771 = arith.constant 0 : index
    %c0_772 = arith.constant 0 : index
    %939 = vector.load %arg8[%c1_768, %c2_769, %c5_770, %c0_771, %c0_772] : memref<2x4x8x8x128xf32, #tpu.memory_space<vmem>>, vector<1x1x1x8x128xf32>
    %940 = vector.shape_cast %939 : vector<1x1x1x8x128xf32> to vector<8x128xf32>
    %941 = arith.addf %938, %940 : vector<8x128xf32>
    %cst_773 = arith.constant 5.000000e-01 : f32
    %942 = vector.broadcast %cst_773 : f32 to vector<8x128xf32>
    %943 = arith.mulf %942, %941 : vector<8x128xf32>
    %944 = math.tanh %943 : vector<8x128xf32>
    %cst_774 = arith.constant 5.000000e-01 : f32
    %945 = vector.broadcast %cst_774 : f32 to vector<8x128xf32>
    %946 = arith.mulf %945, %944 : vector<8x128xf32>
    %cst_775 = arith.constant 5.000000e-01 : f32
    %947 = vector.broadcast %cst_775 : f32 to vector<8x128xf32>
    %948 = arith.addf %946, %947 : vector<8x128xf32>
    %c1_776 = arith.constant 1 : index
    %c5_777 = arith.constant 5 : index
    %c0_778 = arith.constant 0 : index
    %c0_779 = arith.constant 0 : index
    %949 = vector.load %arg7[%c1_776, %c5_777, %c0_778, %c0_779] : memref<2x8x8x128xf32, #tpu.memory_space<vmem>>, vector<1x1x8x128xf32>
    %950 = vector.shape_cast %949 : vector<1x1x8x128xf32> to vector<8x128xf32>
    %951 = arith.mulf %950, %912 : vector<8x128xf32>
    %952 = arith.addf %633, %951 : vector<8x128xf32>
    %c1_780 = arith.constant 1 : index
    %c3_781 = arith.constant 3 : index
    %c5_782 = arith.constant 5 : index
    %c0_783 = arith.constant 0 : index
    %c0_784 = arith.constant 0 : index
    %953 = vector.load %arg8[%c1_780, %c3_781, %c5_782, %c0_783, %c0_784] : memref<2x4x8x8x128xf32, #tpu.memory_space<vmem>>, vector<1x1x1x8x128xf32>
    %954 = vector.shape_cast %953 : vector<1x1x1x8x128xf32> to vector<8x128xf32>
    %955 = arith.addf %952, %954 : vector<8x128xf32>
    %956 = math.tanh %955 : vector<8x128xf32>
    %957 = arith.mulf %948, %912 : vector<8x128xf32>
    %958 = arith.mulf %924, %956 : vector<8x128xf32>
    %959 = arith.addf %957, %958 : vector<8x128xf32>
    %c1_785 = arith.constant 1 : index
    %c5_786 = arith.constant 5 : index
    %c0_787 = arith.constant 0 : index
    %c0_788 = arith.constant 0 : index
    %960 = vector.load %arg9[%c1_785, %c5_786, %c0_787, %c0_788] : memref<2x8x8x128xf32, #tpu.memory_space<vmem>>, vector<1x1x8x128xf32>
    %961 = vector.shape_cast %960 : vector<1x1x8x128xf32> to vector<8x128xf32>
    %962 = vector.shape_cast %959 : vector<8x128xf32> to vector<1x1x8x128xf32>
    tpu.vector_store %arg9[%c1_785, %c5_786, %c0_787, %c0_788], %962 {strides = array<i32>} : memref<2x8x8x128xf32, #tpu.memory_space<vmem>>, vector<1x1x8x128xf32>,
    %c1_789 = arith.constant 1 : index
    %c5_790 = arith.constant 5 : index
    %c0_791 = arith.constant 0 : index
    %c0_792 = arith.constant 0 : index
    %963 = vector.load %arg10[%c1_789, %c5_790, %c0_791, %c0_792] : memref<2x8x8x128xf32, #tpu.memory_space<vmem>>, vector<1x1x8x128xf32>
    %964 = vector.shape_cast %963 : vector<1x1x8x128xf32> to vector<8x128xf32>
    %965 = vector.shape_cast %936 : vector<8x128xf32> to vector<1x1x8x128xf32>
    tpu.vector_store %arg10[%c1_789, %c5_790, %c0_791, %c0_792], %965 {strides = array<i32>} : memref<2x8x8x128xf32, #tpu.memory_space<vmem>>, vector<1x1x8x128xf32>,
    %c0_793 = arith.constant 0 : index
    %c768_794 = arith.constant 768 : index
    %966 = vector.load %arg11[%c0_793, %c768_794] : memref<8x1024xf32, #tpu.memory_space<vmem>>, vector<8x128xf32>
    %967 = vector.extract_strided_slice %639 {offsets = [0, 768], sizes = [8, 128], strides = [1, 1]} : vector<8x1024xf32> to vector<8x128xf32>
    %968 = arith.addf %627, %967 : vector<8x128xf32>
    %c1_795 = arith.constant 1 : index
    %c0_796 = arith.constant 0 : index
    %c6_797 = arith.constant 6 : index
    %c0_798 = arith.constant 0 : index
    %c0_799 = arith.constant 0 : index
    %969 = vector.load %arg8[%c1_795, %c0_796, %c6_797, %c0_798, %c0_799] : memref<2x4x8x8x128xf32, #tpu.memory_space<vmem>>, vector<1x1x1x8x128xf32>
    %970 = vector.shape_cast %969 : vector<1x1x1x8x128xf32> to vector<8x128xf32>
    %971 = arith.addf %968, %970 : vector<8x128xf32>
    %cst_800 = arith.constant 5.000000e-01 : f32
    %972 = vector.broadcast %cst_800 : f32 to vector<8x128xf32>
    %973 = arith.mulf %972, %971 : vector<8x128xf32>
    %974 = math.tanh %973 : vector<8x128xf32>
    %cst_801 = arith.constant 5.000000e-01 : f32
    %975 = vector.broadcast %cst_801 : f32 to vector<8x128xf32>
    %976 = arith.mulf %975, %974 : vector<8x128xf32>
    %cst_802 = arith.constant 5.000000e-01 : f32
    %977 = vector.broadcast %cst_802 : f32 to vector<8x128xf32>
    %978 = arith.addf %976, %977 : vector<8x128xf32>
    %979 = vector.extract_strided_slice %640 {offsets = [0, 768], sizes = [8, 128], strides = [1, 1]} : vector<8x1024xf32> to vector<8x128xf32>
    %980 = arith.addf %629, %979 : vector<8x128xf32>
    %c1_803 = arith.constant 1 : index
    %c1_804 = arith.constant 1 : index
    %c6_805 = arith.constant 6 : index
    %c0_806 = arith.constant 0 : index
    %c0_807 = arith.constant 0 : index
    %981 = vector.load %arg8[%c1_803, %c1_804, %c6_805, %c0_806, %c0_807] : memref<2x4x8x8x128xf32, #tpu.memory_space<vmem>>, vector<1x1x1x8x128xf32>
    %982 = vector.shape_cast %981 : vector<1x1x1x8x128xf32> to vector<8x128xf32>
    %983 = arith.addf %980, %982 : vector<8x128xf32>
    %cst_808 = arith.constant 5.000000e-01 : f32
    %984 = vector.broadcast %cst_808 : f32 to vector<8x128xf32>
    %985 = arith.mulf %984, %983 : vector<8x128xf32>
    %986 = math.tanh %985 : vector<8x128xf32>
    %cst_809 = arith.constant 5.000000e-01 : f32
    %987 = vector.broadcast %cst_809 : f32 to vector<8x128xf32>
    %988 = arith.mulf %987, %986 : vector<8x128xf32>
    %cst_810 = arith.constant 5.000000e-01 : f32
    %989 = vector.broadcast %cst_810 : f32 to vector<8x128xf32>
    %990 = arith.addf %988, %989 : vector<8x128xf32>
    %991 = vector.extract_strided_slice %641 {offsets = [0, 768], sizes = [8, 128], strides = [1, 1]} : vector<8x1024xf32> to vector<8x128xf32>
    %992 = arith.addf %631, %991 : vector<8x128xf32>
    %c1_811 = arith.constant 1 : index
    %c2_812 = arith.constant 2 : index
    %c6_813 = arith.constant 6 : index
    %c0_814 = arith.constant 0 : index
    %c0_815 = arith.constant 0 : index
    %993 = vector.load %arg8[%c1_811, %c2_812, %c6_813, %c0_814, %c0_815] : memref<2x4x8x8x128xf32, #tpu.memory_space<vmem>>, vector<1x1x1x8x128xf32>
    %994 = vector.shape_cast %993 : vector<1x1x1x8x128xf32> to vector<8x128xf32>
    %995 = arith.addf %992, %994 : vector<8x128xf32>
    %cst_816 = arith.constant 5.000000e-01 : f32
    %996 = vector.broadcast %cst_816 : f32 to vector<8x128xf32>
    %997 = arith.mulf %996, %995 : vector<8x128xf32>
    %998 = math.tanh %997 : vector<8x128xf32>
    %cst_817 = arith.constant 5.000000e-01 : f32
    %999 = vector.broadcast %cst_817 : f32 to vector<8x128xf32>
    %1000 = arith.mulf %999, %998 : vector<8x128xf32>
    %cst_818 = arith.constant 5.000000e-01 : f32
    %1001 = vector.broadcast %cst_818 : f32 to vector<8x128xf32>
    %1002 = arith.addf %1000, %1001 : vector<8x128xf32>
    %c1_819 = arith.constant 1 : index
    %c6_820 = arith.constant 6 : index
    %c0_821 = arith.constant 0 : index
    %c0_822 = arith.constant 0 : index
    %1003 = vector.load %arg7[%c1_819, %c6_820, %c0_821, %c0_822] : memref<2x8x8x128xf32, #tpu.memory_space<vmem>>, vector<1x1x8x128xf32>
    %1004 = vector.shape_cast %1003 : vector<1x1x8x128xf32> to vector<8x128xf32>
    %1005 = arith.mulf %1004, %966 : vector<8x128xf32>
    %1006 = arith.addf %633, %1005 : vector<8x128xf32>
    %c1_823 = arith.constant 1 : index
    %c3_824 = arith.constant 3 : index
    %c6_825 = arith.constant 6 : index
    %c0_826 = arith.constant 0 : index
    %c0_827 = arith.constant 0 : index
    %1007 = vector.load %arg8[%c1_823, %c3_824, %c6_825, %c0_826, %c0_827] : memref<2x4x8x8x128xf32, #tpu.memory_space<vmem>>, vector<1x1x1x8x128xf32>
    %1008 = vector.shape_cast %1007 : vector<1x1x1x8x128xf32> to vector<8x128xf32>
    %1009 = arith.addf %1006, %1008 : vector<8x128xf32>
    %1010 = math.tanh %1009 : vector<8x128xf32>
    %1011 = arith.mulf %1002, %966 : vector<8x128xf32>
    %1012 = arith.mulf %978, %1010 : vector<8x128xf32>
    %1013 = arith.addf %1011, %1012 : vector<8x128xf32>
    %c1_828 = arith.constant 1 : index
    %c6_829 = arith.constant 6 : index
    %c0_830 = arith.constant 0 : index
    %c0_831 = arith.constant 0 : index
    %1014 = vector.load %arg9[%c1_828, %c6_829, %c0_830, %c0_831] : memref<2x8x8x128xf32, #tpu.memory_space<vmem>>, vector<1x1x8x128xf32>
    %1015 = vector.shape_cast %1014 : vector<1x1x8x128xf32> to vector<8x128xf32>
    %1016 = vector.shape_cast %1013 : vector<8x128xf32> to vector<1x1x8x128xf32>
    tpu.vector_store %arg9[%c1_828, %c6_829, %c0_830, %c0_831], %1016 {strides = array<i32>} : memref<2x8x8x128xf32, #tpu.memory_space<vmem>>, vector<1x1x8x128xf32>,
    %c1_832 = arith.constant 1 : index
    %c6_833 = arith.constant 6 : index
    %c0_834 = arith.constant 0 : index
    %c0_835 = arith.constant 0 : index
    %1017 = vector.load %arg10[%c1_832, %c6_833, %c0_834, %c0_835] : memref<2x8x8x128xf32, #tpu.memory_space<vmem>>, vector<1x1x8x128xf32>
    %1018 = vector.shape_cast %1017 : vector<1x1x8x128xf32> to vector<8x128xf32>
    %1019 = vector.shape_cast %990 : vector<8x128xf32> to vector<1x1x8x128xf32>
    tpu.vector_store %arg10[%c1_832, %c6_833, %c0_834, %c0_835], %1019 {strides = array<i32>} : memref<2x8x8x128xf32, #tpu.memory_space<vmem>>, vector<1x1x8x128xf32>,
    %c0_836 = arith.constant 0 : index
    %c896_837 = arith.constant 896 : index
    %1020 = vector.load %arg11[%c0_836, %c896_837] : memref<8x1024xf32, #tpu.memory_space<vmem>>, vector<8x128xf32>
    %1021 = vector.extract_strided_slice %639 {offsets = [0, 896], sizes = [8, 128], strides = [1, 1]} : vector<8x1024xf32> to vector<8x128xf32>
    %1022 = arith.addf %627, %1021 : vector<8x128xf32>
    %c1_838 = arith.constant 1 : index
    %c0_839 = arith.constant 0 : index
    %c7_840 = arith.constant 7 : index
    %c0_841 = arith.constant 0 : index
    %c0_842 = arith.constant 0 : index
    %1023 = vector.load %arg8[%c1_838, %c0_839, %c7_840, %c0_841, %c0_842] : memref<2x4x8x8x128xf32, #tpu.memory_space<vmem>>, vector<1x1x1x8x128xf32>
    %1024 = vector.shape_cast %1023 : vector<1x1x1x8x128xf32> to vector<8x128xf32>
    %1025 = arith.addf %1022, %1024 : vector<8x128xf32>
    %cst_843 = arith.constant 5.000000e-01 : f32
    %1026 = vector.broadcast %cst_843 : f32 to vector<8x128xf32>
    %1027 = arith.mulf %1026, %1025 : vector<8x128xf32>
    %1028 = math.tanh %1027 : vector<8x128xf32>
    %cst_844 = arith.constant 5.000000e-01 : f32
    %1029 = vector.broadcast %cst_844 : f32 to vector<8x128xf32>
    %1030 = arith.mulf %1029, %1028 : vector<8x128xf32>
    %cst_845 = arith.constant 5.000000e-01 : f32
    %1031 = vector.broadcast %cst_845 : f32 to vector<8x128xf32>
    %1032 = arith.addf %1030, %1031 : vector<8x128xf32>
    %1033 = vector.extract_strided_slice %640 {offsets = [0, 896], sizes = [8, 128], strides = [1, 1]} : vector<8x1024xf32> to vector<8x128xf32>
    %1034 = arith.addf %629, %1033 : vector<8x128xf32>
    %c1_846 = arith.constant 1 : index
    %c1_847 = arith.constant 1 : index
    %c7_848 = arith.constant 7 : index
    %c0_849 = arith.constant 0 : index
    %c0_850 = arith.constant 0 : index
    %1035 = vector.load %arg8[%c1_846, %c1_847, %c7_848, %c0_849, %c0_850] : memref<2x4x8x8x128xf32, #tpu.memory_space<vmem>>, vector<1x1x1x8x128xf32>
    %1036 = vector.shape_cast %1035 : vector<1x1x1x8x128xf32> to vector<8x128xf32>
    %1037 = arith.addf %1034, %1036 : vector<8x128xf32>
    %cst_851 = arith.constant 5.000000e-01 : f32
    %1038 = vector.broadcast %cst_851 : f32 to vector<8x128xf32>
    %1039 = arith.mulf %1038, %1037 : vector<8x128xf32>
    %1040 = math.tanh %1039 : vector<8x128xf32>
    %cst_852 = arith.constant 5.000000e-01 : f32
    %1041 = vector.broadcast %cst_852 : f32 to vector<8x128xf32>
    %1042 = arith.mulf %1041, %1040 : vector<8x128xf32>
    %cst_853 = arith.constant 5.000000e-01 : f32
    %1043 = vector.broadcast %cst_853 : f32 to vector<8x128xf32>
    %1044 = arith.addf %1042, %1043 : vector<8x128xf32>
    %1045 = vector.extract_strided_slice %641 {offsets = [0, 896], sizes = [8, 128], strides = [1, 1]} : vector<8x1024xf32> to vector<8x128xf32>
    %1046 = arith.addf %631, %1045 : vector<8x128xf32>
    %c1_854 = arith.constant 1 : index
    %c2_855 = arith.constant 2 : index
    %c7_856 = arith.constant 7 : index
    %c0_857 = arith.constant 0 : index
    %c0_858 = arith.constant 0 : index
    %1047 = vector.load %arg8[%c1_854, %c2_855, %c7_856, %c0_857, %c0_858] : memref<2x4x8x8x128xf32, #tpu.memory_space<vmem>>, vector<1x1x1x8x128xf32>
    %1048 = vector.shape_cast %1047 : vector<1x1x1x8x128xf32> to vector<8x128xf32>
    %1049 = arith.addf %1046, %1048 : vector<8x128xf32>
    %cst_859 = arith.constant 5.000000e-01 : f32
    %1050 = vector.broadcast %cst_859 : f32 to vector<8x128xf32>
    %1051 = arith.mulf %1050, %1049 : vector<8x128xf32>
    %1052 = math.tanh %1051 : vector<8x128xf32>
    %cst_860 = arith.constant 5.000000e-01 : f32
    %1053 = vector.broadcast %cst_860 : f32 to vector<8x128xf32>
    %1054 = arith.mulf %1053, %1052 : vector<8x128xf32>
    %cst_861 = arith.constant 5.000000e-01 : f32
    %1055 = vector.broadcast %cst_861 : f32 to vector<8x128xf32>
    %1056 = arith.addf %1054, %1055 : vector<8x128xf32>
    %c1_862 = arith.constant 1 : index
    %c7_863 = arith.constant 7 : index
    %c0_864 = arith.constant 0 : index
    %c0_865 = arith.constant 0 : index
    %1057 = vector.load %arg7[%c1_862, %c7_863, %c0_864, %c0_865] : memref<2x8x8x128xf32, #tpu.memory_space<vmem>>, vector<1x1x8x128xf32>
    %1058 = vector.shape_cast %1057 : vector<1x1x8x128xf32> to vector<8x128xf32>
    %1059 = arith.mulf %1058, %1020 : vector<8x128xf32>
    %1060 = arith.addf %633, %1059 : vector<8x128xf32>
    %c1_866 = arith.constant 1 : index
    %c3_867 = arith.constant 3 : index
    %c7_868 = arith.constant 7 : index
    %c0_869 = arith.constant 0 : index
    %c0_870 = arith.constant 0 : index
    %1061 = vector.load %arg8[%c1_866, %c3_867, %c7_868, %c0_869, %c0_870] : memref<2x4x8x8x128xf32, #tpu.memory_space<vmem>>, vector<1x1x1x8x128xf32>
    %1062 = vector.shape_cast %1061 : vector<1x1x1x8x128xf32> to vector<8x128xf32>
    %1063 = arith.addf %1060, %1062 : vector<8x128xf32>
    %1064 = math.tanh %1063 : vector<8x128xf32>
    %1065 = arith.mulf %1056, %1020 : vector<8x128xf32>
    %1066 = arith.mulf %1032, %1064 : vector<8x128xf32>
    %1067 = arith.addf %1065, %1066 : vector<8x128xf32>
    %c1_871 = arith.constant 1 : index
    %c7_872 = arith.constant 7 : index
    %c0_873 = arith.constant 0 : index
    %c0_874 = arith.constant 0 : index
    %1068 = vector.load %arg9[%c1_871, %c7_872, %c0_873, %c0_874] : memref<2x8x8x128xf32, #tpu.memory_space<vmem>>, vector<1x1x8x128xf32>
    %1069 = vector.shape_cast %1068 : vector<1x1x8x128xf32> to vector<8x128xf32>
    %1070 = vector.shape_cast %1067 : vector<8x128xf32> to vector<1x1x8x128xf32>
    tpu.vector_store %arg9[%c1_871, %c7_872, %c0_873, %c0_874], %1070 {strides = array<i32>} : memref<2x8x8x128xf32, #tpu.memory_space<vmem>>, vector<1x1x8x128xf32>,
    %c1_875 = arith.constant 1 : index
    %c7_876 = arith.constant 7 : index
    %c0_877 = arith.constant 0 : index
    %c0_878 = arith.constant 0 : index
    %1071 = vector.load %arg10[%c1_875, %c7_876, %c0_877, %c0_878] : memref<2x8x8x128xf32, #tpu.memory_space<vmem>>, vector<1x1x8x128xf32>
    %1072 = vector.shape_cast %1071 : vector<1x1x8x128xf32> to vector<8x128xf32>
    %1073 = vector.shape_cast %1044 : vector<8x128xf32> to vector<1x1x8x128xf32>
    tpu.vector_store %arg10[%c1_875, %c7_876, %c0_877, %c0_878], %1073 {strides = array<i32>} : memref<2x8x8x128xf32, #tpu.memory_space<vmem>>, vector<1x1x8x128xf32>,
    return
  }
  func.func @transform_0(%arg0: i32, %arg1: i32, %arg2: i32) -> (i32, i32) {
    %c0_i32 = arith.constant 0 : i32
    %c0_i32_0 = arith.constant 0 : i32
    %c0_i32_1 = arith.constant 0 : i32
    return %c0_i32, %c0_i32_0 : i32, i32
  }
  func.func @transform_1(%arg0: i32, %arg1: i32, %arg2: i32) -> (i32, i32, i32, i32) {
    %c0_i32 = arith.constant 0 : i32
    %c0_i32_0 = arith.constant 0 : i32
    %c0_i32_1 = arith.constant 0 : i32
    return %arg0, %arg2, %c0_i32, %c0_i32_0 : i32, i32, i32, i32
  }
  func.func @transform_2(%arg0: i32, %arg1: i32, %arg2: i32) -> (i32, i32, i32, i32, i32) {
    %c0_i32 = arith.constant 0 : i32
    %c0_i32_0 = arith.constant 0 : i32
    %c0_i32_1 = arith.constant 0 : i32
    %c0_i32_2 = arith.constant 0 : i32
    return %arg0, %c0_i32, %c0_i32_0, %arg1, %c0_i32_1 : i32, i32, i32, i32, i32
  }
  func.func @transform_3(%arg0: i32, %arg1: i32, %arg2: i32) -> (i32, i32, i32, i32) {
    %c0_i32 = arith.constant 0 : i32
    %c0_i32_0 = arith.constant 0 : i32
    %c0_i32_1 = arith.constant 0 : i32
    return %arg0, %c0_i32, %arg1, %c0_i32_0 : i32, i32, i32, i32
  }
  func.func @transform_4(%arg0: i32, %arg1: i32, %arg2: i32) -> (i32, i32, i32, i32) {
    %c0_i32 = arith.constant 0 : i32
    %c0_i32_0 = arith.constant 0 : i32
    return %arg0, %arg2, %arg1, %c0_i32 : i32, i32, i32, i32
  }
  func.func @transform_5(%arg0: i32, %arg1: i32, %arg2: i32) -> (i32, i32, i32, i32, i32) {
    %c0_i32 = arith.constant 0 : i32
    %c0_i32_0 = arith.constant 0 : i32
    %c0_i32_1 = arith.constant 0 : i32
    return %arg0, %c0_i32, %arg2, %arg1, %c0_i32_0 : i32, i32, i32, i32, i32
  }
  func.func @transform_6(%arg0: i32, %arg1: i32, %arg2: i32) -> (i32, i32, i32, i32) {
    %c0_i32 = arith.constant 0 : i32
    %c0_i32_0 = arith.constant 0 : i32
    return %arg0, %arg2, %arg1, %c0_i32 : i32, i32, i32, i32
  }
  func.func @transform_7(%arg0: i32, %arg1: i32, %arg2: i32) -> (i32, i32, i32, i32) {
    %c0_i32 = arith.constant 0 : i32
    %c0_i32_0 = arith.constant 0 : i32
    return %arg0, %arg2, %arg1, %c0_i32 : i32, i32, i32, i32
  }
}

</mosaic_0001>

<bundles_post_ra>
// kernel: hawkes_forward.1
= control target key start
LH: loop header
LB: loop body
LE: loop exit
PB: predicated region body
PF: predicated region fallthrough
CT: control target
= control target key end

     0   :  { %13 = vsyncpa [#allocation5], 0  ;;  %s2488_s0 = inlined_call_operand.vmem [shape: f32[2,8], index: 0, kind: input, shape index: {}]   ;;  %s2489_s1 = inlined_call_operand.vmem [shape: f32[2,8,8,128], index: 1, kind: input, shape index: {}]   ;;  %s2490_s2 = inlined_call_operand.hbm [shape: f32[2,4,8,8,128], index: 2, kind: input, shape index: {}]   ;;  %s2491_s3 = inlined_call_operand.vmem [shape: f32[2,3,8,8], index: 3, kind: input, shape index: {}]   ;;  %s2492_s4 = inlined_call_operand.vmem [shape: f32[2,8,8,128], index: 4, kind: input, shape index: {}]   ;;  %s2493_s5 = inlined_call_operand.hbm [shape: f32[2,4,8,8,128], index: 5, kind: input, shape index: {}]   ;;  %s2494_s6 = inlined_call_operand.vmem [shape: f32[2,8,8,128], index: 6, kind: output, shape index: {0}]   ;;  %s2495_s7 = inlined_call_operand.vmem [shape: f32[2,8,8,128], index: 7, kind: output, shape index: {1}]  }
   0x1   :  { %14 = vsyncpa [#allocation4], 0  ;;  %s21_s26 = sshll.u32 %s2488_s0, 4  ;;  %s22_s26 = int_to_ptr.vmem [resolvable:$true] %s21_s26 }
   0x2   :  { %15 = vsyncpa [#allocation8], 0  ;;  %s31_s29 = sshll.u32 %s2490_s2, 4  ;;  %s1844_s30 = smov [#allocation3]   ;;  %s32_s29 = int_to_ptr.hbm [resolvable:$true] %s31_s29 }
   0x3   :  { %24 = dma.vmem_to_smem %s22_s26, 32, %s1844_s30, [#allocation5]  }
   0x4   :  { %s1845_s8 = smov [#allocation6]   ;;  %s1846_s10 = smov 128  }
   0x5   :  { %s33_s9 = sshll.u32 %s1845_s8, 4  ;;  %s1847_s11 = smov 8   ;;  %s34_s9 = int_to_ptr.vmem [resolvable:$true] %s33_s9 }
   0x6   :  { %39 = dma.hbm_to_vmem [thread:$0]  %s32_s29, 8192, %s34_s9, [#allocation4], %s1846_s10, %s1846_s10, %s1847_s11  }
   0x7   :  { %s48_s14 = sshll.u32 %s2493_s5, 4  ;;  %s1848_s0 = smov [#allocation7]   ;;  %s49_s14 = int_to_ptr.hbm [resolvable:$true] %s48_s14 }
   0x8   :  { %s50_s15 = sshll.u32 %s1848_s0, 4  ;;  %s51_s15 = int_to_ptr.vmem [resolvable:$true] %s50_s15 }
   0x9   :  { %56 = dma.hbm_to_vmem [thread:$0]  %s49_s14, 8192, %s51_s15, [#allocation8], %s1846_s10, %s1846_s10, %s1847_s11  }
   0xa   :  { %1838 = dma.done.wait [#allocation5], 32  }
   0xb   :  { %1839 = vsyncadd [#allocation5], 4294967264 }
   0xc   :  { %1840 = dma.done.wait [#allocation4], 8192  }
   0xd   :  { %1841 = vsyncadd [#allocation4], 4294959104 }
   0xe   :  { %1842 = dma.done.wait [#allocation8], 8192  }
   0xf   :  { %1843 = vsyncadd [#allocation8], 4294959104 }
  0x10   :  { %69 = sfence }
  0x11   :  { %v71_v0 = vld [vmem:[%s2489_s1] sm:$0xff]  ;;  %v1487_v1 = vld [vmem:[%s2489_s1 + $0x8] sm:$0xff]  ;;  %v1488_v2 = vld [vmem:[%s2489_s1 + $0x10] sm:$0xff]  ;;  %vm236_vm0 = vcmask 64512   ;;  %s1494_s8 = sld [smem:[#allocation3 + $0x1]] }
  0x12   :  { %1618 = vtanh.f32 %v71_v0  ;;  %v1489_v3 = vld [vmem:[%s2489_s1 + $0x18] sm:$0xff]  ;;  %v1492_v4 = vld [vmem:[%s2489_s1 + $0x30] sm:$0xff]  ;;  %v1490_v6 = vld [vmem:[%s2489_s1 + $0x20] sm:$0xff]  ;;  %s1495_s9 = sld [smem:[#allocation3 + $0x2]] }
  0x13   :  { %1620 = vtanh.f32 %v1487_v1  ;;  %v1493_v5 = vld [vmem:[%s2489_s1 + $0x38] sm:$0xff]  ;;  %v1491_v7 = vld [vmem:[%s2489_s1 + $0x28] sm:$0xff]  ;;  %v1925_v8 = vld [vmem:[%s2491_s3] sm:$0xff]  ;;  %s1496_s10 = sld [smem:[#allocation3 + $0x3]] }
  0x14   :  { %1622 = vtanh.f32 %v1488_v2  ;;  %v1548_v9 = vld [vmem:[%s2489_s1 + $0x50] sm:$0xff]  ;;  %v1549_v11 = vld [vmem:[%s2489_s1 + $0x58] sm:$0xff]  ;;  %v1546_v13 = vld [vmem:[%s2489_s1 + $0x40] sm:$0xff]  ;;  %s1497_s11 = sld [smem:[#allocation3 + $0x4]] }
  0x15   :  { %1624 = vtanh.f32 %v1489_v3  ;;  %v1547_v15 = vld [vmem:[%s2489_s1 + $0x48] sm:$0xff]  ;;  %v227_v26 = vld [vmem:[%s2491_s3 + $0x10] sm:$0xff]  ;;  %v1553_v28 = vld [vmem:[%s2489_s1 + $0x78] sm:$0xff]  ;;  %s1498_s12 = sld [smem:[#allocation3 + $0x5]] }
  0x16   :  { %1626 = vtanh.f32 %v1492_v4  ;;  %v226_v21 = vld [vmem:[%s2491_s3 + $0x8] sm:$0xff]  ;;  %v1552_v27 = vld [vmem:[%s2489_s1 + $0x70] sm:$0xff]  ;;  %v1550_v29 = vld [vmem:[%s2489_s1 + $0x60] sm:$0xff]  ;;  %s1499_s13 = sld [smem:[#allocation3 + $0x6]] }
  0x17   :  { %1628 = vtanh.f32 %v1493_v5  ;;  %v1551_v30 = vld [vmem:[%s2489_s1 + $0x68] sm:$0xff]  ;;  %v1562_v35 = vld [vmem:[%s2491_s3 + $0x18] sm:$0xff]  ;;  %v1563_v36 = vld [vmem:[%s2491_s3 + $0x20] sm:$0xff]  ;;  %v120_v43 = vstv %s1494_s8  ;;  %s1500_s14 = sld [smem:[#allocation3 + $0x7]] }
  0x18   :  { %v1930_v10 = vpop.eup %1618  ;;  %1630 = vtanh.f32 %v1490_v6  ;;  %v1564_v37 = vld [vmem:[%s2491_s3 + $0x28] sm:$0xff]  ;;  %s103_s3 = sld [smem:[#allocation3]]  ;;  %v107_v38 = vld [vmem:[#allocation6 + $0xc0] sm:$0xff]  ;;  %v135_v46 = vld [vmem:[#allocation6 + $0xd0] sm:$0xff]  ;;  %v136_v50 = vstv %s1495_s9 }
  0x19   :  { %v1935_v12 = vpop.eup %1620  ;;  %261 = vmatpush.msra.mxu0 %v1930_v10  ;;  %1632 = vtanh.f32 %v1491_v7  ;;  %v119_v39 = vld [vmem:[#allocation6 + $0xc8] sm:$0xff]  ;;  %v104_v40 = vld [vmem:[#allocation6] sm:$0xff]  ;;  %v132_v49 = vld [vmem:[#allocation6 + $0x10] sm:$0xff]  ;;  %v140_v52 = vmul.f32 %v136_v50, %v135_v46  ;;  %v152_v57 = vstv %s1496_s10  ;;  %s2113_s1 = sld [smem:[#allocation3 + $0x80]] }
  0x1a   :  { %v1941_v14 = vpop.eup %1622  ;;  %287 = vmatpush.msra.mxu1 %v1935_v12  ;;  %1501 = vmatmul.msk.f32.vlgmr.msra.gmra.mxu0 %vm236_vm0, %v1925_v8  ;;  %1634 = vtanh.f32 %v1548_v9  ;;  %v116_v42 = vld [vmem:[#allocation6 + $0x8] sm:$0xff]  ;;  %v124_v45 = vmul.f32 %v120_v43, %v119_v39  ;;  %v151_v53 = vld [vmem:[#allocation6 + $0xd8] sm:$0xff]  ;;  %v137_v55 = vmul.f32 %v136_v50, %v132_v49  ;;  %v105_v58 = vld [vmem:[#allocation6 + $0x40] sm:$0xff]  ;;  %v168_v4 = vstv %s1497_s11  ;;  %s2122_s28 = sld [smem:[#allocation3 + $0x81]] }
  0x1b   :  { %v1949_v16 = vpop.eup %1624  ;;  %313 = vmatpush.msra.mxu2 %v1941_v14  ;;  %1504 = vmatmul.msk.f32.vlgmr.msra.gmra.mxu1 %vm236_vm0, %v1925_v8  ;;  %1636 = vtanh.f32 %v1549_v11  ;;  %v121_v48 = vmul.f32 %v120_v43, %v116_v42  ;;  %v148_v56 = vld [vmem:[#allocation6 + $0x18] sm:$0xff]  ;;  %v117_v59 = vld [vmem:[#allocation6 + $0x48] sm:$0xff]  ;;  %v156_v61 = vmul.f32 %v152_v57, %v151_v53  ;;  %v167_v62 = vld [vmem:[#allocation6 + $0xe0] sm:$0xff]  ;;  %s2135_s29 = sld [smem:[#allocation3 + $0x82]] }
  0x1c   :  { %v1954_v17 = vpop.eup %1626  ;;  %339 = vmatpush.msra.mxu3 %v1949_v16  ;;  %1507 = vmatmul.msk.f32.vlgmr.msra.gmra.mxu2 %vm236_vm0, %v1925_v8  ;;  %1638 = vtanh.f32 %v1546_v13  ;;  %v153_v0 = vmul.f32 %v152_v57, %v148_v56  ;;  %v122_v2 = vmul.f32 %v120_v43, %v117_v59  ;;  %v164_v3 = vld [vmem:[#allocation6 + $0x20] sm:$0xff]  ;;  %v133_v5 = vld [vmem:[#allocation6 + $0x50] sm:$0xff]  ;;  %v172_v7 = vmul.f32 %v168_v4, %v167_v62  ;;  %v118_v9 = vld [vmem:[#allocation6 + $0x88] sm:$0xff]  ;;  %s2162_s30 = sld [smem:[#allocation3 + $0x83]] }
  0x1d   :  { %v1959_v18 = vpop.eup %1628  ;;  %1510 = vmatmul.msk.f32.vlgmr.msra.gmra.mxu3 %vm236_vm0, %v1925_v8  ;;  %417 = vmatpush.msrb.mxu2 %v1954_v17  ;;  %1640 = vtanh.f32 %v1547_v15  ;;  %v183_v11 = vld [vmem:[#allocation6 + $0xe8] sm:$0xff]  ;;  %v169_v15 = vmul.f32 %v168_v4, %v164_v3  ;;  %v199_v39 = vld [vmem:[#allocation6 + $0xf0] sm:$0xff]  ;;  %v212_v59 = vld [vmem:[#allocation6 + $0x38] sm:$0xff]  ;;  %s2186_s9 = sld [smem:[#allocation3 + $0x84]] }
  0x1e   :  { %v1964_v19 = vpop.eup %1630  ;;  %443 = vmatpush.msrb.mxu3 %v1959_v18  ;;  %1642 = vtanh.f32 %v1552_v27  ;;  %v108_v41 = vstv %s103_s3  ;;  %v180_v27 = vld [vmem:[#allocation6 + $0x28] sm:$0xff]  ;;  %v196_v46 = vld [vmem:[#allocation6 + $0x30] sm:$0xff]  ;;  %s2210_s15 = sld [smem:[#allocation3 + $0x85]] }
  0x1f   :  { %v1967_v20 = vpop.eup %1632  ;;  %365 = vmatpush.msrb.mxu0 %v1964_v19  ;;  %1644 = vtanh.f32 %v1553_v28  ;;  %v112_v44 = vmul.f32 %v108_v41, %v107_v38  ;;  %v109_v47 = vmul.f32 %v108_v41, %v104_v40  ;;  %v110_v1 = vmul.f32 %v108_v41, %v105_v58  ;;  %v134_v38 = vld [vmem:[#allocation6 + $0x90] sm:$0xff]  ;;  %s2234_s5 = sld [smem:[#allocation3 + $0x86]] }
  0x20   :  { %v1973_v22 = vpop.eup %1634  ;;  %391 = vmatpush.msrb.mxu1 %v1967_v20  ;;  %1646 = vtanh.f32 %v1550_v29  ;;  %v184_v28 = vstv %s1498_s12  ;;  %v149_v29 = vld [vmem:[#allocation6 + $0x58] sm:$0xff]  ;;  %s2238_s19 = sld [smem:[#allocation3 + $0x87]] }
  0x21   :  { %v1976_v23 = vpop.eup %1636  ;;  %1015 = vmatpush.msra.mxu2 %v1973_v22  ;;  %1648 = vtanh.f32 %v1551_v30  ;;  %v128_v51 = vadd.f32 %v124_v45, %v112_v44  ;;  %v125_v54 = vadd.f32 %v121_v48, %v109_v47  ;;  %v185_v42 = vmul.f32 %v184_v28, %v180_v27  ;;  %v165_v48 = vld [vmem:[#allocation6 + $0x60] sm:$0xff]  ;;  %v1528_v27 = vld [vmem:[%s2492_s4 + $0x10] sm:$0xff] }
  0x22   :  { %v1979_v24 = vpop.eup %1638  ;;  %1502 = vmatmul.msk.f32.gmra.mxu0 %vm236_vm0, %v226_v21  ;;  %1041 = vmatpush.msra.mxu3 %v1976_v23  ;;  %v154_v45 = vmul.f32 %v152_v57, %v149_v29  ;;  %v200_v47 = vstv %s1499_s13  ;;  %v170_v58 = vmul.f32 %v168_v4, %v165_v48  ;;  %v198_v48 = vld [vmem:[#allocation6 + $0xb0] sm:$0xff] }
  0x23   :  { %v1983_v25 = vpop.eup %1640  ;;  %1505 = vmatmul.msk.f32.gmra.mxu1 %vm236_vm0, %v226_v21  ;;  %963 = vmatpush.msra.mxu0 %v1979_v24  ;;  %v144_v60 = vadd.f32 %v140_v52, %v128_v51  ;;  %v141_v63 = vadd.f32 %v137_v55, %v125_v54  ;;  %v139_v51 = vmul.f32 %v136_v50, %v134_v38  ;;  %v150_v54 = vld [vmem:[#allocation6 + $0x98] sm:$0xff] }
  0x24   :  { %1508 = vmatmul.msk.f32.gmra.mxu2 %vm236_vm0, %v226_v21  ;;  %989 = vmatpush.msra.mxu1 %v1983_v25  ;;  %v2013_v31 = vpop.eup %1642  ;;  %v204_v53 = vmul.f32 %v200_v47, %v199_v39  ;;  %v215_v55 = vld [vmem:[#allocation6 + $0xf8] sm:$0xff] }
  0x25   :  { %1511 = vmatmul.msk.f32.gmra.mxu3 %vm236_vm0, %v226_v21  ;;  %v2017_v32 = vpop.eup %1644  ;;  %v160_v6 = vadd.f32 %v156_v61, %v144_v60  ;;  %v157_v13 = vadd.f32 %v153_v0, %v141_v63  ;;  %v2070_v60 = vstv %s1500_s14  ;;  %v181_v61 = vld [vmem:[#allocation6 + $0x68] sm:$0xff]  ;;  %v155_v63 = vmul.f32 %v152_v57, %v150_v54 }
  0x26   :  { %v2022_v33 = vpop.eup %1646 }
  0x27   :  { %v2025_v34 = vpop.eup %1648  ;;  %v173_v40 = vadd.f32 %v169_v15, %v157_v13 }
  0x29   :  { %v189_v56 = vadd.f32 %v185_v42, %v173_v40  ;;  %v557_v40 = vmul.f32 %v1941_v14, %v1528_v27 }
  0x2a   :  { %1503 = vmatmul.msk.f32.gmra.mxu0 %vm236_vm0, %v227_v26 }
  0x2b   :  { %1506 = vmatmul.msk.f32.gmra.mxu1 %vm236_vm0, %v227_v26 }
  0x2c   :  { %1509 = vmatmul.msk.f32.gmra.mxu2 %vm236_vm0, %v227_v26 }
  0x2d   :  { %1512 = vmatmul.msk.f32.gmra.mxu3 %vm236_vm0, %v227_v26 }
  0x32   :  { %1513 = vmatmul.msk.f32.vlgmr.msrb.gmra.mxu0 %vm236_vm0, %v1925_v8 }
  0x33   :  { %1516 = vmatmul.msk.f32.vlgmr.msrb.gmra.mxu1 %vm236_vm0, %v1925_v8  ;;  %1067 = vmatpush.msrb.mxu0 %v2022_v33 }
  0x34   :  { %1519 = vmatmul.msk.f32.vlgmr.msrb.gmra.mxu2 %vm236_vm0, %v1925_v8  ;;  %1093 = vmatpush.msrb.mxu1 %v2025_v34 }
  0x35   :  { %1522 = vmatmul.msk.f32.vlgmr.msrb.gmra.mxu3 %vm236_vm0, %v1925_v8  ;;  %1119 = vmatpush.msrb.mxu2 %v2013_v31  ;;  %v106_v8 = vld [vmem:[#allocation6 + $0x80] sm:$0xff] }
  0x36   :  { %1145 = vmatpush.msrb.mxu3 %v2017_v32  ;;  %v111_v30 = vmul.f32 %v108_v41, %v106_v8  ;;  %v201_v41 = vmul.f32 %v200_v47, %v196_v46  ;;  %v186_v8 = vmul.f32 %v184_v28, %v181_v61  ;;  %v203_v61 = vmul.f32 %v200_v47, %v198_v48 }
  0x38   :  { %v205_v3 = vadd.f32 %v201_v41, %v189_v56 }
  0x3a   :  { %1514 = vmatmul.msk.f32.gmra.mxu0 %vm236_vm0, %v226_v21 }
  0x3b   :  { %1517 = vmatmul.msk.f32.gmra.mxu1 %vm236_vm0, %v226_v21 }
  0x3c   :  { %1520 = vmatmul.msk.f32.gmra.mxu2 %vm236_vm0, %v226_v21 }
  0x3d   :  { %1523 = vmatmul.msk.f32.gmra.mxu3 %vm236_vm0, %v226_v21  ;;  %v126_v21 = vadd.f32 %v122_v2, %v110_v1  ;;  %v220_v1 = vmul.f32 %v2070_v60, %v215_v55  ;;  %v166_v2 = vld [vmem:[#allocation6 + $0xa0] sm:$0xff] }
  0x3e   :  { %v171_v57 = vmul.f32 %v168_v4, %v166_v2  ;;  %v213_v4 = vld [vmem:[#allocation6 + $0x78] sm:$0xff] }
  0x42   :  { %1515 = vmatmul.msk.f32.gmra.mxu0 %vm236_vm0, %v227_v26 }
  0x43   :  { %1518 = vmatmul.msk.f32.gmra.mxu1 %vm236_vm0, %v227_v26 }
  0x44   :  { %1521 = vmatmul.msk.f32.gmra.mxu2 %vm236_vm0, %v227_v26 }
  0x45   :  { %1524 = vmatmul.msk.f32.gmra.mxu3 %vm236_vm0, %v227_v26  ;;  %v138_v26 = vmul.f32 %v136_v50, %v133_v5  ;;  %v478_v50 = vld [vmem:[%s2492_s4] sm:$0xff]  ;;  %v217_v5 = vmul.f32 %v2070_v60, %v212_v59 }
  0x46   :  { %v479_v15 = vmul.f32 %v1930_v10, %v478_v50 }
  0x47   :  { %v142_v44 = vadd.f32 %v138_v26, %v126_v21  ;;  %v182_v21 = vld [vmem:[#allocation6 + $0xa8] sm:$0xff]  ;;  %v2087_v29 = vadd.f32 %v217_v5, %v205_v3  ;;  %v1534_v5 = vld [vmem:[%s2492_s4 + $0x20] sm:$0xff] }
  0x48   :  { %v187_v38 = vmul.f32 %v184_v28, %v182_v21 }
  0x4a   :  { %1565 = vmatmul.msk.f32.vlgmr.msra.gmra.mxu0 %vm236_vm0, %v1562_v35 }
  0x4b   :  { %1568 = vmatmul.msk.f32.vlgmr.msra.gmra.mxu1 %vm236_vm0, %v1562_v35 }
  0x4c   :  { %1571 = vmatmul.msk.f32.vlgmr.msra.gmra.mxu2 %vm236_vm0, %v1562_v35 }
  0x4d   :  { %1574 = vmatmul.msk.f32.vlgmr.msra.gmra.mxu3 %vm236_vm0, %v1562_v35 }
  0x52   :  { %1566 = vmatmul.msk.f32.gmra.mxu0 %vm236_vm0, %v1563_v36 }
  0x53   :  { %1569 = vmatmul.msk.f32.gmra.mxu1 %vm236_vm0, %v1563_v36 }
  0x54   :  { %1572 = vmatmul.msk.f32.gmra.mxu2 %vm236_vm0, %v1563_v36 }
  0x55   :  { %1575 = vmatmul.msk.f32.gmra.mxu3 %vm236_vm0, %v1563_v36 }
  0x5a   :  { %1567 = vmatmul.msk.f32.gmra.mxu0 %vm236_vm0, %v1564_v37 }
  0x5b   :  { %1570 = vmatmul.msk.f32.gmra.mxu1 %vm236_vm0, %v1564_v37 }
  0x5c   :  { %1573 = vmatmul.msk.f32.gmra.mxu2 %vm236_vm0, %v1564_v37 }
  0x5d   :  { %1576 = vmatmul.msk.f32.gmra.mxu3 %vm236_vm0, %v1564_v37 }
  0x62   :  { %1577 = vmatmul.msk.f32.vlgmr.msrb.gmra.mxu0 %vm236_vm0, %v1562_v35 }
  0x63   :  { %1580 = vmatmul.msk.f32.vlgmr.msrb.gmra.mxu1 %vm236_vm0, %v1562_v35 }
  0x64   :  { %1583 = vmatmul.msk.f32.vlgmr.msrb.gmra.mxu2 %vm236_vm0, %v1562_v35 }
  0x65   :  { %1586 = vmatmul.msk.f32.vlgmr.msrb.gmra.mxu3 %vm236_vm0, %v1562_v35  ;;  %v123_v35 = vmul.f32 %v120_v43, %v118_v9  ;;  %v158_v43 = vadd.f32 %v154_v45, %v142_v44  ;;  %v197_v9 = vld [vmem:[#allocation6 + $0x70] sm:$0xff]  ;;  %v456_v44 = vld [vmem:[#allocation7] sm:$0xff] }
  0x66   :  { %v482_v45 = vld [vmem:[#allocation7 + $0xc0] sm:$0xff] }
  0x67   :  { %v127_v49 = vadd.f32 %v123_v35, %v111_v30  ;;  %v202_v35 = vmul.f32 %v200_v47, %v197_v9  ;;  %v1540_v47 = vld [vmem:[%s2492_s4 + $0x30] sm:$0xff]  ;;  %v637_v9 = vmul.f32 %v1964_v19, %v1534_v5  ;;  %v2140_v5 = vstv %s2113_s1 }
  0x69   :  { %v143_v62 = vadd.f32 %v139_v51, %v127_v49 }
  0x6a   :  { %1578 = vmatmul.msk.f32.gmra.mxu0 %vm236_vm0, %v1563_v36 }
  0x6b   :  { %1581 = vmatmul.msk.f32.gmra.mxu1 %vm236_vm0, %v1563_v36 }
  0x6c   :  { %1584 = vmatmul.msk.f32.gmra.mxu2 %vm236_vm0, %v1563_v36 }
  0x6d   :  { %1587 = vmatmul.msk.f32.gmra.mxu3 %vm236_vm0, %v1563_v36  ;;  %v176_v36 = vadd.f32 %v172_v7, %v160_v6  ;;  %v1525_v6 = vld [vmem:[%s2492_s4 + $0x8] sm:$0xff]  ;;  %v174_v7 = vadd.f32 %v170_v58, %v158_v43 }
  0x6e   :  { %v517_v26 = vmul.f32 %v1935_v12, %v1525_v6  ;;  %v1537_v6 = vld [vmem:[%s2492_s4 + $0x28] sm:$0xff] }
  0x6f   :  { %v190_v30 = vadd.f32 %v186_v8, %v174_v7  ;;  %v600_v8 = vld [vmem:[#allocation7 + $0xd8] sm:$0xff] }
  0x71   :  { %v206_v55 = vadd.f32 %v202_v35, %v190_v30  ;;  %v464_v30 = vld [vmem:[#allocation7 + $0x40] sm:$0xff] }
  0x72   :  { %1579 = vmatmul.msk.f32.gmra.mxu0 %vm236_vm0, %v1564_v37 }
  0x73   :  { %1582 = vmatmul.msk.f32.gmra.mxu1 %vm236_vm0, %v1564_v37 }
  0x74   :  { %1585 = vmatmul.msk.f32.gmra.mxu2 %vm236_vm0, %v1564_v37 }
  0x75   :  { %1588 = vmatmul.msk.f32.gmra.mxu3 %vm236_vm0, %v1564_v37  ;;  %v188_v37 = vmul.f32 %v184_v28, %v183_v11  ;;  %v159_v11 = vadd.f32 %v155_v63, %v143_v62  ;;  %v218_v28 = vmul.f32 %v2070_v60, %v213_v4  ;;  %v717_v4 = vmul.f32 %v1954_v17, %v1540_v47  ;;  %v541_v47 = vld [vmem:[#allocation7 + $0x50] sm:$0xff] }
  0x77   :  { %v192_v52 = vadd.f32 %v188_v37, %v176_v36  ;;  %v1531_v36 = vld [vmem:[%s2492_s4 + $0x18] sm:$0xff]  ;;  %v175_v37 = vadd.f32 %v171_v57, %v159_v11  ;;  %v2101_v3 = vadd.f32 %v218_v28, %v206_v55 }
  0x78   :  { %v597_v54 = vmul.f32 %v1949_v16, %v1531_v36  ;;  %v677_v36 = vmul.f32 %v1967_v20, %v1537_v6 }
  0x79   :  { %v208_v0 = vadd.f32 %v204_v53, %v192_v52  ;;  %v493_v52 = vld [vmem:[#allocation7 + $0x8] sm:$0xff]  ;;  %v191_v41 = vadd.f32 %v187_v38, %v175_v37  ;;  %v1543_v37 = vld [vmem:[%s2492_s4 + $0x38] sm:$0xff] }
  0x7a   :  { %v520_v53 = vld [vmem:[#allocation7 + $0xc8] sm:$0xff] }
  0x7b   :  { %v2080_v13 = vadd.f32 %v220_v1, %v208_v0  ;;  %v560_v0 = vld [vmem:[#allocation7 + $0xd0] sm:$0xff]  ;;  %v214_v1 = vld [vmem:[#allocation6 + $0xb8] sm:$0xff]  ;;  %v207_v57 = vadd.f32 %v203_v61, %v191_v41 }
  0x7d   :  { %v480_v39 = vadd.f32 %v479_v15, %v2080_v13  ;;  %v518_v46 = vadd.f32 %v517_v26, %v2080_v13  ;;  %v558_v59 = vadd.f32 %v557_v40, %v2080_v13  ;;  %v598_v50 = vadd.f32 %v597_v54, %v2080_v13  ;;  %v533_v26 = vld [vmem:[#allocation7 + $0x10] sm:$0xff] }
  0x7e   :  { %v219_v15 = vmul.f32 %v2070_v60, %v214_v1  ;;  %v638_v35 = vadd.f32 %v637_v9, %v2080_v13  ;;  %v757_v54 = vmul.f32 %v1959_v18, %v1543_v37  ;;  %v718_v41 = vadd.f32 %v717_v4, %v2080_v13 }
  0x7f   :  { %v483_v58 = vadd.f32 %v482_v45, %v480_v39  ;;  %v521_v63 = vadd.f32 %v520_v53, %v518_v46  ;;  %v561_v11 = vadd.f32 %v560_v0, %v558_v59  ;;  %v573_v39 = vld [vmem:[#allocation7 + $0x18] sm:$0xff]  ;;  %v601_v40 = vadd.f32 %v600_v8, %v598_v50  ;;  %v501_v45 = vld [vmem:[#allocation7 + $0x48] sm:$0xff]  ;;  %v640_v46 = vld [vmem:[#allocation7 + $0xe0] sm:$0xff] }
  0x80   :  { %v2133_v61 = vadd.f32 %v219_v15, %v207_v57  ;;  %v806_v50 = vld [vmem:[#allocation6 + $0x100] sm:$0xff] }
  0x81   :  { %1650 = vtanh.f32 %v483_v58  ;;  %v472_v15 = vld [vmem:[#allocation7 + $0x80] sm:$0xff] }
  0x82   :  { %1652 = vtanh.f32 %v521_v63  ;;  %v720_v63 = vld [vmem:[#allocation7 + $0xf0] sm:$0xff] }
  0x97   :  { %v263_v42 = vpop.f32.mrf.mxu0 }
  0x98   :  { %v455_v49 = vadd.f32 %v263_v42, %v2087_v29  ;;  %v289_v51 = vpop.f32.mrf.mxu1 }
  0x99   :  { %v491_v56 = vadd.f32 %v289_v51, %v2087_v29  ;;  %v641_v51 = vadd.f32 %v640_v46, %v638_v35 }
  0x9a   :  { %v457_v43 = vadd.f32 %v456_v44, %v455_v49 }
  0x9b   :  { %v494_v62 = vadd.f32 %v493_v52, %v491_v56  ;;  %v678_v56 = vadd.f32 %v677_v36, %v2080_v13 }
  0x9c   :  { %v458_v2 = vmul.f32 0.5, %v457_v43  ;;  %v2131_v43 = vpop.eup %1650 }
  0x9d   :  { %v495_v7 = vmul.f32 0.5, %v494_v62  ;;  %v680_v62 = vld [vmem:[#allocation7 + $0xe8] sm:$0xff]  ;;  %v2137_v0 = vpop.eup %1652 }
  0x9e   :  { %1654 = vtanh.f32 %v458_v2 }
  0x9f   :  { %v315_v21 = vpop.f32.mrf.mxu2  ;;  %v266_v27 = vpop.f32.mrf.mxu0  ;;  %1656 = vtanh.f32 %v495_v7  ;;  %v2143_v7 = vadd.f32 %v757_v54, %v2080_v13 }
  0xa0   :  { %v531_v60 = vadd.f32 %v315_v21, %v2087_v29  ;;  %v341_v38 = vpop.f32.mrf.mxu3  ;;  %v462_v42 = vadd.f32 %v266_v27, %v2101_v3  ;;  %v292_v44 = vpop.f32.mrf.mxu1  ;;  %1658 = vtanh.f32 %v561_v11  ;;  %v581_v11 = vld [vmem:[#allocation7 + $0x58] sm:$0xff]  ;;  %v681_v21 = vadd.f32 %v680_v62, %v678_v56  ;;  %v818_v27 = vld [vmem:[#allocation6 + $0x108] sm:$0xff]  ;;  %v834_v62 = vld [vmem:[#allocation6 + $0x110] sm:$0xff] }
  0xa1   :  { %v571_v48 = vadd.f32 %v341_v38, %v2087_v29  ;;  %v499_v49 = vadd.f32 %v292_v44, %v2101_v3  ;;  %1660 = vtanh.f32 %v601_v40  ;;  %v809_v38 = vld [vmem:[#allocation6 + $0x1c0] sm:$0xff]  ;;  %v821_v40 = vld [vmem:[#allocation6 + $0x1c8] sm:$0xff] }
  0xa2   :  { %v534_v52 = vadd.f32 %v533_v26, %v531_v60  ;;  %v465_v53 = vadd.f32 %v464_v30, %v462_v42  ;;  %1662 = vtanh.f32 %v641_v51  ;;  %v721_v26 = vadd.f32 %v720_v63, %v718_v41  ;;  %v509_v60 = vld [vmem:[#allocation7 + $0x88] sm:$0xff] }
  0xa3   :  { %v574_v55 = vadd.f32 %v573_v39, %v571_v48  ;;  %v502_v28 = vadd.f32 %v501_v45, %v499_v49  ;;  %v2146_v30 = vstv %s2122_s28  ;;  %v811_v39 = vmul.f32 %v2140_v5, %v806_v50 }
  0xa4   :  { %v535_v58 = vmul.f32 0.5, %v534_v52  ;;  %v466_v59 = vmul.f32 0.5, %v465_v53  ;;  %v1655_v6 = vpop.eup %1654  ;;  %v823_v52 = vmul.f32 %v2146_v30, %v818_v27  ;;  %v826_v56 = vmul.f32 %v2146_v30, %v821_v40  ;;  %v589_v40 = vld [vmem:[#allocation7 + $0x98] sm:$0xff] }
  0xa5   :  { %v575_v1 = vmul.f32 0.5, %v574_v55  ;;  %v503_v2 = vmul.f32 0.5, %v502_v28  ;;  %v1657_v8 = vpop.eup %1656  ;;  %v460_v42 = vmul.f32 0.5, %v1655_v6  ;;  %v814_v28 = vmul.f32 %v2140_v5, %v809_v38 }
  0xa6   :  { %1664 = vtanh.f32 %v535_v58  ;;  %v2148_v35 = vpop.eup %1658  ;;  %v497_v48 = vmul.f32 0.5, %v1657_v8  ;;  %v2165_v63 = vstv %s2135_s29 }
  0xa7   :  { %1666 = vtanh.f32 %v575_v1  ;;  %v318_v9 = vpop.f32.mrf.mxu2  ;;  %v269_v57 = vpop.f32.mrf.mxu0 }
  0xa8   :  { %1668 = vtanh.f32 %v466_v59  ;;  %v539_v36 = vadd.f32 %v318_v9, %v2101_v3  ;;  %v344_v4 = vpop.f32.mrf.mxu3  ;;  %v470_v13 = vadd.f32 %v269_v57, %v2133_v61  ;;  %v295_v37 = vpop.f32.mrf.mxu1  ;;  %v498_v9 = vadd.f32 0.5, %v497_v48 }
  0xa9   :  { %1670 = vtanh.f32 %v503_v2  ;;  %v579_v44 = vadd.f32 %v344_v4, %v2101_v3  ;;  %v507_v45 = vadd.f32 %v295_v37, %v2133_v61  ;;  %v2155_v46 = vpop.eup %1660  ;;  %v461_v2 = vadd.f32 0.5, %v460_v42  ;;  %v549_v4 = vld [vmem:[#allocation7 + $0x90] sm:$0xff] }
  0xaa   :  { %v542_v49 = vadd.f32 %v541_v47, %v539_v36  ;;  %v473_v51 = vadd.f32 %v472_v15, %v470_v13  ;;  %v2158_v53 = vpop.eup %1662  ;;  %1672 = vtanh.f32 %v681_v21  ;;  %v837_v47 = vld [vmem:[#allocation6 + $0x1d0] sm:$0xff]  ;;  %v827_v57 = vadd.f32 %v823_v52, %v811_v39 }
  0xab   :  { %v582_v54 = vadd.f32 %v581_v11, %v579_v44  ;;  %v510_v55 = vadd.f32 %v509_v60, %v507_v45  ;;  %1674 = vtanh.f32 %v721_v26  ;;  %v830_v13 = vadd.f32 %v826_v56, %v814_v28 }
  0xac   :  { %v1665_v41 = vpop.eup %1664  ;;  %v543_v58 = vmul.f32 0.5, %v542_v49  ;;  %v474_v59 = vmul.f32 0.5, %v473_v51  ;;  %v839_v37 = vmul.f32 %v2165_v63, %v834_v62  ;;  %v842_v44 = vmul.f32 %v2165_v63, %v837_v47  ;;  %v613_v49 = vld [vmem:[#allocation7 + $0x20] sm:$0xff]  ;;  %v850_v62 = vld [vmem:[#allocation6 + $0x118] sm:$0xff]  ;;  %v653_v47 = vld [vmem:[#allocation7 + $0x28] sm:$0xff] }
  0xad   :  { %v1667_v1 = vpop.eup %1666  ;;  %v583_v50 = vmul.f32 0.5, %v582_v54  ;;  %v511_v6 = vmul.f32 0.5, %v510_v55  ;;  %v537_v11 = vmul.f32 0.5, %v1665_v41  ;;  %v2177_v41 = vmul.f32 %v2131_v43, %v461_v2 }
  0xae   :  { %v1669_v8 = vpop.eup %1668  ;;  %1676 = vtanh.f32 %v543_v58  ;;  %v577_v45 = vmul.f32 0.5, %v1667_v1  ;;  %v2184_v1 = vstv %s2162_s30 }
  0xaf   :  { %v1671_v15 = vpop.eup %1670  ;;  %v468_v27 = vmul.f32 0.5, %v1669_v8  ;;  %1678 = vtanh.f32 %v583_v50  ;;  %v321_v36 = vpop.f32.mrf.mxu2  ;;  %v538_v52 = vadd.f32 0.5, %v537_v11  ;;  %v843_v8 = vadd.f32 %v839_v37, %v827_v57  ;;  %v853_v37 = vld [vmem:[#allocation6 + $0x1d8] sm:$0xff] }
  0xb0   :  { %v367_v21 = vpop.f32.mrf.mxu0  ;;  %v505_v60 = vmul.f32 0.5, %v1671_v15  ;;  %1680 = vtanh.f32 %v474_v59  ;;  %v547_v38 = vadd.f32 %v321_v36, %v2133_v61  ;;  %v347_v26 = vpop.f32.mrf.mxu3  ;;  %v578_v15 = vadd.f32 0.5, %v577_v45 }
  0xb1   :  { %v393_v42 = vpop.f32.mrf.mxu1  ;;  %v469_v39 = vadd.f32 0.5, %v468_v27  ;;  %1682 = vtanh.f32 %v511_v6  ;;  %v587_v48 = vadd.f32 %v347_v26, %v2133_v61  ;;  %v2171_v51 = vpop.eup %1672  ;;  %v611_v28 = vadd.f32 %v367_v21, %v2087_v29 }
  0xb2   :  { %v506_v54 = vadd.f32 0.5, %v505_v60  ;;  %v550_v55 = vadd.f32 %v549_v4, %v547_v38  ;;  %v2174_v56 = vpop.eup %1674  ;;  %v651_v59 = vadd.f32 %v393_v42, %v2087_v29  ;;  %v524_v6 = vmul.f32 %v2137_v0, %v498_v9 }
  0xb3   :  { %489 = vst [vmem:[%s2495_s7] sm:$0xff] %v469_v39  ;;  %v590_v58 = vadd.f32 %v589_v40, %v587_v48  ;;  %v614_v2 = vadd.f32 %v613_v49, %v611_v28  ;;  %v846_v4 = vadd.f32 %v842_v44, %v830_v13  ;;  %v2193_v60 = vmul.f32 %v2148_v35, %v538_v52  ;;  %v621_v35 = vld [vmem:[#allocation7 + $0x60] sm:$0xff]  ;;  %v693_v28 = vld [vmem:[#allocation7 + $0x30] sm:$0xff] }
  0xb4   :  { %v1677_v50 = vpop.eup %1676  ;;  %1527 = vst [vmem:[%s2495_s7 + $0x8] sm:$0xff] %v506_v54  ;;  %v551_v43 = vmul.f32 0.5, %v550_v55  ;;  %v855_v0 = vmul.f32 %v2184_v1, %v850_v62  ;;  %v654_v42 = vadd.f32 %v653_v47, %v651_v59  ;;  %v2198_v54 = vmul.f32 %v2155_v46, %v578_v15  ;;  %v661_v62 = vld [vmem:[#allocation7 + $0x68] sm:$0xff] }
  0xb5   :  { %v1679_v11 = vpop.eup %1678  ;;  %v545_v27 = vmul.f32 0.5, %v1677_v50  ;;  %v591_v36 = vmul.f32 0.5, %v590_v58  ;;  %v615_v49 = vmul.f32 0.5, %v614_v2  ;;  %v858_v2 = vmul.f32 %v2184_v1, %v853_v37 }
  0xb6   :  { %v1681_v21 = vpop.eup %1680  ;;  %v585_v38 = vmul.f32 0.5, %v1679_v11  ;;  %1684 = vtanh.f32 %v551_v43  ;;  %v733_v43 = vld [vmem:[#allocation7 + $0x38] sm:$0xff]  ;;  %v859_v47 = vadd.f32 %v855_v0, %v843_v8  ;;  %v655_v15 = vmul.f32 0.5, %v654_v42 }
  0xb7   :  { %v1683_v9 = vpop.eup %1682  ;;  %v546_v26 = vadd.f32 0.5, %v545_v27  ;;  %v476_v40 = vmul.f32 0.5, %v1681_v21  ;;  %1686 = vtanh.f32 %v591_v36  ;;  %v419_v39 = vpop.f32.mrf.mxu2  ;;  %v2214_v27 = vstv %s2186_s9 }
  0xb8   :  { %v370_v57 = vpop.f32.mrf.mxu0  ;;  %v586_v45 = vadd.f32 0.5, %v585_v38  ;;  %v513_v48 = vmul.f32 0.5, %v1683_v9  ;;  %v691_v13 = vadd.f32 %v419_v39, %v2087_v29  ;;  %v445_v44 = vpop.f32.mrf.mxu3  ;;  %1688 = vtanh.f32 %v615_v49 }
  0xb9   :  { %v396_v52 = vpop.f32.mrf.mxu1  ;;  %1530 = vst [vmem:[%s2495_s7 + $0x10] sm:$0xff] %v546_v26  ;;  %v477_v55 = vadd.f32 0.5, %v476_v40  ;;  %v731_v58 = vadd.f32 %v445_v44, %v2087_v29  ;;  %v619_v59 = vadd.f32 %v370_v57, %v2101_v3  ;;  %v866_v26 = vld [vmem:[#allocation6 + $0x120] sm:$0xff]  ;;  %1690 = vtanh.f32 %v655_v15 }
  0xba   :  { %1533 = vst [vmem:[%s2495_s7 + $0x18] sm:$0xff] %v586_v45  ;;  %v514_v50 = vadd.f32 0.5, %v513_v48  ;;  %v659_v46 = vadd.f32 %v396_v52, %v2101_v3  ;;  %v694_v38 = vadd.f32 %v693_v28, %v691_v13  ;;  %v869_v40 = vld [vmem:[#allocation6 + $0x1e0] sm:$0xff]  ;;  %v862_v48 = vadd.f32 %v858_v2, %v846_v4  ;;  %v701_v13 = vld [vmem:[#allocation7 + $0x70] sm:$0xff]  ;;  %v741_v28 = vld [vmem:[#allocation7 + $0x78] sm:$0xff] }
  0xbb   :  { %v485_v11 = vmul.f32 %v1930_v10, %v477_v55  ;;  %v622_v29 = vadd.f32 %v621_v35, %v619_v59  ;;  %v734_v0 = vadd.f32 %v733_v43, %v731_v58  ;;  %v871_v35 = vmul.f32 %v2214_v27, %v866_v26  ;;  %v629_v43 = vld [vmem:[#allocation7 + $0xa0] sm:$0xff]  ;;  %v882_v26 = vld [vmem:[#allocation6 + $0x128] sm:$0xff] }
  0xbc   :  { %v1685_v36 = vpop.eup %1684  ;;  %v523_v21 = vmul.f32 %v1935_v12, %v514_v50  ;;  %v662_v9 = vadd.f32 %v661_v62, %v659_v46  ;;  %v695_v52 = vmul.f32 0.5, %v694_v38 }
  0xbd   :  { %v1687_v39 = vpop.eup %1686  ;;  %v487_v57 = vadd.f32 %v2177_v41, %v485_v11  ;;  %v553_v8 = vmul.f32 0.5, %v1685_v36  ;;  %v623_v37 = vmul.f32 0.5, %v622_v29  ;;  %v874_v41 = vmul.f32 %v2214_v27, %v869_v40  ;;  %v669_v29 = vld [vmem:[#allocation7 + $0xa8] sm:$0xff] }
  0xbe   :  { %v525_v45 = vadd.f32 %v524_v6, %v523_v21  ;;  %v593_v10 = vmul.f32 0.5, %v1687_v39  ;;  %v663_v42 = vmul.f32 0.5, %v662_v9  ;;  %v735_v62 = vmul.f32 0.5, %v734_v0  ;;  %v1689_v46 = vpop.eup %1688  ;;  %v885_v39 = vld [vmem:[#allocation6 + $0x1e8] sm:$0xff] }
  0xbf   :  { %488 = vst [vmem:[%s2494_s6] sm:$0xff] %v487_v57  ;;  %v554_v12 = vadd.f32 0.5, %v553_v8  ;;  %v422_v49 = vpop.f32.mrf.mxu2  ;;  %1692 = vtanh.f32 %v623_v37  ;;  %v2232_v36 = vstv %s2210_s15  ;;  %v875_v9 = vadd.f32 %v871_v35, %v859_v47  ;;  %v1691_v57 = vpop.eup %1690 }
  0xc0   :  { %v373_v44 = vpop.f32.mrf.mxu0  ;;  %1526 = vst [vmem:[%s2494_s6 + $0x8] sm:$0xff] %v525_v45  ;;  %v594_v6 = vadd.f32 0.5, %v593_v10  ;;  %v699_v4 = vadd.f32 %v422_v49, %v2101_v3  ;;  %v448_v55 = vpop.f32.mrf.mxu3  ;;  %1694 = vtanh.f32 %v663_v42  ;;  %v878_v37 = vadd.f32 %v874_v41, %v862_v48 }
  0xc1   :  { %v399_v58 = vpop.f32.mrf.mxu1  ;;  %v563_v59 = vmul.f32 %v1941_v14, %v554_v12  ;;  %v739_v50 = vadd.f32 %v448_v55, %v2101_v3  ;;  %v627_v15 = vadd.f32 %v373_v44, %v2133_v61  ;;  %1696 = vtanh.f32 %v695_v52  ;;  %v709_v44 = vld [vmem:[#allocation7 + $0xb0] sm:$0xff]  ;;  %v749_v55 = vld [vmem:[#allocation7 + $0xb8] sm:$0xff] }
  0xc2   :  { %v603_v2 = vmul.f32 %v1949_v16, %v594_v6  ;;  %v702_v11 = vadd.f32 %v701_v13, %v699_v4  ;;  %v667_v14 = vadd.f32 %v399_v58, %v2133_v61  ;;  %1698 = vtanh.f32 %v735_v62  ;;  %v898_v62 = vld [vmem:[#allocation6 + $0x130] sm:$0xff] }
  0xc3   :  { %v565_v21 = vadd.f32 %v2193_v60, %v563_v59  ;;  %v742_v38 = vadd.f32 %v741_v28, %v739_v50  ;;  %v630_v40 = vadd.f32 %v629_v43, %v627_v15  ;;  %v760_v60 = vld [vmem:[#allocation7 + $0xf8] sm:$0xff]  ;;  %v887_v10 = vmul.f32 %v2232_v36, %v882_v26  ;;  %v901_v50 = vld [vmem:[#allocation6 + $0x1f0] sm:$0xff] }
  0xc4   :  { %v605_v3 = vadd.f32 %v2198_v54, %v603_v2  ;;  %v703_v16 = vmul.f32 0.5, %v702_v11  ;;  %v670_v0 = vadd.f32 %v669_v29, %v667_v14  ;;  %v617_v54 = vmul.f32 0.5, %v1689_v46  ;;  %v914_v43 = vld [vmem:[#allocation6 + $0x138] sm:$0xff] }
  0xc5   :  { %1529 = vst [vmem:[%s2494_s6 + $0x10] sm:$0xff] %v565_v21  ;;  %v743_v8 = vmul.f32 0.5, %v742_v38  ;;  %v1693_v47 = vpop.eup %1692  ;;  %v631_v45 = vmul.f32 0.5, %v630_v40  ;;  %v890_v35 = vmul.f32 %v2232_v36, %v885_v39  ;;  %v761_v48 = vadd.f32 %v760_v60, %v2143_v7 }
  0xc6   :  { %1532 = vst [vmem:[%s2494_s6 + $0x18] sm:$0xff] %v605_v3  ;;  %1700 = vtanh.f32 %v703_v16  ;;  %v1695_v42 = vpop.eup %1694  ;;  %v625_v12 = vmul.f32 0.5, %v1693_v47  ;;  %v671_v49 = vmul.f32 0.5, %v670_v0  ;;  %v657_v28 = vmul.f32 0.5, %v1691_v57 }
  0xc7   :  { %1702 = vtanh.f32 %v743_v8  ;;  %v425_v13 = vpop.f32.mrf.mxu2  ;;  %v665_v41 = vmul.f32 0.5, %v1695_v42  ;;  %v1697_v2 = vpop.eup %1696  ;;  %v618_v11 = vadd.f32 0.5, %v617_v54  ;;  %v891_v29 = vadd.f32 %v887_v10, %v875_v9 }
  0xc8   :  { %v2249_v6 = vpop.f32.mrf.mxu0  ;;  %1704 = vtanh.f32 %v631_v45  ;;  %v707_v52 = vadd.f32 %v425_v13, %v2133_v61  ;;  %v451_v4 = vpop.f32.mrf.mxu3  ;;  %v626_v58 = vadd.f32 0.5, %v625_v12  ;;  %v894_v14 = vadd.f32 %v890_v35, %v878_v37 }
  0xc9   :  { %1706 = vtanh.f32 %v671_v49  ;;  %v747_v59 = vadd.f32 %v451_v4, %v2133_v61  ;;  %v991_v46 = vpop.f32.mrf.mxu1  ;;  %v666_v7 = vadd.f32 0.5, %v665_v41  ;;  %v1699_v21 = vpop.eup %1698  ;;  %v2258_v26 = vstv %s2234_s5  ;;  %v917_v61 = vld [vmem:[#allocation6 + $0x1f8] sm:$0xff] }
  0xca   :  { %v710_v15 = vadd.f32 %v709_v44, %v707_v52  ;;  %1536 = vst [vmem:[%s2495_s7 + $0x20] sm:$0xff] %v626_v58  ;;  %v2261_v3 = vstv %s2238_s19  ;;  %v903_v9 = vmul.f32 %v2258_v26, %v898_v62  ;;  %v906_v39 = vmul.f32 %v2258_v26, %v901_v50 }
  0xcb   :  { %v750_v38 = vadd.f32 %v749_v55, %v747_v59  ;;  %1539 = vst [vmem:[%s2495_s7 + $0x28] sm:$0xff] %v666_v7  ;;  %v919_v57 = vmul.f32 %v2261_v3, %v914_v43  ;;  %v658_v8 = vadd.f32 0.5, %v657_v28  ;;  %v697_v0 = vmul.f32 0.5, %v1697_v2  ;;  %v1589_v55 = vld [vmem:[%s2492_s4 + $0x40] sm:$0xff]  ;;  %v1199_v2 = vld [vmem:[#allocation7 + $0x108] sm:$0xff] }
  0xcc   :  { %v1701_v16 = vpop.eup %1700  ;;  %v711_v40 = vmul.f32 0.5, %v710_v15  ;;  %v907_v10 = vadd.f32 %v903_v9, %v891_v29  ;;  %v922_v42 = vmul.f32 %v2261_v3, %v917_v61  ;;  %v910_v44 = vadd.f32 %v906_v39, %v894_v14  ;;  %v1159_v43 = vld [vmem:[#allocation7 + $0x100] sm:$0xff] }
  0xcd   :  { %v1703_v60 = vpop.eup %1702  ;;  %v705_v37 = vmul.f32 0.5, %v1701_v16  ;;  %v751_v47 = vmul.f32 0.5, %v750_v38  ;;  %v644_v59 = vmul.f32 %v2158_v53, %v618_v11  ;;  %v684_v62 = vmul.f32 %v2171_v51, %v658_v8  ;;  %v807_v7 = vld [vmem:[#allocation6 + $0x140] sm:$0xff]  ;;  %v1239_v11 = vld [vmem:[#allocation7 + $0x110] sm:$0xff] }
  0xce   :  { %v1705_v54 = vpop.eup %1704  ;;  %v745_v45 = vmul.f32 0.5, %v1703_v60  ;;  %1708 = vtanh.f32 %v711_v40  ;;  %v2270_v4 = vadd.f32 %v919_v57, %v907_v10  ;;  %v737_v50 = vmul.f32 0.5, %v1699_v21  ;;  %v819_v21 = vld [vmem:[#allocation6 + $0x148] sm:$0xff] }
  0xcf   :  { %v1707_v12 = vpop.eup %1706  ;;  %v706_v49 = vadd.f32 0.5, %v705_v37  ;;  %v633_v13 = vmul.f32 0.5, %v1705_v54  ;;  %1710 = vtanh.f32 %v751_v47  ;;  %v1017_v35 = vpop.f32.mrf.mxu2  ;;  %v698_v15 = vadd.f32 0.5, %v697_v0 }
  0xd0   :  { %1712 = vtanh.f32 %v761_v48  ;;  %v746_v41 = vadd.f32 0.5, %v745_v45  ;;  %v673_v52 = vmul.f32 0.5, %v1707_v12  ;;  %v1043_v28 = vpop.f32.mrf.mxu3  ;;  %v2275_v58 = vpop.f32.mrf.mxu0  ;;  %v1157_v53 = vadd.f32 %v2249_v6, %v2270_v4  ;;  %v1592_v6 = vld [vmem:[%s2492_s4 + $0x48] sm:$0xff] }
  0xd1   :  { %1542 = vst [vmem:[%s2495_s7 + $0x30] sm:$0xff] %v706_v49  ;;  %v634_v48 = vadd.f32 0.5, %v633_v13  ;;  %v1197_v51 = vadd.f32 %v991_v46, %v2270_v4  ;;  %v2289_v14 = vadd.f32 %v922_v42, %v910_v44  ;;  %v1183_v61 = vmul.f32 %v1979_v24, %v1589_v55  ;;  %v2293_v40 = vpop.f32.mrf.mxu1 }
  0xd2   :  { %1545 = vst [vmem:[%s2495_s7 + $0x38] sm:$0xff] %v746_v41  ;;  %v674_v29 = vadd.f32 0.5, %v673_v52  ;;  %v1237_v16 = vadd.f32 %v1017_v35, %v2270_v4  ;;  %v1160_v57 = vadd.f32 %v1159_v43, %v1157_v53  ;;  %v812_v46 = vmul.f32 %v2140_v5, %v807_v7  ;;  %v835_v41 = vld [vmem:[#allocation6 + $0x150] sm:$0xff]  ;;  %v1186_v53 = vld [vmem:[#allocation7 + $0x1c0] sm:$0xff] }
  0xd3   :  { %v643_v38 = vmul.f32 %v1964_v19, %v634_v48  ;;  %v1200_v60 = vadd.f32 %v1199_v2, %v1197_v51  ;;  %v1595_v19 = vld [vmem:[%s2492_s4 + $0x50] sm:$0xff]  ;;  %v824_v54 = vmul.f32 %v2146_v30, %v819_v21  ;;  %v724_v49 = vmul.f32 %v2174_v56, %v698_v15  ;;  %v851_v56 = vld [vmem:[#allocation6 + $0x158] sm:$0xff]  ;;  %v867_v2 = vld [vmem:[#allocation6 + $0x160] sm:$0xff] }
  0xd4   :  { %v1709_v9 = vpop.eup %1708  ;;  %v683_v39 = vmul.f32 %v1967_v20, %v674_v29  ;;  %v1240_v47 = vadd.f32 %v1239_v11, %v1237_v16  ;;  %v738_v20 = vadd.f32 0.5, %v737_v50  ;;  %v1161_v12 = vmul.f32 0.5, %v1160_v57  ;;  %v1279_v51 = vld [vmem:[#allocation7 + $0x118] sm:$0xff]  ;;  %v820_v57 = vld [vmem:[#allocation6 + $0x188] sm:$0xff] }
  0xd5   :  { %v1711_v8 = vpop.eup %1710  ;;  %v645_v0 = vadd.f32 %v644_v59, %v643_v38  ;;  %v713_v37 = vmul.f32 0.5, %v1709_v9  ;;  %v1223_v44 = vmul.f32 %v1983_v25, %v1592_v6  ;;  %v1263_v35 = vmul.f32 %v1973_v22, %v1595_v19  ;;  %v1598_v11 = vld [vmem:[%s2492_s4 + $0x58] sm:$0xff]  ;;  %v1226_v6 = vld [vmem:[#allocation7 + $0x1c8] sm:$0xff]  ;;  %v1266_v19 = vld [vmem:[#allocation7 + $0x1d0] sm:$0xff] }
  0xd6   :  { %v1713_v45 = vpop.eup %1712  ;;  %v685_v10 = vadd.f32 %v684_v62, %v683_v39  ;;  %v753_v42 = vmul.f32 0.5, %v1711_v8  ;;  %v1184_v55 = vadd.f32 %v1183_v61, %v2289_v14  ;;  %v1201_v59 = vmul.f32 0.5, %v1200_v60  ;;  %v808_v39 = vld [vmem:[#allocation6 + $0x180] sm:$0xff] }
  0xd7   :  { %1535 = vst [vmem:[%s2494_s6 + $0x20] sm:$0xff] %v645_v0  ;;  %v714_v13 = vadd.f32 0.5, %v713_v37  ;;  %v1241_v62 = vmul.f32 0.5, %v1240_v47  ;;  %1714 = vtanh.f32 %v1161_v12  ;;  %v1277_v48 = vadd.f32 %v1043_v28, %v2270_v4  ;;  %v2316_v7 = vpop.f32.mrf.mxu2  ;;  %v836_v0 = vld [vmem:[#allocation6 + $0x190] sm:$0xff] }
  0xd8   :  { %1538 = vst [vmem:[%s2494_s6 + $0x28] sm:$0xff] %v685_v10  ;;  %v754_v52 = vadd.f32 0.5, %v753_v42  ;;  %v828_v43 = vadd.f32 %v824_v54, %v812_v46  ;;  %v764_v15 = vmul.f32 %v1713_v45, %v738_v20  ;;  %v840_v21 = vmul.f32 %v2165_v63, %v835_v41  ;;  %v2323_v38 = vpop.f32.mrf.mxu3  ;;  %v899_v45 = vld [vmem:[#allocation6 + $0x170] sm:$0xff]  ;;  %v852_v20 = vld [vmem:[#allocation6 + $0x198] sm:$0xff] }
  0xd9   :  { %v723_v50 = vmul.f32 %v1954_v17, %v714_v13  ;;  %v2325_v17 = vpop.f32.mrf.mxu0  ;;  %v1224_v61 = vadd.f32 %v1223_v44, %v2289_v14  ;;  %v1264_v16 = vadd.f32 %v1263_v35, %v2289_v14  ;;  %v856_v9 = vmul.f32 %v2184_v1, %v851_v56  ;;  %v2335_v10 = vpop.f32.mrf.mxu1 }
  0xda   :  { %v763_v29 = vmul.f32 %v1959_v18, %v754_v52  ;;  %v883_v18 = vld [vmem:[#allocation6 + $0x168] sm:$0xff]  ;;  %1716 = vtanh.f32 %v1201_v59  ;;  %v844_v46 = vadd.f32 %v840_v21, %v828_v43  ;;  %v872_v8 = vmul.f32 %v2214_v27, %v867_v2  ;;  %v868_v59 = vld [vmem:[#allocation6 + $0x1a0] sm:$0xff]  ;;  %v1306_v21 = vld [vmem:[#allocation7 + $0x1d8] sm:$0xff] }
  0xdb   :  { %v725_v28 = vadd.f32 %v724_v49, %v723_v50  ;;  %v1187_v37 = vadd.f32 %v1186_v53, %v1184_v55  ;;  %1718 = vtanh.f32 %v1241_v62  ;;  %v1280_v47 = vadd.f32 %v1279_v51, %v1277_v48  ;;  %v915_v49 = vld [vmem:[#allocation6 + $0x178] sm:$0xff] }
  0xdc   :  { %v765_v60 = vadd.f32 %v764_v15, %v763_v29  ;;  %v1303_v54 = vmul.f32 %v1976_v23, %v1598_v11  ;;  %v860_v42 = vadd.f32 %v856_v9, %v844_v46  ;;  %v888_v12 = vmul.f32 %v2232_v36, %v883_v18  ;;  %v916_v9 = vld [vmem:[#allocation6 + $0x1b8] sm:$0xff]  ;;  %v1167_v46 = vld [vmem:[#allocation7 + $0x140] sm:$0xff] }
  0xdd   :  { %1541 = vst [vmem:[%s2494_s6 + $0x30] sm:$0xff] %v725_v28  ;;  %v813_v13 = vmul.f32 %v2140_v5, %v808_v39  ;;  %v825_v44 = vmul.f32 %v2146_v30, %v820_v57  ;;  %v1715_v35 = vpop.eup %1714  ;;  %v1227_v41 = vadd.f32 %v1226_v6, %v1224_v61  ;;  %v1267_v52 = vadd.f32 %v1266_v19, %v1264_v16  ;;  %v900_v16 = vld [vmem:[#allocation6 + $0x1b0] sm:$0xff] }
  0xde   :  { %1544 = vst [vmem:[%s2494_s6 + $0x38] sm:$0xff] %v765_v60  ;;  %v841_v55 = vmul.f32 %v2165_v63, %v836_v0  ;;  %v876_v62 = vadd.f32 %v872_v8, %v860_v42  ;;  %v904_v56 = vmul.f32 %v2258_v26, %v899_v45  ;;  %v857_v48 = vmul.f32 %v2184_v1, %v852_v20  ;;  %v884_v63 = vld [vmem:[#allocation6 + $0x1a8] sm:$0xff]  ;;  %v1601_v0 = vld [vmem:[%s2492_s4 + $0x60] sm:$0xff]  ;;  %v1247_v45 = vld [vmem:[#allocation7 + $0x150] sm:$0xff] }
  0xdf   :  { %v829_v50 = vadd.f32 %v825_v44, %v813_v13  ;;  %1720 = vtanh.f32 %v1187_v37  ;;  %v1281_v43 = vmul.f32 0.5, %v1280_v47  ;;  %v1304_v2 = vadd.f32 %v1303_v54, %v2289_v14  ;;  %v2349_v28 = vpop.f32.mrf.mxu2  ;;  %v1207_v54 = vld [vmem:[#allocation7 + $0x148] sm:$0xff]  ;;  %v1287_v20 = vld [vmem:[#allocation7 + $0x158] sm:$0xff] }
  0xe0   :  { %v920_v5 = vmul.f32 %v2261_v3, %v915_v49  ;;  %v1717_v15 = vpop.eup %1716  ;;  %v1163_v30 = vmul.f32 0.5, %v1715_v35  ;;  %v892_v29 = vadd.f32 %v888_v12, %v876_v62  ;;  %v873_v51 = vmul.f32 %v2214_v27, %v868_v59  ;;  %v2351_v18 = vpop.f32.mrf.mxu3  ;;  %v1319_v59 = vld [vmem:[#allocation7 + $0x120] sm:$0xff] }
  0xe1   :  { %v845_v53 = vadd.f32 %v841_v55, %v829_v50  ;;  %v1719_v11 = vpop.eup %1718  ;;  %1722 = vtanh.f32 %v1227_v41  ;;  %v1069_v39 = vpop.f32.mrf.mxu0  ;;  %v1203_v57 = vmul.f32 0.5, %v1717_v15  ;;  %v889_v60 = vmul.f32 %v2232_v36, %v884_v63 }
  0xe2   :  { %1724 = vtanh.f32 %v1267_v52  ;;  %v908_v1 = vadd.f32 %v904_v56, %v892_v29  ;;  %v1164_v6 = vadd.f32 0.5, %v1163_v30  ;;  %v1307_v27 = vadd.f32 %v1306_v21, %v1304_v2  ;;  %v1095_v49 = vpop.f32.mrf.mxu1 }
  0xe3   :  { %v861_v61 = vadd.f32 %v857_v48, %v845_v53  ;;  %1726 = vtanh.f32 %v1281_v43  ;;  %v1243_v47 = vmul.f32 0.5, %v1719_v11  ;;  %v905_v42 = vmul.f32 %v2258_v26, %v900_v16  ;;  %v1215_v16 = vld [vmem:[#allocation7 + $0x188] sm:$0xff] }
  0xe4   :  { %v2354_v19 = vadd.f32 %v920_v5, %v908_v1  ;;  %v921_v12 = vmul.f32 %v2261_v3, %v916_v9  ;;  %v1317_v36 = vadd.f32 %v1069_v39, %v2270_v4  ;;  %v1204_v55 = vadd.f32 0.5, %v1203_v57  ;;  %v1359_v5 = vld [vmem:[#allocation7 + $0x128] sm:$0xff]  ;;  %v1255_v9 = vld [vmem:[#allocation7 + $0x190] sm:$0xff] }
  0xe5   :  { %v877_v8 = vadd.f32 %v873_v51, %v861_v61  ;;  %v1721_v37 = vpop.eup %1720  ;;  %v1343_v3 = vmul.f32 %v2022_v33, %v1601_v0  ;;  %v1357_v62 = vadd.f32 %v1095_v49, %v2270_v4  ;;  %1728 = vtanh.f32 %v1307_v27  ;;  %v1175_v61 = vld [vmem:[#allocation7 + $0x180] sm:$0xff]  ;;  %v1295_v0 = vld [vmem:[#allocation7 + $0x198] sm:$0xff] }
  0xe6   :  { %v1165_v13 = vadd.f32 %v2275_v58, %v2354_v19  ;;  %v1205_v44 = vadd.f32 %v2293_v40, %v2354_v19  ;;  %v1245_v35 = vadd.f32 %v2316_v7, %v2354_v19  ;;  %v1285_v41 = vadd.f32 %v2323_v38, %v2354_v19 }
  0xe7   :  { %v1723_v52 = vpop.eup %1722  ;;  %v893_v26 = vadd.f32 %v889_v60, %v877_v8  ;;  %v2372_v2 = vmul.f32 %v1721_v37, %v1164_v6  ;;  %v1320_v29 = vadd.f32 %v1319_v59, %v1317_v36  ;;  %v1244_v51 = vadd.f32 0.5, %v1243_v47  ;;  %v1121_v21 = vpop.f32.mrf.mxu2  ;;  %v1604_v37 = vld [vmem:[%s2492_s4 + $0x68] sm:$0xff]  ;;  %v1399_v36 = vld [vmem:[#allocation7 + $0x130] sm:$0xff]  ;;  %v1327_v59 = vld [vmem:[#allocation7 + $0x160] sm:$0xff] }
  0xe8   :  { %v1725_v56 = vpop.eup %1724  ;;  %v1168_v50 = vadd.f32 %v1167_v46, %v1165_v13  ;;  %v1208_v58 = vadd.f32 %v1207_v54, %v1205_v44  ;;  %v1248_v48 = vadd.f32 %v1247_v45, %v1245_v35  ;;  %v1288_v43 = vadd.f32 %v1287_v20, %v1285_v41  ;;  %v1147_v60 = vpop.f32.mrf.mxu3 }
  0xe9   :  { %v1727_v40 = vpop.eup %1726  ;;  %v909_v7 = vadd.f32 %v905_v42, %v893_v26  ;;  %v2374_v53 = vmul.f32 %v1723_v52, %v1204_v55  ;;  %v1344_v39 = vadd.f32 %v1343_v3, %v2289_v14  ;;  %v1360_v57 = vadd.f32 %v1359_v5, %v1357_v62  ;;  %v1072_v6 = vpop.f32.mrf.mxu0 }
  0xea   :  { %v1169_v38 = vmul.f32 0.5, %v1168_v50  ;;  %v1209_v15 = vmul.f32 0.5, %v1208_v58  ;;  %v1249_v30 = vmul.f32 0.5, %v1248_v48  ;;  %v1289_v63 = vmul.f32 0.5, %v1288_v43 }
  0xeb   :  { %v2376_v11 = vadd.f32 %v921_v12, %v909_v7  ;;  %v1283_v1 = vmul.f32 0.5, %v1727_v40  ;;  %v1321_v54 = vmul.f32 0.5, %v1320_v29  ;;  %v1397_v45 = vadd.f32 %v1121_v21, %v2270_v4  ;;  %v1729_v20 = vpop.eup %1728  ;;  %v1346_v12 = vld [vmem:[#allocation7 + $0x1e0] sm:$0xff] }
  0xec   :  { %1730 = vtanh.f32 %v1169_v38  ;;  %v2391_v49 = vmul.f32 %v1725_v56, %v1244_v51  ;;  %v1383_v44 = vmul.f32 %v2025_v34, %v1604_v37  ;;  %v1325_v35 = vadd.f32 %v1072_v6, %v2354_v19 }
  0xed   :  { %1732 = vtanh.f32 %v1209_v15  ;;  %v1173_v27 = vadd.f32 %v2325_v17, %v2376_v11  ;;  %v1213_v46 = vadd.f32 %v2335_v10, %v2376_v11  ;;  %v1253_v8 = vadd.f32 %v2349_v28, %v2376_v11  ;;  %v1098_v28 = vpop.f32.mrf.mxu1 }
  0xee   :  { %1734 = vtanh.f32 %v1249_v30  ;;  %v1293_v47 = vadd.f32 %v2351_v18, %v2376_v11  ;;  %v1607_v18 = vld [vmem:[%s2492_s4 + $0x70] sm:$0xff]  ;;  %v1284_v41 = vadd.f32 0.5, %v1283_v1  ;;  %v1347_v50 = vadd.f32 %v1346_v12, %v1344_v39 }
  0xef   :  { %1736 = vtanh.f32 %v1289_v63  ;;  %v1176_v17 = vadd.f32 %v1175_v61, %v1173_v27  ;;  %v1216_v42 = vadd.f32 %v1215_v16, %v1213_v46  ;;  %v1256_v10 = vadd.f32 %v1255_v9, %v1253_v8  ;;  %v1386_v63 = vld [vmem:[#allocation7 + $0x1e8] sm:$0xff]  ;;  %v1124_v1 = vpop.f32.mrf.mxu2  ;;  %v1439_v46 = vld [vmem:[#allocation7 + $0x138] sm:$0xff] }
  0xf0   :  { %v1296_v13 = vadd.f32 %v1295_v0, %v1293_v47  ;;  %1738 = vtanh.f32 %v1321_v54  ;;  %v1400_v56 = vadd.f32 %v1399_v36, %v1397_v45  ;;  %v1361_v43 = vmul.f32 0.5, %v1360_v57  ;;  %v1150_v39 = vpop.f32.mrf.mxu3  ;;  %v1367_v0 = vld [vmem:[#allocation7 + $0x168] sm:$0xff]  ;;  %v1407_v54 = vld [vmem:[#allocation7 + $0x170] sm:$0xff]  ;;  %v1447_v45 = vld [vmem:[#allocation7 + $0x178] sm:$0xff] }
  0xf1   :  { %v1177_v52 = vmul.f32 0.5, %v1176_v17  ;;  %v1217_v55 = vmul.f32 0.5, %v1216_v42  ;;  %v1257_v26 = vmul.f32 0.5, %v1256_v10  ;;  %v2399_v40 = vmul.f32 %v2013_v31, %v1607_v18  ;;  %v1075_v57 = vpop.f32.mrf.mxu0 }
  0xf2   :  { %v1731_v3 = vpop.eup %1730  ;;  %v1297_v62 = vmul.f32 0.5, %v1296_v13  ;;  %v1384_v38 = vadd.f32 %v1383_v44, %v2289_v14  ;;  %v1328_v15 = vadd.f32 %v1327_v59, %v1325_v35  ;;  %v1437_v21 = vadd.f32 %v1147_v60, %v2270_v4 }
  0xf3   :  { %v1733_v58 = vpop.eup %1732  ;;  %v1171_v48 = vmul.f32 0.5, %v1731_v3  ;;  %1740 = vtanh.f32 %v1177_v52  ;;  %v1401_v9 = vmul.f32 0.5, %v1400_v56  ;;  %v2403_v6 = vmul.f32 %v1729_v20, %v1284_v41  ;;  %v1335_v20 = vld [vmem:[#allocation7 + $0x1a0] sm:$0xff]  ;;  %v1610_v52 = vld [vmem:[%s2492_s4 + $0x78] sm:$0xff] }
  0xf4   :  { %v1735_v7 = vpop.eup %1734  ;;  %v1211_v5 = vmul.f32 0.5, %v1733_v58  ;;  %1742 = vtanh.f32 %v1217_v55  ;;  %v1329_v8 = vmul.f32 0.5, %v1328_v15  ;;  %v2413_v60 = vadd.f32 %v1386_v63, %v1384_v38 }
  0xf5   :  { %v1737_v30 = vpop.eup %1736  ;;  %v1172_v29 = vadd.f32 0.5, %v1171_v48  ;;  %v1251_v51 = vmul.f32 0.5, %v1735_v7  ;;  %1744 = vtanh.f32 %v1257_v26  ;;  %v1365_v47 = vadd.f32 %v1098_v28, %v2354_v19  ;;  %v1101_v36 = vpop.f32.mrf.mxu1 }
  0xf6   :  { %v1212_v61 = vadd.f32 0.5, %v1211_v5  ;;  %v1291_v16 = vmul.f32 0.5, %v1737_v30  ;;  %1746 = vtanh.f32 %v1297_v62  ;;  %v2408_v37 = vpop.eup %1738  ;;  %v1405_v42 = vadd.f32 %v1124_v1, %v2354_v19 }
  0xf7   :  { %1591 = vst [vmem:[%s2495_s7 + $0x40] sm:$0xff] %v1172_v29  ;;  %v1252_v27 = vadd.f32 0.5, %v1251_v51  ;;  %1748 = vtanh.f32 %v1347_v50  ;;  %v1445_v10 = vadd.f32 %v1150_v39, %v2354_v19  ;;  %v1333_v12 = vadd.f32 %v1075_v57, %v2376_v11  ;;  %v1375_v51 = vld [vmem:[#allocation7 + $0x1a8] sm:$0xff] }
  0xf8   :  { %1594 = vst [vmem:[%s2495_s7 + $0x48] sm:$0xff] %v1212_v61  ;;  %v1292_v4 = vadd.f32 0.5, %v1291_v16  ;;  %1750 = vtanh.f32 %v1361_v43  ;;  %v1440_v44 = vadd.f32 %v1439_v46, %v1437_v21  ;;  %v1368_v18 = vadd.f32 %v1367_v0, %v1365_v47  ;;  %v1127_v46 = vpop.f32.mrf.mxu2  ;;  %v1415_v47 = vld [vmem:[#allocation7 + $0x1b0] sm:$0xff] }
  0xf9   :  { %v1741_v17 = vpop.eup %1740  ;;  %1597 = vst [vmem:[%s2495_s7 + $0x50] sm:$0xff] %v1252_v27  ;;  %1752 = vtanh.f32 %v1329_v8  ;;  %v1408_v55 = vadd.f32 %v1407_v54, %v1405_v42  ;;  %v1448_v19 = vadd.f32 %v1447_v45, %v1445_v10  ;;  %v1336_v26 = vadd.f32 %v1335_v20, %v1333_v12  ;;  %v1455_v54 = vld [vmem:[#allocation7 + $0x1b8] sm:$0xff] }
  0xfa   :  { %v1743_v13 = vpop.eup %1742  ;;  %1600 = vst [vmem:[%s2495_s7 + $0x58] sm:$0xff] %v1292_v4  ;;  %v1179_v28 = vmul.f32 0.5, %v1741_v17  ;;  %1754 = vtanh.f32 %v1401_v9  ;;  %v1369_v50 = vmul.f32 0.5, %v1368_v18  ;;  %v1373_v56 = vadd.f32 %v1101_v36, %v2376_v11 }
  0xfb   :  { %v1745_v35 = vpop.eup %1744  ;;  %v1219_v41 = vmul.f32 0.5, %v1743_v13  ;;  %v1409_v7 = vmul.f32 0.5, %v1408_v55  ;;  %v1449_v5 = vmul.f32 0.5, %v1448_v19  ;;  %v1463_v29 = vmul.f32 %v2017_v32, %v1610_v52 }
  0xfc   :  { %v1747_v59 = vpop.eup %1746  ;;  %v1180_v3 = vadd.f32 0.5, %v1179_v28  ;;  %v1259_v62 = vmul.f32 0.5, %v1745_v35  ;;  %1756 = vtanh.f32 %v1369_v50  ;;  %v1337_v61 = vmul.f32 0.5, %v1336_v26 }
  0xfd   :  { %v2429_v58 = vpop.eup %1748  ;;  %v1220_v48 = vadd.f32 0.5, %v1219_v41  ;;  %v1299_v43 = vmul.f32 0.5, %v1747_v59  ;;  %1758 = vtanh.f32 %v1409_v7  ;;  %v1441_v57 = vmul.f32 0.5, %v1440_v44 }
  0xfe   :  { %v1751_v38 = vpop.eup %1750  ;;  %v1189_v15 = vmul.f32 %v1979_v24, %v1180_v3  ;;  %v1260_v30 = vadd.f32 0.5, %v1259_v62  ;;  %v1153_v24 = vpop.f32.mrf.mxu3  ;;  %1760 = vtanh.f32 %v1449_v5  ;;  %v1376_v4 = vadd.f32 %v1375_v51, %v1373_v56 }
  0xff   :  { %v1753_v63 = vpop.eup %1752  ;;  %v1229_v21 = vmul.f32 %v1983_v25, %v1220_v48  ;;  %v1300_v1 = vadd.f32 0.5, %v1299_v43  ;;  %1762 = vtanh.f32 %v1337_v61  ;;  %v1413_v45 = vadd.f32 %v1127_v46, %v2376_v11 }
 0x100   :  { %v1755_v16 = vpop.eup %1754  ;;  %v1191_v9 = vadd.f32 %v2372_v2, %v1189_v15  ;;  %v1269_v39 = vmul.f32 %v1973_v22, %v1260_v30  ;;  %v1331_v27 = vmul.f32 0.5, %v1753_v63  ;;  %v1424_v2 = vadd.f32 %v2399_v40, %v2289_v14  ;;  %v1426_v40 = vld [vmem:[#allocation7 + $0x1f0] sm:$0xff] }
 0x101   :  { %v1231_v8 = vadd.f32 %v2374_v53, %v1229_v21  ;;  %v1309_v0 = vmul.f32 %v1976_v23, %v1300_v1  ;;  %v1377_v53 = vmul.f32 0.5, %v1376_v4  ;;  %v1453_v20 = vadd.f32 %v1153_v24, %v2376_v11 }
 0x102   :  { %1590 = vst [vmem:[%s2494_s6 + $0x40] sm:$0xff] %v1191_v9  ;;  %v1271_v25 = vadd.f32 %v2391_v49, %v1269_v39  ;;  %v1332_v22 = vadd.f32 0.5, %v1331_v27  ;;  %v1757_v17 = vpop.eup %1756  ;;  %v1323_v49 = vmul.f32 0.5, %v2408_v37  ;;  %1764 = vtanh.f32 %v1441_v57 }
 0x103   :  { %1593 = vst [vmem:[%s2494_s6 + $0x48] sm:$0xff] %v1231_v8  ;;  %v1311_v23 = vadd.f32 %v2403_v6, %v1309_v0  ;;  %v1464_v42 = vadd.f32 %v1463_v29, %v2289_v14  ;;  %v1759_v10 = vpop.eup %1758  ;;  %v1466_v6 = vld [vmem:[#allocation7 + $0x1f8] sm:$0xff]  ;;  %v1371_v12 = vmul.f32 0.5, %v1757_v17  ;;  %1766 = vtanh.f32 %v1377_v53 }
 0x104   :  { %1596 = vst [vmem:[%s2494_s6 + $0x50] sm:$0xff] %v1271_v25  ;;  %v1416_v11 = vadd.f32 %v1415_v47, %v1413_v45  ;;  %v1456_v36 = vadd.f32 %v1455_v54, %v1453_v20  ;;  %1768 = vtanh.f32 %v2413_v60  ;;  %v1411_v37 = vmul.f32 0.5, %v1759_v10  ;;  %v1761_v13 = vpop.eup %1760 }
 0x105   :  { %1599 = vst [vmem:[%s2494_s6 + $0x58] sm:$0xff] %v1311_v23  ;;  %v1427_v28 = vadd.f32 %v1426_v40, %v1424_v2  ;;  %v1372_v14 = vadd.f32 0.5, %v1371_v12  ;;  %v1763_v35 = vpop.eup %1762  ;;  %v1363_v41 = vmul.f32 0.5, %v1751_v38  ;;  %v1467_v52 = vadd.f32 %v1466_v6, %v1464_v42 }
 0x106   :  { %1603 = vst [vmem:[%s2495_s7 + $0x60] sm:$0xff] %v1332_v22  ;;  %v1417_v44 = vmul.f32 0.5, %v1416_v11  ;;  %v1457_v18 = vmul.f32 0.5, %v1456_v36  ;;  %v1412_v55 = vadd.f32 0.5, %v1411_v37  ;;  %v1451_v19 = vmul.f32 0.5, %v1761_v13 }
 0x107   :  { %v1324_v26 = vadd.f32 0.5, %v1323_v49  ;;  %1606 = vst [vmem:[%s2495_s7 + $0x68] sm:$0xff] %v1372_v14  ;;  %v1339_v60 = vmul.f32 0.5, %v1763_v35  ;;  %v1364_v48 = vadd.f32 0.5, %v1363_v41  ;;  %v1403_v43 = vmul.f32 0.5, %v1755_v16 }
 0x108   :  { %1770 = vtanh.f32 %v1417_v44  ;;  %v1765_v59 = vpop.eup %1764  ;;  %1609 = vst [vmem:[%s2495_s7 + $0x70] sm:$0xff] %v1412_v55  ;;  %v1452_v3 = vadd.f32 0.5, %v1451_v19 }
 0x109   :  { %1772 = vtanh.f32 %v1457_v18  ;;  %v1767_v62 = vpop.eup %1766  ;;  %v1340_v50 = vadd.f32 0.5, %v1339_v60  ;;  %v1350_v5 = vmul.f32 %v2429_v58, %v1324_v26  ;;  %v1443_v38 = vmul.f32 0.5, %v1765_v59 }
 0x10a   :  { %1774 = vtanh.f32 %v1427_v28  ;;  %v1769_v56 = vpop.eup %1768  ;;  %1612 = vst [vmem:[%s2495_s7 + $0x78] sm:$0xff] %v1452_v3  ;;  %v1379_v7 = vmul.f32 0.5, %v1767_v62  ;;  %v1404_v1 = vadd.f32 0.5, %v1403_v43 }
 0x10b   :  { %1776 = vtanh.f32 %v1467_v52  ;;  %v1349_v15 = vmul.f32 %v2022_v33, %v1340_v50  ;;  %v1390_v21 = vmul.f32 %v1769_v56, %v1364_v48  ;;  %v1444_v39 = vadd.f32 0.5, %v1443_v38 }
 0x10c   :  { %v1380_v30 = vadd.f32 0.5, %v1379_v7 }
 0x10d   :  { %v1351_v51 = vadd.f32 %v1350_v5, %v1349_v15 }
 0x10e   :  { %v1771_v29 = vpop.eup %1770  ;;  %v1389_v61 = vmul.f32 %v2025_v34, %v1380_v30 }
 0x10f   :  { %v1773_v63 = vpop.eup %1772  ;;  %v1419_v16 = vmul.f32 0.5, %v1771_v29  ;;  %1602 = vst [vmem:[%s2494_s6 + $0x60] sm:$0xff] %v1351_v51 }
 0x110   :  { %v1775_v9 = vpop.eup %1774  ;;  %v1459_v57 = vmul.f32 0.5, %v1773_v63  ;;  %v1391_v27 = vadd.f32 %v1390_v21, %v1389_v61 }
 0x111   :  { %v1777_v58 = vpop.eup %1776  ;;  %v1420_v46 = vadd.f32 0.5, %v1419_v16  ;;  %v1430_v24 = vmul.f32 %v1775_v9, %v1404_v1 }
 0x112   :  { %v1460_v33 = vadd.f32 0.5, %v1459_v57  ;;  %1605 = vst [vmem:[%s2494_s6 + $0x68] sm:$0xff] %v1391_v27  ;;  %v1470_v34 = vmul.f32 %v1777_v58, %v1444_v39 }
 0x113   :  { %v1429_v8 = vmul.f32 %v2013_v31, %v1420_v46 }
 0x114   :  { %v1469_v0 = vmul.f32 %v2017_v32, %v1460_v33 }
 0x115   :  { %v1431_v4 = vadd.f32 %v1430_v24, %v1429_v8 }
 0x116   :  { %v1471_v25 = vadd.f32 %v1470_v34, %v1469_v0 }
 0x117   :  { %1608 = vst [vmem:[%s2494_s6 + $0x70] sm:$0xff] %v1431_v4 }
 0x118   :  { %1611 = vst [vmem:[%s2494_s6 + $0x78] sm:$0xff] %v1471_v25 }
 0x119   :  { %1484 = vsyncpa [#allocation4], 1 }
 0x11a   :  { %1485 = vsyncpa [#allocation8], 1 }
 0x11b   :  { %1486 = vsyncpa [#allocation5], 1 }

</bundles_post_ra>
